<compile_context>
chip_gen: v7x
topology: tpu7x:2x2x1
jax: 0.10.0
libtpu: 0.0.40
codegen_flags: <defaults>
</compile_context>

<pallas_src>
import functools
import math

import jax
import jax.numpy as jnp
from jax.experimental import pallas as pl
from jax.experimental.pallas import tpu as pltpu

NS = 0.2                   # leaky_relu negative slope
EPS = 1e-5                 # InstanceNorm1d eps
ACT_DT = jnp.bfloat16      # inter-kernel activation storage dtype
WGT_DT = jnp.bfloat16      # MXU operand dtype (f32 accumulation)
VMEM_LIMIT = 32 * 1024 * 1024


def _round_up(n, m):
    return (n + m - 1) // m * m


def _leaky(x):
    return jnp.where(x >= 0, x, NS * x)


def _inorm(x):
    """InstanceNorm over the time axis of one sample's (T, C) block (f32)."""
    mean = jnp.mean(x, axis=0, keepdims=True)
    var = jnp.mean((x - mean) ** 2, axis=0, keepdims=True)
    return (x - mean) * jax.lax.rsqrt(var + EPS)


# ---------------------------------------------------------------------------
# BlockSpec helpers: one sample per grid step, resident weights.
# ---------------------------------------------------------------------------

def _act_spec(t, c):
    return pl.BlockSpec((None, t, c), lambda b: (b, 0, 0))


def _const_spec(shape):
    n = len(shape)
    return pl.BlockSpec(shape, lambda b, n=n: (0,) * n)


def _sample_call(kernel, args, in_specs, out_shape, out_spec):
    B = args[0].shape[0]
    return pl.pallas_call(
        kernel,
        out_shape=out_shape,
        grid=(B,),
        in_specs=in_specs,
        out_specs=out_spec,
        compiler_params=pltpu.CompilerParams(
            dimension_semantics=("parallel",),
            vmem_limit_bytes=VMEM_LIMIT),
    )(*args)


# ---------------------------------------------------------------------------
# Fused matmul kernels (per-sample blocks)
# ---------------------------------------------------------------------------

def _mm_act_kernel(x_ref, w_ref, b_ref, o_ref):
    """leaky(x @ W + b).  Used for the fused stage-1 (7 conv1 branches+cat)."""
    acc = jnp.dot(x_ref[...], w_ref[...],
                  preferred_element_type=jnp.float32) + b_ref[...]
    o_ref[...] = _leaky(acc).astype(o_ref.dtype)


def _mm_act_norm_kernel(x_ref, w_ref, b_ref, o_ref):
    """InstanceNorm(leaky(x @ W + b)).  conv2 (k=1) block, no residual."""
    acc = jnp.dot(x_ref[...], w_ref[...],
                  preferred_element_type=jnp.float32) + b_ref[...]
    o_ref[...] = _inorm(_leaky(acc)).astype(o_ref.dtype)


def _conv5_kernel(xp_ref, w_ref, b_ref, o_ref, *, T):
    """k=5 conv as in-VMEM im2col + one wide dot, + leaky.  Input is the
    reflect-padded (T+4, C) sample."""
    xp = xp_ref[...].astype(jnp.float32)                        # (T+4, C)
    xcol = jnp.concatenate([xp[j:j + T, :] for j in range(5)], axis=-1)
    acc = jnp.dot(xcol.astype(WGT_DT), w_ref[...],
                  preferred_element_type=jnp.float32) + b_ref[...]
    o_ref[...] = _leaky(acc).astype(o_ref.dtype)


def _conv5_norm_res_kernel(xp_ref, r_ref, w_ref, b_ref, o_ref, *, T):
    """Second conv of a conv_block pair: im2col dot + leaky + InstanceNorm +
    residual (r = block input)."""
    xp = xp_ref[...].astype(jnp.float32)                        # (T+4, C)
    xcol = jnp.concatenate([xp[j:j + T, :] for j in range(5)], axis=-1)
    acc = jnp.dot(xcol.astype(WGT_DT), w_ref[...],
                  preferred_element_type=jnp.float32) + b_ref[...]
    acc = _inorm(_leaky(acc)) + r_ref[...].astype(jnp.float32)
    o_ref[...] = acc.astype(o_ref.dtype)


def _dense_block_kernel(x_ref, w1_ref, b1_ref, w2_ref, b2_ref, o_ref):
    """(linear + leaky) x2 + InstanceNorm + residual(x) in one kernel."""
    x = x_ref[...]                                              # (T, C) bf16
    h1 = _leaky(jnp.dot(x, w1_ref[...],
                        preferred_element_type=jnp.float32) + b1_ref[...])
    h2 = _leaky(jnp.dot(h1.astype(WGT_DT), w2_ref[...],
                        preferred_element_type=jnp.float32) + b2_ref[...])
    out = _inorm(h2) + x.astype(jnp.float32)
    o_ref[...] = out.astype(o_ref.dtype)


# ---------------------------------------------------------------------------
# Bi-LSTM.  PyTorch RNN() quirk: the seq-first LSTM is fed the (B, T, C)
# permute, so the recurrence runs over the BATCH axis with T as LSTM batch.
# Hidden dim is padded to HP = 128 lanes (padded lanes provably stay 0).
# ---------------------------------------------------------------------------

def _lstm_proj_kernel(x_ref, w_ref, o_ref):
    """Fused input projection for BOTH directions: gx = x @ [Wih_f | Wih_b]."""
    o_ref[...] = jnp.dot(x_ref[...], w_ref[...],
                         preferred_element_type=jnp.float32).astype(o_ref.dtype)


def _lstm_kernel(gx_ref, whh_ref, b_ref, o_ref, h_sc, c_sc, *, HP):
    d = pl.program_id(0)                          # direction ("parallel" axis)

    @pl.when(pl.program_id(1) == 0)               # first step of this direction
    def _():
        h_sc[d] = jnp.zeros(h_sc.shape[1:], jnp.float32)
        c_sc[d] = jnp.zeros(c_sc.shape[1:], jnp.float32)

    h = h_sc[d]
    c = c_sc[d]
    gates = (gx_ref[...].astype(jnp.float32) + b_ref[...]
             + jnp.dot(h.astype(WGT_DT), whh_ref[...],
                       preferred_element_type=jnp.float32))     # (N, 4*HP) f32
    i = jax.nn.sigmoid(gates[:, 0:HP])
    f = jax.nn.sigmoid(gates[:, HP:2 * HP])
    g = jnp.tanh(gates[:, 2 * HP:3 * HP])
    o = jax.nn.sigmoid(gates[:, 3 * HP:4 * HP])
    c_new = f * c + i * g
    h_new = o * jnp.tanh(c_new)
    h_sc[d] = h_new
    c_sc[d] = c_new
    o_ref[...] = h_new.astype(o_ref.dtype)


def _bilstm(gx, whh, bias, *, S, N, HP):
    def tmap(d, s):                               # fwd: s ; bwd: S-1-s
        return s * (1 - 2 * d) + d * (S - 1)

    return pl.pallas_call(
        functools.partial(_lstm_kernel, HP=HP),
        out_shape=jax.ShapeDtypeStruct((2, S, N, HP), ACT_DT),
        grid=(2, S),
        in_specs=[
            pl.BlockSpec((None, N, 4 * HP), lambda d, s: (tmap(d, s), 0, d)),
            pl.BlockSpec((None, HP, 4 * HP), lambda d, s: (d, 0, 0)),
            pl.BlockSpec((None, 1, 4 * HP), lambda d, s: (d, 0, 0)),
        ],
        out_specs=pl.BlockSpec((None, None, N, HP),
                               lambda d, s: (d, tmap(d, s), 0, 0)),
        scratch_shapes=[pltpu.VMEM((2, N, HP), jnp.float32),
                        pltpu.VMEM((2, N, HP), jnp.float32)],
        compiler_params=pltpu.CompilerParams(
            dimension_semantics=("parallel", "arbitrary"),
            vmem_limit_bytes=VMEM_LIMIT),
    )(gx, whh, bias)


# ---------------------------------------------------------------------------
# Final linear: cat([out, h_fwd, h_bwd]) built in VMEM -> one K=(C+2*HP) dot.
# ---------------------------------------------------------------------------

def _final_kernel(x_ref, hr_ref, w_ref, b_ref, o_ref):
    xcat = jnp.concatenate([x_ref[...], hr_ref[0], hr_ref[1]], axis=-1)
    acc = jnp.dot(xcat.astype(WGT_DT), w_ref[...],
                  preferred_element_type=jnp.float32) + b_ref[...]
    o_ref[...] = _leaky(acc).astype(o_ref.dtype)


# ---------------------------------------------------------------------------
# Forward pass (mirrors Encoder.forward)
# ---------------------------------------------------------------------------

def encoder_forward(prep, x_nct):
    B, c_in, T = x_nct.shape
    K1 = prep["conv1_w"].shape[0]          # padded 7*c_in (128-lane multiple)
    CATP = prep["conv1_w"].shape[1]        # padded 7*c_h1 + c_in
    C = prep["conv2_w"].shape[1]           # c_h2
    HP = prep["lstm_whh"].shape[1]
    G8 = prep["lstm_wih"].shape[1]         # 8 * HP (both directions)

    x3 = jnp.transpose(x_nct, (0, 2, 1))                       # (B, T, c_in)

    # Stage 1: 7 conv1 branches + concat(+x) + leaky -> ONE fused matmul.
    # (JAX-side im2col; K padded with zero columns up to a 128-lane multiple.)
    xpad = jnp.pad(x3, ((0, 0), (3, 3), (0, 0)), mode="reflect")
    xcol = jnp.concatenate([xpad[:, o:o + T, :] for o in range(7)], axis=-1)
    xcol = jnp.pad(xcol, ((0, 0), (0, 0), (0, K1 - 7 * c_in))).astype(ACT_DT)
    h = _sample_call(
        _mm_act_kernel,
        [xcol, prep["conv1_w"], prep["conv1_b"]],
        [_act_spec(T, K1), _const_spec(prep["conv1_w"].shape),
         _const_spec(prep["conv1_b"].shape)],
        jax.ShapeDtypeStruct((B, T, CATP), ACT_DT), _act_spec(T, CATP))

    # Block 1: conv2 (k=1) + leaky + InstanceNorm, no residual.
    h = _sample_call(
        _mm_act_norm_kernel,
        [h, prep["conv2_w"], prep["conv2_b"]],
        [_act_spec(T, CATP), _const_spec(prep["conv2_w"].shape),
         _const_spec(prep["conv2_b"].shape)],
        jax.ShapeDtypeStruct((B, T, C), ACT_DT), _act_spec(T, C))

    # Blocks 2-4: (conv k=5 + leaky) then (conv k=5 + leaky + norm + residual).
    # Reflect padding is JAX glue; the 5x widening happens in VMEM.
    for na, nb in (("conv3", "conv4"), ("conv5", "conv6"), ("conv7", "conv8")):
        hp = jnp.pad(h, ((0, 0), (2, 2), (0, 0)), mode="reflect")
        y = _sample_call(
            functools.partial(_conv5_kernel, T=T),
            [hp, prep[f"{na}_w"], prep[f"{na}_b"]],
            [_act_spec(T + 4, C), _const_spec(prep[f"{na}_w"].shape),
             _const_spec(prep[f"{na}_b"].shape)],
            jax.ShapeDtypeStruct((B, T, C), ACT_DT), _act_spec(T, C))
        yp = jnp.pad(y, ((0, 0), (2, 2), (0, 0)), mode="reflect")
        h = _sample_call(
            functools.partial(_conv5_norm_res_kernel, T=T),
            [yp, h, prep[f"{nb}_w"], prep[f"{nb}_b"]],
            [_act_spec(T + 4, C), _act_spec(T, C),
             _const_spec(prep[f"{nb}_w"].shape),
             _const_spec(prep[f"{nb}_b"].shape)],
            jax.ShapeDtypeStruct((B, T, C), ACT_DT), _act_spec(T, C))

    # Dense blocks: (linear + leaky) x2 + norm + residual, one kernel each.
    for n1, n2 in (("dense1", "dense2"), ("dense3", "dense4")):
        h = _sample_call(
            _dense_block_kernel,
            [h, prep[f"{n1}_w"], prep[f"{n1}_b"],
             prep[f"{n2}_w"], prep[f"{n2}_b"]],
            [_act_spec(T, C),
             _const_spec(prep[f"{n1}_w"].shape),
             _const_spec(prep[f"{n1}_b"].shape),
             _const_spec(prep[f"{n2}_w"].shape),
             _const_spec(prep[f"{n2}_b"].shape)],
            jax.ShapeDtypeStruct((B, T, C), ACT_DT), _act_spec(T, C))

    # Bi-LSTM over the BATCH axis (seq len = B, LSTM batch = T).
    gx = _sample_call(
        _lstm_proj_kernel,
        [h, prep["lstm_wih"]],
        [_act_spec(T, C), _const_spec(prep["lstm_wih"].shape)],
        jax.ShapeDtypeStruct((B, T, G8), ACT_DT), _act_spec(T, G8))
    hh = _bilstm(gx, prep["lstm_whh"], prep["lstm_b"], S=B, N=T, HP=HP)

    # Final linear on cat([out, h_fwd, h_bwd]) + leaky.
    out = _sample_call(
        _final_kernel,
        [h, hh, prep["lin_w"], prep["lin_b"]],
        [_act_spec(T, C),
         pl.BlockSpec((2, None, T, HP), lambda b: (0, b, 0, 0)),
         _const_spec(prep["lin_w"].shape), _const_spec(prep["lin_b"].shape)],
        jax.ShapeDtypeStruct((B, T, C), jnp.float32), _act_spec(T, C))
    return jnp.transpose(out, (0, 2, 1))                        # (B, c_h2, T)


# ---------------------------------------------------------------------------
# One-time parameter preprocessing (all transposes / packing hoisted here)
# ---------------------------------------------------------------------------

def prepare_params(p, c_in, c_h1, c_h2, c_h3):
    HP = _round_up(c_h3, 128)
    K1 = 7 * c_in
    K1p = _round_up(K1, 128)
    cat = 7 * c_h1 + c_in
    catp = _round_up(cat, 128)
    prep = {}

    # Fused stage-1 weight (K1p, catp): branch k, tap j lands at im2col row
    # block o = j + 3 - k//2 (global reflect pad of 3 matches pad_layer).
    w1 = jnp.zeros((K1p, catp), jnp.float32)
    b1 = jnp.zeros((1, catp), jnp.float32)
    for k in range(1, 8):
        wk = p[f"conv1_{k}_w"]                       # (c_h1, c_in, k)
        for j in range(k):
            o = j + 3 - k // 2
            w1 = w1.at[o * c_in:(o + 1) * c_in,
                       (k - 1) * c_h1:k * c_h1].set(wk[:, :, j].T)
        b1 = b1.at[0, (k - 1) * c_h1:k * c_h1].set(p[f"conv1_{k}_b"])
    # identity block for the raw-x copy appended by torch.cat(outs + [x])
    w1 = w1.at[3 * c_in:4 * c_in, 7 * c_h1:7 * c_h1 + c_in].set(jnp.eye(c_in))
    prep["conv1_w"] = w1.astype(WGT_DT)
    prep["conv1_b"] = b1

    # conv2 (k=1): zero rows for the cat -> catp lane padding.
    w2 = jnp.zeros((catp, c_h2), jnp.float32)
    w2 = w2.at[:cat, :].set(p["conv2_w"][:, :, 0].T)
    prep["conv2_w"] = w2.astype(WGT_DT)
    prep["conv2_b"] = p["conv2_b"].reshape(1, c_h2)

    # conv3..8 (k=5): im2col weights (5*c_h2, c_h2).
    for name in ["conv3", "conv4", "conv5", "conv6", "conv7", "conv8"]:
        wk = p[f"{name}_w"]                          # (c_h2, c_h2, 5)
        w = jnp.concatenate([wk[:, :, j].T for j in range(5)], axis=0)
        prep[f"{name}_w"] = w.astype(WGT_DT)
        prep[f"{name}_b"] = p[f"{name}_b"].reshape(1, c_h2)

    for name in ["dense1", "dense2", "dense3", "dense4"]:
        prep[f"{name}_w"] = p[f"{name}_w"].T.astype(WGT_DT)
        prep[f"{name}_b"] = p[f"{name}_b"].reshape(1, c_h2)

    # LSTM: hidden padded to HP lanes; both directions' W_ih fused along N.
    wih = jnp.zeros((c_h2, 8 * HP), jnp.float32)
    whh_l, b_l = [], []
    for di, sfx in enumerate(["", "_r"]):
        whh = jnp.zeros((HP, 4 * HP), jnp.float32)
        bb = jnp.zeros((1, 4 * HP), jnp.float32)
        for g in range(4):
            wih = wih.at[:, di * 4 * HP + g * HP:
                         di * 4 * HP + g * HP + c_h3].set(
                p[f"lstm_w_ih{sfx}"][g * c_h3:(g + 1) * c_h3, :].T)
            whh = whh.at[:c_h3, g * HP:g * HP + c_h3].set(
                p[f"lstm_w_hh{sfx}"][g * c_h3:(g + 1) * c_h3, :].T)
            bb = bb.at[0, g * HP:g * HP + c_h3].set(
                p[f"lstm_b_ih{sfx}"][g * c_h3:(g + 1) * c_h3]
                + p[f"lstm_b_hh{sfx}"][g * c_h3:(g + 1) * c_h3])
        whh_l.append(whh)
        b_l.append(bb)
    prep["lstm_wih"] = wih.astype(WGT_DT)            # (c_h2, 8*HP) bf16
    prep["lstm_whh"] = jnp.stack(whh_l).astype(WGT_DT)   # (2, HP, 4*HP) bf16
    prep["lstm_b"] = jnp.stack(b_l)                  # (2, 1, 4*HP) f32

    # Final linear packed for the in-VMEM [out | h_fwd | h_bwd] concat; the
    # padded LSTM lanes are exactly zero, so zero weight rows keep it exact.
    lw = p["lin_w"]                                  # (c_h2, c_h2 + 2*c_h3)
    W = jnp.zeros((c_h2 + 2 * HP, c_h2), jnp.float32)
    W = W.at[:c_h2, :].set(lw[:, :c_h2].T)
    W = W.at[c_h2:c_h2 + c_h3, :].set(lw[:, c_h2:c_h2 + c_h3].T)
    W = W.at[c_h2 + HP:c_h2 + HP + c_h3, :].set(lw[:, c_h2 + c_h3:].T)
    prep["lin_w"] = W.astype(WGT_DT)
    prep["lin_b"] = p["lin_b"].reshape(1, c_h2)
    return prep


# ---------------------------------------------------------------------------
# Deterministic torch-layout parameter init (PyTorch-style fan-in uniform)
# ---------------------------------------------------------------------------

def init_params(key, c_in, c_h1, c_h2, c_h3):
    keys = iter(jax.random.split(key, 64))

    def u(shape, fan_in):
        s = 1.0 / math.sqrt(fan_in)
        return jax.random.uniform(next(keys), shape, jnp.float32, -s, s)

    p = {}
    for k in range(1, 8):
        p[f"conv1_{k}_w"] = u((c_h1, c_in, k), c_in * k)
        p[f"conv1_{k}_b"] = u((c_h1,), c_in * k)
    cat = 7 * c_h1 + c_in
    p["conv2_w"] = u((c_h2, cat, 1), cat)
    p["conv2_b"] = u((c_h2,), cat)
    for name in ["conv3", "conv4", "conv5", "conv6", "conv7", "conv8"]:
        p[f"{name}_w"] = u((c_h2, c_h2, 5), c_h2 * 5)
        p[f"{name}_b"] = u((c_h2,), c_h2 * 5)
    for name in ["dense1", "dense2", "dense3", "dense4"]:
        p[f"{name}_w"] = u((c_h2, c_h2), c_h2)
        p[f"{name}_b"] = u((c_h2,), c_h2)
    for sfx in ["", "_r"]:
        p[f"lstm_w_ih{sfx}"] = u((4 * c_h3, c_h2), c_h3)
        p[f"lstm_w_hh{sfx}"] = u((4 * c_h3, c_h3), c_h3)
        p[f"lstm_b_ih{sfx}"] = u((4 * c_h3,), c_h3)
        p[f"lstm_b_hh{sfx}"] = u((4 * c_h3,), c_h3)
    p["lin_w"] = u((c_h2, c_h2 + 2 * c_h3), c_h2 + 2 * c_h3)
    p["lin_b"] = u((c_h2,), c_h2 + 2 * c_h3)
    return p


if __name__ == "__main__":
    # Small shapes consistent with the module's parameterization.
    B, T = 2, 16
    C_IN, C_H1, C_H2, C_H3 = 16, 32, 128, 32

    key = jax.random.PRNGKey(0)
    pkey, xkey = jax.random.split(key)
    raw = init_params(pkey, C_IN, C_H1, C_H2, C_H3)
    prep = prepare_params(raw, C_IN, C_H1, C_H2, C_H3)
    x = jax.random.normal(xkey, (B, C_IN, T), jnp.float32)

    fwd = jax.jit(encoder_forward)
    out = jax.block_until_ready(fwd(prep, x))
    assert out.shape == (B, C_H2, T), out.shape
    assert bool(jnp.all(jnp.isfinite(out)))
    print("KERNEL_OK")
</pallas_src>

<mosaic_0001>
module attributes {stable_mosaic.version = 11 : i64} {
  func.func @_mm_act_kernel(%arg0: i32, %arg1: memref<1x16x128xbf16, #tpu.memory_space<vmem>>, %arg2: memref<128x256xbf16, #tpu.memory_space<vmem>>, %arg3: memref<1x256xf32, #tpu.memory_space<vmem>>, %arg4: memref<1x16x256xbf16, #tpu.memory_space<vmem>>) attributes {dimension_semantics = [#tpu.dimension_semantics<parallel>], iteration_bounds = array<i64: 2>, scalar_prefetch = 0 : i64, scratch_operands = 0 : i64, tpu.core_type = #tpu.core_type<tc>, window_params = [{transform_indices = @transform_0, window_bounds = array<i64: 1, 16, 128>}, {pipeline_mode = #tpu.pipeline_mode<synchronous>, transform_indices = @transform_1, window_bounds = array<i64: 128, 256>}, {pipeline_mode = #tpu.pipeline_mode<synchronous>, transform_indices = @transform_2, window_bounds = array<i64: 1, 256>}, {transform_indices = @transform_3, window_bounds = array<i64: 1, 16, 256>}]} {
    %c0 = arith.constant 0 : index
    %c0_0 = arith.constant 0 : index
    %c0_1 = arith.constant 0 : index
    %0 = vector.load %arg1[%c0, %c0_0, %c0_1] : memref<1x16x128xbf16, #tpu.memory_space<vmem>>, vector<1x16x128xbf16>
    %1 = vector.shape_cast %0 : vector<1x16x128xbf16> to vector<16x128xbf16>
    %c0_2 = arith.constant 0 : index
    %c0_3 = arith.constant 0 : index
    %2 = vector.load %arg2[%c0_2, %c0_3] : memref<128x256xbf16, #tpu.memory_space<vmem>>, vector<128x256xbf16>
    %cst = arith.constant dense<0.000000e+00> : vector<16x256xf32>
    %3 = tpu.matmul %1, %2, %cst {dimension_numbers = #tpu.dot_dimension_numbers<[1], [0], [0], [1], [0, 0, 1, 1], [], []>} : vector<16x128xbf16>, vector<128x256xbf16>, vector<16x256xf32> -> vector<16x256xf32>
    %c0_4 = arith.constant 0 : index
    %c0_5 = arith.constant 0 : index
    %4 = vector.load %arg3[%c0_4, %c0_5] : memref<1x256xf32, #tpu.memory_space<vmem>>, vector<1x256xf32>
    %5 = vector.broadcast %4 : vector<1x256xf32> to vector<16x256xf32>
    %6 = arith.addf %3, %5 : vector<16x256xf32>
    %cst_6 = arith.constant 0.000000e+00 : f32
    %7 = vector.broadcast %cst_6 : f32 to vector<16x256xf32>
    %8 = arith.cmpf oge, %6, %7 : vector<16x256xf32>
    %cst_7 = arith.constant 2.000000e-01 : f32
    %9 = vector.broadcast %cst_7 : f32 to vector<16x256xf32>
    %10 = arith.mulf %9, %6 : vector<16x256xf32>
    %11 = arith.select %8, %6, %10 : vector<16x256xi1>, vector<16x256xf32>
    %12 = arith.truncf %11 : vector<16x256xf32> to vector<16x256xbf16>
    %c0_8 = arith.constant 0 : index
    %c0_9 = arith.constant 0 : index
    %c0_10 = arith.constant 0 : index
    %13 = vector.load %arg4[%c0_8, %c0_9, %c0_10] : memref<1x16x256xbf16, #tpu.memory_space<vmem>>, vector<1x16x256xbf16>
    %14 = vector.shape_cast %13 : vector<1x16x256xbf16> to vector<16x256xbf16>
    %15 = vector.shape_cast %12 : vector<16x256xbf16> to vector<1x16x256xbf16>
    tpu.vector_store %arg4[%c0_8, %c0_9, %c0_10], %15 {strides = array<i32>} : memref<1x16x256xbf16, #tpu.memory_space<vmem>>, vector<1x16x256xbf16>,
    return
  }
  func.func @transform_0(%arg0: i32) -> (i32, i32, i32) {
    %c0_i32 = arith.constant 0 : i32
    %c0_i32_0 = arith.constant 0 : i32
    %c0_i32_1 = arith.constant 0 : i32
    return %arg0, %c0_i32, %c0_i32_0 : i32, i32, i32
  }
  func.func @transform_1(%arg0: i32) -> (i32, i32) {
    %c0_i32 = arith.constant 0 : i32
    %c0_i32_0 = arith.constant 0 : i32
    %c0_i32_1 = arith.constant 0 : i32
    return %c0_i32, %c0_i32_0 : i32, i32
  }
  func.func @transform_2(%arg0: i32) -> (i32, i32) {
    %c0_i32 = arith.constant 0 : i32
    %c0_i32_0 = arith.constant 0 : i32
    %c0_i32_1 = arith.constant 0 : i32
    return %c0_i32, %c0_i32_0 : i32, i32
  }
  func.func @transform_3(%arg0: i32) -> (i32, i32, i32) {
    %c0_i32 = arith.constant 0 : i32
    %c0_i32_0 = arith.constant 0 : i32
    %c0_i32_1 = arith.constant 0 : i32
    return %arg0, %c0_i32, %c0_i32_0 : i32, i32, i32
  }
}

module attributes {stable_mosaic.version = 11 : i64} {
  func.func @_mm_act_norm_kernel(%arg0: i32, %arg1: memref<1x16x256xbf16, #tpu.memory_space<vmem>>, %arg2: memref<256x128xbf16, #tpu.memory_space<vmem>>, %arg3: memref<1x128xf32, #tpu.memory_space<vmem>>, %arg4: memref<1x16x128xbf16, #tpu.memory_space<vmem>>) attributes {dimension_semantics = [#tpu.dimension_semantics<parallel>], iteration_bounds = array<i64: 2>, scalar_prefetch = 0 : i64, scratch_operands = 0 : i64, tpu.core_type = #tpu.core_type<tc>, window_params = [{transform_indices = @transform_0, window_bounds = array<i64: 1, 16, 256>}, {pipeline_mode = #tpu.pipeline_mode<synchronous>, transform_indices = @transform_1, window_bounds = array<i64: 256, 128>}, {pipeline_mode = #tpu.pipeline_mode<synchronous>, transform_indices = @transform_2, window_bounds = array<i64: 1, 128>}, {transform_indices = @transform_3, window_bounds = array<i64: 1, 16, 128>}]} {
    %c0 = arith.constant 0 : index
    %c0_0 = arith.constant 0 : index
    %c0_1 = arith.constant 0 : index
    %0 = vector.load %arg1[%c0, %c0_0, %c0_1] : memref<1x16x256xbf16, #tpu.memory_space<vmem>>, vector<1x16x256xbf16>
    %1 = vector.shape_cast %0 : vector<1x16x256xbf16> to vector<16x256xbf16>
    %c0_2 = arith.constant 0 : index
    %c0_3 = arith.constant 0 : index
    %2 = vector.load %arg2[%c0_2, %c0_3] : memref<256x128xbf16, #tpu.memory_space<vmem>>, vector<256x128xbf16>
    %cst = arith.constant dense<0.000000e+00> : vector<16x128xf32>
    %3 = tpu.matmul %1, %2, %cst {dimension_numbers = #tpu.dot_dimension_numbers<[1], [0], [0], [1], [0, 0, 1, 1], [], []>} : vector<16x256xbf16>, vector<256x128xbf16>, vector<16x128xf32> -> vector<16x128xf32>
    %c0_4 = arith.constant 0 : index
    %c0_5 = arith.constant 0 : index
    %4 = vector.load %arg3[%c0_4, %c0_5] : memref<1x128xf32, #tpu.memory_space<vmem>>, vector<1x128xf32>
    %5 = vector.broadcast %4 : vector<1x128xf32> to vector<16x128xf32>
    %6 = arith.addf %3, %5 : vector<16x128xf32>
    %cst_6 = arith.constant 0.000000e+00 : f32
    %7 = vector.broadcast %cst_6 : f32 to vector<16x128xf32>
    %8 = arith.cmpf oge, %6, %7 : vector<16x128xf32>
    %cst_7 = arith.constant 2.000000e-01 : f32
    %9 = vector.broadcast %cst_7 : f32 to vector<16x128xf32>
    %10 = arith.mulf %9, %6 : vector<16x128xf32>
    %11 = arith.select %8, %6, %10 : vector<16x128xi1>, vector<16x128xf32>
    %cst_8 = arith.constant dense<0.000000e+00> : vector<128xf32>
    %12 = vector.multi_reduction <add>, %11, %cst_8 [0] : vector<16x128xf32> to vector<128xf32>
    %13 = vector.shape_cast %12 : vector<128xf32> to vector<1x128xf32>
    %cst_9 = arith.constant 1.600000e+01 : f32
    %14 = vector.broadcast %cst_9 : f32 to vector<1x128xf32>
    %15 = arith.divf %13, %14 : vector<1x128xf32>
    %16 = vector.broadcast %15 : vector<1x128xf32> to vector<16x128xf32>
    %17 = arith.subf %11, %16 : vector<16x128xf32>
    %18 = arith.mulf %17, %17 : vector<16x128xf32>
    %cst_10 = arith.constant dense<0.000000e+00> : vector<128xf32>
    %19 = vector.multi_reduction <add>, %18, %cst_10 [0] : vector<16x128xf32> to vector<128xf32>
    %20 = vector.shape_cast %19 : vector<128xf32> to vector<1x128xf32>
    %cst_11 = arith.constant 1.600000e+01 : f32
    %21 = vector.broadcast %cst_11 : f32 to vector<1x128xf32>
    %22 = arith.divf %20, %21 : vector<1x128xf32>
    %23 = vector.broadcast %15 : vector<1x128xf32> to vector<16x128xf32>
    %24 = arith.subf %11, %23 : vector<16x128xf32>
    %cst_12 = arith.constant 9.99999974E-6 : f32
    %25 = vector.broadcast %cst_12 : f32 to vector<1x128xf32>
    %26 = arith.addf %22, %25 : vector<1x128xf32>
    %27 = math.rsqrt %26 : vector<1x128xf32>
    %28 = vector.broadcast %27 : vector<1x128xf32> to vector<16x128xf32>
    %29 = arith.mulf %24, %28 : vector<16x128xf32>
    %30 = arith.truncf %29 : vector<16x128xf32> to vector<16x128xbf16>
    %c0_13 = arith.constant 0 : index
    %c0_14 = arith.constant 0 : index
    %c0_15 = arith.constant 0 : index
    %31 = vector.load %arg4[%c0_13, %c0_14, %c0_15] : memref<1x16x128xbf16, #tpu.memory_space<vmem>>, vector<1x16x128xbf16>
    %32 = vector.shape_cast %31 : vector<1x16x128xbf16> to vector<16x128xbf16>
    %33 = vector.shape_cast %30 : vector<16x128xbf16> to vector<1x16x128xbf16>
    tpu.vector_store %arg4[%c0_13, %c0_14, %c0_15], %33 {strides = array<i32>} : memref<1x16x128xbf16, #tpu.memory_space<vmem>>, vector<1x16x128xbf16>,
    return
  }
  func.func @transform_0(%arg0: i32) -> (i32, i32, i32) {
    %c0_i32 = arith.constant 0 : i32
    %c0_i32_0 = arith.constant 0 : i32
    %c0_i32_1 = arith.constant 0 : i32
    return %arg0, %c0_i32, %c0_i32_0 : i32, i32, i32
  }
  func.func @transform_1(%arg0: i32) -> (i32, i32) {
    %c0_i32 = arith.constant 0 : i32
    %c0_i32_0 = arith.constant 0 : i32
    %c0_i32_1 = arith.constant 0 : i32
    return %c0_i32, %c0_i32_0 : i32, i32
  }
  func.func @transform_2(%arg0: i32) -> (i32, i32) {
    %c0_i32 = arith.constant 0 : i32
    %c0_i32_0 = arith.constant 0 : i32
    %c0_i32_1 = arith.constant 0 : i32
    return %c0_i32, %c0_i32_0 : i32, i32
  }
  func.func @transform_3(%arg0: i32) -> (i32, i32, i32) {
    %c0_i32 = arith.constant 0 : i32
    %c0_i32_0 = arith.constant 0 : i32
    %c0_i32_1 = arith.constant 0 : i32
    return %arg0, %c0_i32, %c0_i32_0 : i32, i32, i32
  }
}

module attributes {stable_mosaic.version = 11 : i64} {
  func.func @_conv5_kernel(%arg0: i32, %arg1: memref<1x20x128xbf16, #tpu.memory_space<vmem>>, %arg2: memref<640x128xbf16, #tpu.memory_space<vmem>>, %arg3: memref<1x128xf32, #tpu.memory_space<vmem>>, %arg4: memref<1x16x128xbf16, #tpu.memory_space<vmem>>) attributes {dimension_semantics = [#tpu.dimension_semantics<parallel>], iteration_bounds = array<i64: 2>, scalar_prefetch = 0 : i64, scratch_operands = 0 : i64, tpu.core_type = #tpu.core_type<tc>, window_params = [{transform_indices = @transform_0, window_bounds = array<i64: 1, 20, 128>}, {pipeline_mode = #tpu.pipeline_mode<synchronous>, transform_indices = @transform_1, window_bounds = array<i64: 640, 128>}, {pipeline_mode = #tpu.pipeline_mode<synchronous>, transform_indices = @transform_2, window_bounds = array<i64: 1, 128>}, {transform_indices = @transform_3, window_bounds = array<i64: 1, 16, 128>}]} {
    %c0 = arith.constant 0 : index
    %c0_0 = arith.constant 0 : index
    %c0_1 = arith.constant 0 : index
    %0 = vector.load %arg1[%c0, %c0_0, %c0_1] : memref<1x20x128xbf16, #tpu.memory_space<vmem>>, vector<1x20x128xbf16>
    %1 = vector.shape_cast %0 : vector<1x20x128xbf16> to vector<20x128xbf16>
    %2 = arith.extf %1 : vector<20x128xbf16> to vector<20x128xf32>
    %3 = vector.extract_strided_slice %2 {offsets = [0, 0], sizes = [16, 128], strides = [1, 1]} : vector<20x128xf32> to vector<16x128xf32>
    %4 = vector.extract_strided_slice %2 {offsets = [1, 0], sizes = [16, 128], strides = [1, 1]} : vector<20x128xf32> to vector<16x128xf32>
    %5 = vector.extract_strided_slice %2 {offsets = [2, 0], sizes = [16, 128], strides = [1, 1]} : vector<20x128xf32> to vector<16x128xf32>
    %6 = vector.extract_strided_slice %2 {offsets = [3, 0], sizes = [16, 128], strides = [1, 1]} : vector<20x128xf32> to vector<16x128xf32>
    %7 = vector.extract_strided_slice %2 {offsets = [4, 0], sizes = [16, 128], strides = [1, 1]} : vector<20x128xf32> to vector<16x128xf32>
    %8 = tpu.concatenate %3, %4, %5, %6, %7 in 1 : vector<16x128xf32>, vector<16x128xf32>, vector<16x128xf32>, vector<16x128xf32>, vector<16x128xf32> -> vector<16x640xf32>
    %9 = arith.truncf %8 : vector<16x640xf32> to vector<16x640xbf16>
    %c0_2 = arith.constant 0 : index
    %c0_3 = arith.constant 0 : index
    %10 = vector.load %arg2[%c0_2, %c0_3] : memref<640x128xbf16, #tpu.memory_space<vmem>>, vector<640x128xbf16>
    %cst = arith.constant dense<0.000000e+00> : vector<16x128xf32>
    %11 = tpu.matmul %9, %10, %cst {dimension_numbers = #tpu.dot_dimension_numbers<[1], [0], [0], [1], [0, 0, 1, 1], [], []>} : vector<16x640xbf16>, vector<640x128xbf16>, vector<16x128xf32> -> vector<16x128xf32>
    %c0_4 = arith.constant 0 : index
    %c0_5 = arith.constant 0 : index
    %12 = vector.load %arg3[%c0_4, %c0_5] : memref<1x128xf32, #tpu.memory_space<vmem>>, vector<1x128xf32>
    %13 = vector.broadcast %12 : vector<1x128xf32> to vector<16x128xf32>
    %14 = arith.addf %11, %13 : vector<16x128xf32>
    %cst_6 = arith.constant 0.000000e+00 : f32
    %15 = vector.broadcast %cst_6 : f32 to vector<16x128xf32>
    %16 = arith.cmpf oge, %14, %15 : vector<16x128xf32>
    %cst_7 = arith.constant 2.000000e-01 : f32
    %17 = vector.broadcast %cst_7 : f32 to vector<16x128xf32>
    %18 = arith.mulf %17, %14 : vector<16x128xf32>
    %19 = arith.select %16, %14, %18 : vector<16x128xi1>, vector<16x128xf32>
    %20 = arith.truncf %19 : vector<16x128xf32> to vector<16x128xbf16>
    %c0_8 = arith.constant 0 : index
    %c0_9 = arith.constant 0 : index
    %c0_10 = arith.constant 0 : index
    %21 = vector.load %arg4[%c0_8, %c0_9, %c0_10] : memref<1x16x128xbf16, #tpu.memory_space<vmem>>, vector<1x16x128xbf16>
    %22 = vector.shape_cast %21 : vector<1x16x128xbf16> to vector<16x128xbf16>
    %23 = vector.shape_cast %20 : vector<16x128xbf16> to vector<1x16x128xbf16>
    tpu.vector_store %arg4[%c0_8, %c0_9, %c0_10], %23 {strides = array<i32>} : memref<1x16x128xbf16, #tpu.memory_space<vmem>>, vector<1x16x128xbf16>,
    return
  }
  func.func @transform_0(%arg0: i32) -> (i32, i32, i32) {
    %c0_i32 = arith.constant 0 : i32
    %c0_i32_0 = arith.constant 0 : i32
    %c0_i32_1 = arith.constant 0 : i32
    return %arg0, %c0_i32, %c0_i32_0 : i32, i32, i32
  }
  func.func @transform_1(%arg0: i32) -> (i32, i32) {
    %c0_i32 = arith.constant 0 : i32
    %c0_i32_0 = arith.constant 0 : i32
    %c0_i32_1 = arith.constant 0 : i32
    return %c0_i32, %c0_i32_0 : i32, i32
  }
  func.func @transform_2(%arg0: i32) -> (i32, i32) {
    %c0_i32 = arith.constant 0 : i32
    %c0_i32_0 = arith.constant 0 : i32
    %c0_i32_1 = arith.constant 0 : i32
    return %c0_i32, %c0_i32_0 : i32, i32
  }
  func.func @transform_3(%arg0: i32) -> (i32, i32, i32) {
    %c0_i32 = arith.constant 0 : i32
    %c0_i32_0 = arith.constant 0 : i32
    %c0_i32_1 = arith.constant 0 : i32
    return %arg0, %c0_i32, %c0_i32_0 : i32, i32, i32
  }
}

module attributes {stable_mosaic.version = 11 : i64} {
  func.func @_conv5_norm_res_kernel(%arg0: i32, %arg1: memref<1x20x128xbf16, #tpu.memory_space<vmem>>, %arg2: memref<1x16x128xbf16, #tpu.memory_space<vmem>>, %arg3: memref<640x128xbf16, #tpu.memory_space<vmem>>, %arg4: memref<1x128xf32, #tpu.memory_space<vmem>>, %arg5: memref<1x16x128xbf16, #tpu.memory_space<vmem>>) attributes {dimension_semantics = [#tpu.dimension_semantics<parallel>], iteration_bounds = array<i64: 2>, scalar_prefetch = 0 : i64, scratch_operands = 0 : i64, tpu.core_type = #tpu.core_type<tc>, window_params = [{transform_indices = @transform_0, window_bounds = array<i64: 1, 20, 128>}, {transform_indices = @transform_1, window_bounds = array<i64: 1, 16, 128>}, {pipeline_mode = #tpu.pipeline_mode<synchronous>, transform_indices = @transform_2, window_bounds = array<i64: 640, 128>}, {pipeline_mode = #tpu.pipeline_mode<synchronous>, transform_indices = @transform_3, window_bounds = array<i64: 1, 128>}, {transform_indices = @transform_4, window_bounds = array<i64: 1, 16, 128>}]} {
    %c0 = arith.constant 0 : index
    %c0_0 = arith.constant 0 : index
    %c0_1 = arith.constant 0 : index
    %0 = vector.load %arg1[%c0, %c0_0, %c0_1] : memref<1x20x128xbf16, #tpu.memory_space<vmem>>, vector<1x20x128xbf16>
    %1 = vector.shape_cast %0 : vector<1x20x128xbf16> to vector<20x128xbf16>
    %2 = arith.extf %1 : vector<20x128xbf16> to vector<20x128xf32>
    %3 = vector.extract_strided_slice %2 {offsets = [0, 0], sizes = [16, 128], strides = [1, 1]} : vector<20x128xf32> to vector<16x128xf32>
    %4 = vector.extract_strided_slice %2 {offsets = [1, 0], sizes = [16, 128], strides = [1, 1]} : vector<20x128xf32> to vector<16x128xf32>
    %5 = vector.extract_strided_slice %2 {offsets = [2, 0], sizes = [16, 128], strides = [1, 1]} : vector<20x128xf32> to vector<16x128xf32>
    %6 = vector.extract_strided_slice %2 {offsets = [3, 0], sizes = [16, 128], strides = [1, 1]} : vector<20x128xf32> to vector<16x128xf32>
    %7 = vector.extract_strided_slice %2 {offsets = [4, 0], sizes = [16, 128], strides = [1, 1]} : vector<20x128xf32> to vector<16x128xf32>
    %8 = tpu.concatenate %3, %4, %5, %6, %7 in 1 : vector<16x128xf32>, vector<16x128xf32>, vector<16x128xf32>, vector<16x128xf32>, vector<16x128xf32> -> vector<16x640xf32>
    %9 = arith.truncf %8 : vector<16x640xf32> to vector<16x640xbf16>
    %c0_2 = arith.constant 0 : index
    %c0_3 = arith.constant 0 : index
    %10 = vector.load %arg3[%c0_2, %c0_3] : memref<640x128xbf16, #tpu.memory_space<vmem>>, vector<640x128xbf16>
    %cst = arith.constant dense<0.000000e+00> : vector<16x128xf32>
    %11 = tpu.matmul %9, %10, %cst {dimension_numbers = #tpu.dot_dimension_numbers<[1], [0], [0], [1], [0, 0, 1, 1], [], []>} : vector<16x640xbf16>, vector<640x128xbf16>, vector<16x128xf32> -> vector<16x128xf32>
    %c0_4 = arith.constant 0 : index
    %c0_5 = arith.constant 0 : index
    %12 = vector.load %arg4[%c0_4, %c0_5] : memref<1x128xf32, #tpu.memory_space<vmem>>, vector<1x128xf32>
    %13 = vector.broadcast %12 : vector<1x128xf32> to vector<16x128xf32>
    %14 = arith.addf %11, %13 : vector<16x128xf32>
    %cst_6 = arith.constant 0.000000e+00 : f32
    %15 = vector.broadcast %cst_6 : f32 to vector<16x128xf32>
    %16 = arith.cmpf oge, %14, %15 : vector<16x128xf32>
    %cst_7 = arith.constant 2.000000e-01 : f32
    %17 = vector.broadcast %cst_7 : f32 to vector<16x128xf32>
    %18 = arith.mulf %17, %14 : vector<16x128xf32>
    %19 = arith.select %16, %14, %18 : vector<16x128xi1>, vector<16x128xf32>
    %cst_8 = arith.constant dense<0.000000e+00> : vector<128xf32>
    %20 = vector.multi_reduction <add>, %19, %cst_8 [0] : vector<16x128xf32> to vector<128xf32>
    %21 = vector.shape_cast %20 : vector<128xf32> to vector<1x128xf32>
    %cst_9 = arith.constant 1.600000e+01 : f32
    %22 = vector.broadcast %cst_9 : f32 to vector<1x128xf32>
    %23 = arith.divf %21, %22 : vector<1x128xf32>
    %24 = vector.broadcast %23 : vector<1x128xf32> to vector<16x128xf32>
    %25 = arith.subf %19, %24 : vector<16x128xf32>
    %26 = arith.mulf %25, %25 : vector<16x128xf32>
    %cst_10 = arith.constant dense<0.000000e+00> : vector<128xf32>
    %27 = vector.multi_reduction <add>, %26, %cst_10 [0] : vector<16x128xf32> to vector<128xf32>
    %28 = vector.shape_cast %27 : vector<128xf32> to vector<1x128xf32>
    %cst_11 = arith.constant 1.600000e+01 : f32
    %29 = vector.broadcast %cst_11 : f32 to vector<1x128xf32>
    %30 = arith.divf %28, %29 : vector<1x128xf32>
    %31 = vector.broadcast %23 : vector<1x128xf32> to vector<16x128xf32>
    %32 = arith.subf %19, %31 : vector<16x128xf32>
    %cst_12 = arith.constant 9.99999974E-6 : f32
    %33 = vector.broadcast %cst_12 : f32 to vector<1x128xf32>
    %34 = arith.addf %30, %33 : vector<1x128xf32>
    %35 = math.rsqrt %34 : vector<1x128xf32>
    %36 = vector.broadcast %35 : vector<1x128xf32> to vector<16x128xf32>
    %37 = arith.mulf %32, %36 : vector<16x128xf32>
    %c0_13 = arith.constant 0 : index
    %c0_14 = arith.constant 0 : index
    %c0_15 = arith.constant 0 : index
    %38 = vector.load %arg2[%c0_13, %c0_14, %c0_15] : memref<1x16x128xbf16, #tpu.memory_space<vmem>>, vector<1x16x128xbf16>
    %39 = vector.shape_cast %38 : vector<1x16x128xbf16> to vector<16x128xbf16>
    %40 = arith.extf %39 : vector<16x128xbf16> to vector<16x128xf32>
    %41 = arith.addf %37, %40 : vector<16x128xf32>
    %42 = arith.truncf %41 : vector<16x128xf32> to vector<16x128xbf16>
    %c0_16 = arith.constant 0 : index
    %c0_17 = arith.constant 0 : index
    %c0_18 = arith.constant 0 : index
    %43 = vector.load %arg5[%c0_16, %c0_17, %c0_18] : memref<1x16x128xbf16, #tpu.memory_space<vmem>>, vector<1x16x128xbf16>
    %44 = vector.shape_cast %43 : vector<1x16x128xbf16> to vector<16x128xbf16>
    %45 = vector.shape_cast %42 : vector<16x128xbf16> to vector<1x16x128xbf16>
    tpu.vector_store %arg5[%c0_16, %c0_17, %c0_18], %45 {strides = array<i32>} : memref<1x16x128xbf16, #tpu.memory_space<vmem>>, vector<1x16x128xbf16>,
    return
  }
  func.func @transform_0(%arg0: i32) -> (i32, i32, i32) {
    %c0_i32 = arith.constant 0 : i32
    %c0_i32_0 = arith.constant 0 : i32
    %c0_i32_1 = arith.constant 0 : i32
    return %arg0, %c0_i32, %c0_i32_0 : i32, i32, i32
  }
  func.func @transform_1(%arg0: i32) -> (i32, i32, i32) {
    %c0_i32 = arith.constant 0 : i32
    %c0_i32_0 = arith.constant 0 : i32
    %c0_i32_1 = arith.constant 0 : i32
    return %arg0, %c0_i32, %c0_i32_0 : i32, i32, i32
  }
  func.func @transform_2(%arg0: i32) -> (i32, i32) {
    %c0_i32 = arith.constant 0 : i32
    %c0_i32_0 = arith.constant 0 : i32
    %c0_i32_1 = arith.constant 0 : i32
    return %c0_i32, %c0_i32_0 : i32, i32
  }
  func.func @transform_3(%arg0: i32) -> (i32, i32) {
    %c0_i32 = arith.constant 0 : i32
    %c0_i32_0 = arith.constant 0 : i32
    %c0_i32_1 = arith.constant 0 : i32
    return %c0_i32, %c0_i32_0 : i32, i32
  }
  func.func @transform_4(%arg0: i32) -> (i32, i32, i32) {
    %c0_i32 = arith.constant 0 : i32
    %c0_i32_0 = arith.constant 0 : i32
    %c0_i32_1 = arith.constant 0 : i32
    return %arg0, %c0_i32, %c0_i32_0 : i32, i32, i32
  }
}

module attributes {stable_mosaic.version = 11 : i64} {
  func.func @_lstm_proj_kernel(%arg0: i32, %arg1: memref<1x16x128xbf16, #tpu.memory_space<vmem>>, %arg2: memref<128x1024xbf16, #tpu.memory_space<vmem>>, %arg3: memref<1x16x1024xbf16, #tpu.memory_space<vmem>>) attributes {dimension_semantics = [#tpu.dimension_semantics<parallel>], iteration_bounds = array<i64: 2>, scalar_prefetch = 0 : i64, scratch_operands = 0 : i64, tpu.core_type = #tpu.core_type<tc>, window_params = [{transform_indices = @transform_0, window_bounds = array<i64: 1, 16, 128>}, {pipeline_mode = #tpu.pipeline_mode<synchronous>, transform_indices = @transform_1, window_bounds = array<i64: 128, 1024>}, {transform_indices = @transform_2, window_bounds = array<i64: 1, 16, 1024>}]} {
    %c0 = arith.constant 0 : index
    %c0_0 = arith.constant 0 : index
    %c0_1 = arith.constant 0 : index
    %0 = vector.load %arg1[%c0, %c0_0, %c0_1] : memref<1x16x128xbf16, #tpu.memory_space<vmem>>, vector<1x16x128xbf16>
    %1 = vector.shape_cast %0 : vector<1x16x128xbf16> to vector<16x128xbf16>
    %c0_2 = arith.constant 0 : index
    %c0_3 = arith.constant 0 : index
    %2 = vector.load %arg2[%c0_2, %c0_3] : memref<128x1024xbf16, #tpu.memory_space<vmem>>, vector<128x1024xbf16>
    %cst = arith.constant dense<0.000000e+00> : vector<16x1024xf32>
    %3 = tpu.matmul %1, %2, %cst {dimension_numbers = #tpu.dot_dimension_numbers<[1], [0], [0], [1], [0, 0, 1, 1], [], []>} : vector<16x128xbf16>, vector<128x1024xbf16>, vector<16x1024xf32> -> vector<16x1024xf32>
    %4 = arith.truncf %3 : vector<16x1024xf32> to vector<16x1024xbf16>
    %c0_4 = arith.constant 0 : index
    %c0_5 = arith.constant 0 : index
    %c0_6 = arith.constant 0 : index
    %5 = vector.load %arg3[%c0_4, %c0_5, %c0_6] : memref<1x16x1024xbf16, #tpu.memory_space<vmem>>, vector<1x16x1024xbf16>
    %6 = vector.shape_cast %5 : vector<1x16x1024xbf16> to vector<16x1024xbf16>
    %7 = vector.shape_cast %4 : vector<16x1024xbf16> to vector<1x16x1024xbf16>
    tpu.vector_store %arg3[%c0_4, %c0_5, %c0_6], %7 {strides = array<i32>} : memref<1x16x1024xbf16, #tpu.memory_space<vmem>>, vector<1x16x1024xbf16>,
    return
  }
  func.func @transform_0(%arg0: i32) -> (i32, i32, i32) {
    %c0_i32 = arith.constant 0 : i32
    %c0_i32_0 = arith.constant 0 : i32
    %c0_i32_1 = arith.constant 0 : i32
    return %arg0, %c0_i32, %c0_i32_0 : i32, i32, i32
  }
  func.func @transform_1(%arg0: i32) -> (i32, i32) {
    %c0_i32 = arith.constant 0 : i32
    %c0_i32_0 = arith.constant 0 : i32
    %c0_i32_1 = arith.constant 0 : i32
    return %c0_i32, %c0_i32_0 : i32, i32
  }
  func.func @transform_2(%arg0: i32) -> (i32, i32, i32) {
    %c0_i32 = arith.constant 0 : i32
    %c0_i32_0 = arith.constant 0 : i32
    %c0_i32_1 = arith.constant 0 : i32
    return %arg0, %c0_i32, %c0_i32_0 : i32, i32, i32
  }
}

module attributes {stable_mosaic.version = 11 : i64} {
  func.func @_dense_block_kernel(%arg0: i32, %arg1: memref<1x16x128xbf16, #tpu.memory_space<vmem>>, %arg2: memref<128x128xbf16, #tpu.memory_space<vmem>>, %arg3: memref<1x128xf32, #tpu.memory_space<vmem>>, %arg4: memref<128x128xbf16, #tpu.memory_space<vmem>>, %arg5: memref<1x128xf32, #tpu.memory_space<vmem>>, %arg6: memref<1x16x128xbf16, #tpu.memory_space<vmem>>) attributes {dimension_semantics = [#tpu.dimension_semantics<parallel>], iteration_bounds = array<i64: 2>, scalar_prefetch = 0 : i64, scratch_operands = 0 : i64, tpu.core_type = #tpu.core_type<tc>, window_params = [{transform_indices = @transform_0, window_bounds = array<i64: 1, 16, 128>}, {pipeline_mode = #tpu.pipeline_mode<synchronous>, transform_indices = @transform_1, window_bounds = array<i64: 128, 128>}, {pipeline_mode = #tpu.pipeline_mode<synchronous>, transform_indices = @transform_2, window_bounds = array<i64: 1, 128>}, {pipeline_mode = #tpu.pipeline_mode<synchronous>, transform_indices = @transform_3, window_bounds = array<i64: 128, 128>}, {pipeline_mode = #tpu.pipeline_mode<synchronous>, transform_indices = @transform_4, window_bounds = array<i64: 1, 128>}, {transform_indices = @transform_5, window_bounds = array<i64: 1, 16, 128>}]} {
    %c0 = arith.constant 0 : index
    %c0_0 = arith.constant 0 : index
    %c0_1 = arith.constant 0 : index
    %0 = vector.load %arg1[%c0, %c0_0, %c0_1] : memref<1x16x128xbf16, #tpu.memory_space<vmem>>, vector<1x16x128xbf16>
    %1 = vector.shape_cast %0 : vector<1x16x128xbf16> to vector<16x128xbf16>
    %c0_2 = arith.constant 0 : index
    %c0_3 = arith.constant 0 : index
    %2 = vector.load %arg2[%c0_2, %c0_3] : memref<128x128xbf16, #tpu.memory_space<vmem>>, vector<128x128xbf16>
    %cst = arith.constant dense<0.000000e+00> : vector<16x128xf32>
    %3 = tpu.matmul %1, %2, %cst {dimension_numbers = #tpu.dot_dimension_numbers<[1], [0], [0], [1], [0, 0, 1, 1], [], []>} : vector<16x128xbf16>, vector<128x128xbf16>, vector<16x128xf32> -> vector<16x128xf32>
    %c0_4 = arith.constant 0 : index
    %c0_5 = arith.constant 0 : index
    %4 = vector.load %arg3[%c0_4, %c0_5] : memref<1x128xf32, #tpu.memory_space<vmem>>, vector<1x128xf32>
    %5 = vector.broadcast %4 : vector<1x128xf32> to vector<16x128xf32>
    %6 = arith.addf %3, %5 : vector<16x128xf32>
    %cst_6 = arith.constant 0.000000e+00 : f32
    %7 = vector.broadcast %cst_6 : f32 to vector<16x128xf32>
    %8 = arith.cmpf oge, %6, %7 : vector<16x128xf32>
    %cst_7 = arith.constant 2.000000e-01 : f32
    %9 = vector.broadcast %cst_7 : f32 to vector<16x128xf32>
    %10 = arith.mulf %9, %6 : vector<16x128xf32>
    %11 = arith.select %8, %6, %10 : vector<16x128xi1>, vector<16x128xf32>
    %12 = arith.truncf %11 : vector<16x128xf32> to vector<16x128xbf16>
    %c0_8 = arith.constant 0 : index
    %c0_9 = arith.constant 0 : index
    %13 = vector.load %arg4[%c0_8, %c0_9] : memref<128x128xbf16, #tpu.memory_space<vmem>>, vector<128x128xbf16>
    %cst_10 = arith.constant dense<0.000000e+00> : vector<16x128xf32>
    %14 = tpu.matmul %12, %13, %cst_10 {dimension_numbers = #tpu.dot_dimension_numbers<[1], [0], [0], [1], [0, 0, 1, 1], [], []>} : vector<16x128xbf16>, vector<128x128xbf16>, vector<16x128xf32> -> vector<16x128xf32>
    %c0_11 = arith.constant 0 : index
    %c0_12 = arith.constant 0 : index
    %15 = vector.load %arg5[%c0_11, %c0_12] : memref<1x128xf32, #tpu.memory_space<vmem>>, vector<1x128xf32>
    %16 = vector.broadcast %15 : vector<1x128xf32> to vector<16x128xf32>
    %17 = arith.addf %14, %16 : vector<16x128xf32>
    %cst_13 = arith.constant 0.000000e+00 : f32
    %18 = vector.broadcast %cst_13 : f32 to vector<16x128xf32>
    %19 = arith.cmpf oge, %17, %18 : vector<16x128xf32>
    %cst_14 = arith.constant 2.000000e-01 : f32
    %20 = vector.broadcast %cst_14 : f32 to vector<16x128xf32>
    %21 = arith.mulf %20, %17 : vector<16x128xf32>
    %22 = arith.select %19, %17, %21 : vector<16x128xi1>, vector<16x128xf32>
    %cst_15 = arith.constant dense<0.000000e+00> : vector<128xf32>
    %23 = vector.multi_reduction <add>, %22, %cst_15 [0] : vector<16x128xf32> to vector<128xf32>
    %24 = vector.shape_cast %23 : vector<128xf32> to vector<1x128xf32>
    %cst_16 = arith.constant 1.600000e+01 : f32
    %25 = vector.broadcast %cst_16 : f32 to vector<1x128xf32>
    %26 = arith.divf %24, %25 : vector<1x128xf32>
    %27 = vector.broadcast %26 : vector<1x128xf32> to vector<16x128xf32>
    %28 = arith.subf %22, %27 : vector<16x128xf32>
    %29 = arith.mulf %28, %28 : vector<16x128xf32>
    %cst_17 = arith.constant dense<0.000000e+00> : vector<128xf32>
    %30 = vector.multi_reduction <add>, %29, %cst_17 [0] : vector<16x128xf32> to vector<128xf32>
    %31 = vector.shape_cast %30 : vector<128xf32> to vector<1x128xf32>
    %cst_18 = arith.constant 1.600000e+01 : f32
    %32 = vector.broadcast %cst_18 : f32 to vector<1x128xf32>
    %33 = arith.divf %31, %32 : vector<1x128xf32>
    %34 = vector.broadcast %26 : vector<1x128xf32> to vector<16x128xf32>
    %35 = arith.subf %22, %34 : vector<16x128xf32>
    %cst_19 = arith.constant 9.99999974E-6 : f32
    %36 = vector.broadcast %cst_19 : f32 to vector<1x128xf32>
    %37 = arith.addf %33, %36 : vector<1x128xf32>
    %38 = math.rsqrt %37 : vector<1x128xf32>
    %39 = vector.broadcast %38 : vector<1x128xf32> to vector<16x128xf32>
    %40 = arith.mulf %35, %39 : vector<16x128xf32>
    %41 = arith.extf %1 : vector<16x128xbf16> to vector<16x128xf32>
    %42 = arith.addf %40, %41 : vector<16x128xf32>
    %43 = arith.truncf %42 : vector<16x128xf32> to vector<16x128xbf16>
    %c0_20 = arith.constant 0 : index
    %c0_21 = arith.constant 0 : index
    %c0_22 = arith.constant 0 : index
    %44 = vector.load %arg6[%c0_20, %c0_21, %c0_22] : memref<1x16x128xbf16, #tpu.memory_space<vmem>>, vector<1x16x128xbf16>
    %45 = vector.shape_cast %44 : vector<1x16x128xbf16> to vector<16x128xbf16>
    %46 = vector.shape_cast %43 : vector<16x128xbf16> to vector<1x16x128xbf16>
    tpu.vector_store %arg6[%c0_20, %c0_21, %c0_22], %46 {strides = array<i32>} : memref<1x16x128xbf16, #tpu.memory_space<vmem>>, vector<1x16x128xbf16>,
    return
  }
  func.func @transform_0(%arg0: i32) -> (i32, i32, i32) {
    %c0_i32 = arith.constant 0 : i32
    %c0_i32_0 = arith.constant 0 : i32
    %c0_i32_1 = arith.constant 0 : i32
    return %arg0, %c0_i32, %c0_i32_0 : i32, i32, i32
  }
  func.func @transform_1(%arg0: i32) -> (i32, i32) {
    %c0_i32 = arith.constant 0 : i32
    %c0_i32_0 = arith.constant 0 : i32
    %c0_i32_1 = arith.constant 0 : i32
    return %c0_i32, %c0_i32_0 : i32, i32
  }
  func.func @transform_2(%arg0: i32) -> (i32, i32) {
    %c0_i32 = arith.constant 0 : i32
    %c0_i32_0 = arith.constant 0 : i32
    %c0_i32_1 = arith.constant 0 : i32
    return %c0_i32, %c0_i32_0 : i32, i32
  }
  func.func @transform_3(%arg0: i32) -> (i32, i32) {
    %c0_i32 = arith.constant 0 : i32
    %c0_i32_0 = arith.constant 0 : i32
    %c0_i32_1 = arith.constant 0 : i32
    return %c0_i32, %c0_i32_0 : i32, i32
  }
  func.func @transform_4(%arg0: i32) -> (i32, i32) {
    %c0_i32 = arith.constant 0 : i32
    %c0_i32_0 = arith.constant 0 : i32
    %c0_i32_1 = arith.constant 0 : i32
    return %c0_i32, %c0_i32_0 : i32, i32
  }
  func.func @transform_5(%arg0: i32) -> (i32, i32, i32) {
    %c0_i32 = arith.constant 0 : i32
    %c0_i32_0 = arith.constant 0 : i32
    %c0_i32_1 = arith.constant 0 : i32
    return %arg0, %c0_i32, %c0_i32_0 : i32, i32, i32
  }
}

module attributes {stable_mosaic.version = 11 : i64} {
  func.func @_lstm_kernel(%arg0: i32, %arg1: i32, %arg2: memref<1x16x512xbf16, #tpu.memory_space<vmem>>, %arg3: memref<1x128x512xbf16, #tpu.memory_space<vmem>>, %arg4: memref<1x1x512xf32, #tpu.memory_space<vmem>>, %arg5: memref<1x1x16x128xbf16, #tpu.memory_space<vmem>>, %arg6: memref<2x16x128xf32, #tpu.memory_space<vmem>>, %arg7: memref<2x16x128xf32, #tpu.memory_space<vmem>>) attributes {dimension_semantics = [#tpu.dimension_semantics<parallel>, #tpu.dimension_semantics<arbitrary>], iteration_bounds = array<i64: 2, 2>, scalar_prefetch = 0 : i64, scratch_operands = 2 : i64, tpu.core_type = #tpu.core_type<tc>, window_params = [{transform_indices = @transform_0, window_bounds = array<i64: 1, 16, 512>}, {transform_indices = @transform_1, window_bounds = array<i64: 1, 128, 512>}, {transform_indices = @transform_2, window_bounds = array<i64: 1, 1, 512>}, {transform_indices = @transform_3, window_bounds = array<i64: 1, 1, 16, 128>}]} {
    %c0_i32 = arith.constant 0 : i32
    %0 = arith.cmpi eq, %arg1, %c0_i32 : i32
    %1 = arith.extui %0 : i1 to i32
    %c0_i32_0 = arith.constant 0 : i32
    %2 = arith.cmpi ne, %1, %c0_i32_0 : i32
    scf.if %2 {
      %cst_24 = arith.constant 0.000000e+00 : f32
      %58 = vector.broadcast %cst_24 : f32 to vector<16x128xf32>
      %59 = arith.index_cast %arg0 : i32 to index
      %c0_25 = arith.constant 0 : index
      %c0_26 = arith.constant 0 : index
      %60 = vector.load %arg6[%59, %c0_25, %c0_26] : memref<2x16x128xf32, #tpu.memory_space<vmem>>, vector<1x16x128xf32>
      %61 = vector.shape_cast %60 : vector<1x16x128xf32> to vector<16x128xf32>
      %62 = vector.shape_cast %58 : vector<16x128xf32> to vector<1x16x128xf32>
      tpu.vector_store %arg6[%59, %c0_25, %c0_26], %62 {strides = array<i32>} : memref<2x16x128xf32, #tpu.memory_space<vmem>>, vector<1x16x128xf32>,
      %cst_27 = arith.constant 0.000000e+00 : f32
      %63 = vector.broadcast %cst_27 : f32 to vector<16x128xf32>
      %64 = arith.index_cast %arg0 : i32 to index
      %c0_28 = arith.constant 0 : index
      %c0_29 = arith.constant 0 : index
      %65 = vector.load %arg7[%64, %c0_28, %c0_29] : memref<2x16x128xf32, #tpu.memory_space<vmem>>, vector<1x16x128xf32>
      %66 = vector.shape_cast %65 : vector<1x16x128xf32> to vector<16x128xf32>
      %67 = vector.shape_cast %63 : vector<16x128xf32> to vector<1x16x128xf32>
      tpu.vector_store %arg7[%64, %c0_28, %c0_29], %67 {strides = array<i32>} : memref<2x16x128xf32, #tpu.memory_space<vmem>>, vector<1x16x128xf32>,
    } else {
    }
    %3 = arith.index_cast %arg0 : i32 to index
    %c0 = arith.constant 0 : index
    %c0_1 = arith.constant 0 : index
    %4 = vector.load %arg6[%3, %c0, %c0_1] : memref<2x16x128xf32, #tpu.memory_space<vmem>>, vector<1x16x128xf32>
    %5 = vector.shape_cast %4 : vector<1x16x128xf32> to vector<16x128xf32>
    %6 = arith.index_cast %arg0 : i32 to index
    %c0_2 = arith.constant 0 : index
    %c0_3 = arith.constant 0 : index
    %7 = vector.load %arg7[%6, %c0_2, %c0_3] : memref<2x16x128xf32, #tpu.memory_space<vmem>>, vector<1x16x128xf32>
    %8 = vector.shape_cast %7 : vector<1x16x128xf32> to vector<16x128xf32>
    %c0_4 = arith.constant 0 : index
    %c0_5 = arith.constant 0 : index
    %c0_6 = arith.constant 0 : index
    %9 = vector.load %arg2[%c0_4, %c0_5, %c0_6] : memref<1x16x512xbf16, #tpu.memory_space<vmem>>, vector<1x16x512xbf16>
    %10 = vector.shape_cast %9 : vector<1x16x512xbf16> to vector<16x512xbf16>
    %11 = arith.extf %10 : vector<16x512xbf16> to vector<16x512xf32>
    %c0_7 = arith.constant 0 : index
    %c0_8 = arith.constant 0 : index
    %c0_9 = arith.constant 0 : index
    %12 = vector.load %arg4[%c0_7, %c0_8, %c0_9] : memref<1x1x512xf32, #tpu.memory_space<vmem>>, vector<1x1x512xf32>
    %13 = vector.shape_cast %12 : vector<1x1x512xf32> to vector<1x512xf32>
    %14 = vector.broadcast %13 : vector<1x512xf32> to vector<16x512xf32>
    %15 = arith.addf %11, %14 : vector<16x512xf32>
    %16 = arith.truncf %5 : vector<16x128xf32> to vector<16x128xbf16>
    %c0_10 = arith.constant 0 : index
    %c0_11 = arith.constant 0 : index
    %c0_12 = arith.constant 0 : index
    %17 = vector.load %arg3[%c0_10, %c0_11, %c0_12] : memref<1x128x512xbf16, #tpu.memory_space<vmem>>, vector<1x128x512xbf16>
    %18 = vector.shape_cast %17 : vector<1x128x512xbf16> to vector<128x512xbf16>
    %cst = arith.constant dense<0.000000e+00> : vector<16x512xf32>
    %19 = tpu.matmul %16, %18, %cst {dimension_numbers = #tpu.dot_dimension_numbers<[1], [0], [0], [1], [0, 0, 1, 1], [], []>} : vector<16x128xbf16>, vector<128x512xbf16>, vector<16x512xf32> -> vector<16x512xf32>
    %20 = arith.addf %15, %19 : vector<16x512xf32>
    %21 = vector.extract_strided_slice %20 {offsets = [0, 0], sizes = [16, 128], strides = [1, 1]} : vector<16x512xf32> to vector<16x128xf32>
    %22 = arith.negf %21 : vector<16x128xf32>
    %23 = math.exp %22 : vector<16x128xf32>
    %cst_13 = arith.constant 1.000000e+00 : f32
    %24 = vector.broadcast %cst_13 : f32 to vector<16x128xf32>
    %25 = arith.addf %24, %23 : vector<16x128xf32>
    %26 = arith.divf %24, %25 : vector<16x128xf32>
    %27 = vector.extract_strided_slice %20 {offsets = [0, 128], sizes = [16, 128], strides = [1, 1]} : vector<16x512xf32> to vector<16x128xf32>
    %28 = arith.negf %27 : vector<16x128xf32>
    %29 = math.exp %28 : vector<16x128xf32>
    %cst_14 = arith.constant 1.000000e+00 : f32
    %30 = vector.broadcast %cst_14 : f32 to vector<16x128xf32>
    %31 = arith.addf %30, %29 : vector<16x128xf32>
    %32 = arith.divf %30, %31 : vector<16x128xf32>
    %33 = vector.extract_strided_slice %20 {offsets = [0, 256], sizes = [16, 128], strides = [1, 1]} : vector<16x512xf32> to vector<16x128xf32>
    %34 = math.tanh %33 : vector<16x128xf32>
    %35 = vector.extract_strided_slice %20 {offsets = [0, 384], sizes = [16, 128], strides = [1, 1]} : vector<16x512xf32> to vector<16x128xf32>
    %36 = arith.negf %35 : vector<16x128xf32>
    %37 = math.exp %36 : vector<16x128xf32>
    %cst_15 = arith.constant 1.000000e+00 : f32
    %38 = vector.broadcast %cst_15 : f32 to vector<16x128xf32>
    %39 = arith.addf %38, %37 : vector<16x128xf32>
    %40 = arith.divf %38, %39 : vector<16x128xf32>
    %41 = arith.mulf %32, %8 : vector<16x128xf32>
    %42 = arith.mulf %26, %34 : vector<16x128xf32>
    %43 = arith.addf %41, %42 : vector<16x128xf32>
    %44 = math.tanh %43 : vector<16x128xf32>
    %45 = arith.mulf %40, %44 : vector<16x128xf32>
    %46 = arith.index_cast %arg0 : i32 to index
    %c0_16 = arith.constant 0 : index
    %c0_17 = arith.constant 0 : index
    %47 = vector.load %arg6[%46, %c0_16, %c0_17] : memref<2x16x128xf32, #tpu.memory_space<vmem>>, vector<1x16x128xf32>
    %48 = vector.shape_cast %47 : vector<1x16x128xf32> to vector<16x128xf32>
    %49 = vector.shape_cast %45 : vector<16x128xf32> to vector<1x16x128xf32>
    tpu.vector_store %arg6[%46, %c0_16, %c0_17], %49 {strides = array<i32>} : memref<2x16x128xf32, #tpu.memory_space<vmem>>, vector<1x16x128xf32>,
    %50 = arith.index_cast %arg0 : i32 to index
    %c0_18 = arith.constant 0 : index
    %c0_19 = arith.constant 0 : index
    %51 = vector.load %arg7[%50, %c0_18, %c0_19] : memref<2x16x128xf32, #tpu.memory_space<vmem>>, vector<1x16x128xf32>
    %52 = vector.shape_cast %51 : vector<1x16x128xf32> to vector<16x128xf32>
    %53 = vector.shape_cast %43 : vector<16x128xf32> to vector<1x16x128xf32>
    tpu.vector_store %arg7[%50, %c0_18, %c0_19], %53 {strides = array<i32>} : memref<2x16x128xf32, #tpu.memory_space<vmem>>, vector<1x16x128xf32>,
    %54 = arith.truncf %45 : vector<16x128xf32> to vector<16x128xbf16>
    %c0_20 = arith.constant 0 : index
    %c0_21 = arith.constant 0 : index
    %c0_22 = arith.constant 0 : index
    %c0_23 = arith.constant 0 : index
    %55 = vector.load %arg5[%c0_20, %c0_21, %c0_22, %c0_23] : memref<1x1x16x128xbf16, #tpu.memory_space<vmem>>, vector<1x1x16x128xbf16>
    %56 = vector.shape_cast %55 : vector<1x1x16x128xbf16> to vector<16x128xbf16>
    %57 = vector.shape_cast %54 : vector<16x128xbf16> to vector<1x1x16x128xbf16>
    tpu.vector_store %arg5[%c0_20, %c0_21, %c0_22, %c0_23], %57 {strides = array<i32>} : memref<1x1x16x128xbf16, #tpu.memory_space<vmem>>, vector<1x1x16x128xbf16>,
    return
  }
  func.func @transform_0(%arg0: i32, %arg1: i32) -> (i32, i32, i32) {
    %c2_i32 = arith.constant 2 : i32
    %0 = arith.muli %c2_i32, %arg0 : i32
    %c1_i32 = arith.constant 1 : i32
    %1 = arith.subi %c1_i32, %0 : i32
    %2 = arith.muli %arg1, %1 : i32
    %c1_i32_0 = arith.constant 1 : i32
    %3 = arith.muli %arg0, %c1_i32_0 : i32
    %4 = arith.addi %2, %3 : i32
    %c0_i32 = arith.constant 0 : i32
    %c0_i32_1 = arith.constant 0 : i32
    return %4, %c0_i32, %arg0 : i32, i32, i32
  }
  func.func @transform_1(%arg0: i32, %arg1: i32) -> (i32, i32, i32) {
    %c0_i32 = arith.constant 0 : i32
    %c0_i32_0 = arith.constant 0 : i32
    %c0_i32_1 = arith.constant 0 : i32
    return %arg0, %c0_i32, %c0_i32_0 : i32, i32, i32
  }
  func.func @transform_2(%arg0: i32, %arg1: i32) -> (i32, i32, i32) {
    %c0_i32 = arith.constant 0 : i32
    %c0_i32_0 = arith.constant 0 : i32
    %c0_i32_1 = arith.constant 0 : i32
    return %arg0, %c0_i32, %c0_i32_0 : i32, i32, i32
  }
  func.func @transform_3(%arg0: i32, %arg1: i32) -> (i32, i32, i32, i32) {
    %c2_i32 = arith.constant 2 : i32
    %0 = arith.muli %c2_i32, %arg0 : i32
    %c1_i32 = arith.constant 1 : i32
    %1 = arith.subi %c1_i32, %0 : i32
    %2 = arith.muli %arg1, %1 : i32
    %c1_i32_0 = arith.constant 1 : i32
    %3 = arith.muli %arg0, %c1_i32_0 : i32
    %4 = arith.addi %2, %3 : i32
    %c0_i32 = arith.constant 0 : i32
    %c0_i32_1 = arith.constant 0 : i32
    %c0_i32_2 = arith.constant 0 : i32
    return %arg0, %4, %c0_i32, %c0_i32_1 : i32, i32, i32, i32
  }
}

module attributes {stable_mosaic.version = 11 : i64} {
  func.func @_final_kernel(%arg0: i32, %arg1: memref<1x16x128xbf16, #tpu.memory_space<vmem>>, %arg2: memref<2x1x16x128xbf16, #tpu.memory_space<vmem>>, %arg3: memref<384x128xbf16, #tpu.memory_space<vmem>>, %arg4: memref<1x128xf32, #tpu.memory_space<vmem>>, %arg5: memref<1x16x128xf32, #tpu.memory_space<vmem>>) attributes {dimension_semantics = [#tpu.dimension_semantics<parallel>], iteration_bounds = array<i64: 2>, scalar_prefetch = 0 : i64, scratch_operands = 0 : i64, tpu.core_type = #tpu.core_type<tc>, window_params = [{transform_indices = @transform_0, window_bounds = array<i64: 1, 16, 128>}, {transform_indices = @transform_1, window_bounds = array<i64: 2, 1, 16, 128>}, {pipeline_mode = #tpu.pipeline_mode<synchronous>, transform_indices = @transform_2, window_bounds = array<i64: 384, 128>}, {pipeline_mode = #tpu.pipeline_mode<synchronous>, transform_indices = @transform_3, window_bounds = array<i64: 1, 128>}, {transform_indices = @transform_4, window_bounds = array<i64: 1, 16, 128>}]} {
    %c0 = arith.constant 0 : index
    %c0_0 = arith.constant 0 : index
    %c0_1 = arith.constant 0 : index
    %0 = vector.load %arg1[%c0, %c0_0, %c0_1] : memref<1x16x128xbf16, #tpu.memory_space<vmem>>, vector<1x16x128xbf16>
    %1 = vector.shape_cast %0 : vector<1x16x128xbf16> to vector<16x128xbf16>
    %c0_2 = arith.constant 0 : index
    %c0_3 = arith.constant 0 : index
    %c0_4 = arith.constant 0 : index
    %c0_5 = arith.constant 0 : index
    %2 = vector.load %arg2[%c0_2, %c0_3, %c0_4, %c0_5] : memref<2x1x16x128xbf16, #tpu.memory_space<vmem>>, vector<1x1x16x128xbf16>
    %3 = vector.shape_cast %2 : vector<1x1x16x128xbf16> to vector<16x128xbf16>
    %c1 = arith.constant 1 : index
    %c0_6 = arith.constant 0 : index
    %c0_7 = arith.constant 0 : index
    %c0_8 = arith.constant 0 : index
    %4 = vector.load %arg2[%c1, %c0_6, %c0_7, %c0_8] : memref<2x1x16x128xbf16, #tpu.memory_space<vmem>>, vector<1x1x16x128xbf16>
    %5 = vector.shape_cast %4 : vector<1x1x16x128xbf16> to vector<16x128xbf16>
    %6 = tpu.concatenate %1, %3, %5 in 1 : vector<16x128xbf16>, vector<16x128xbf16>, vector<16x128xbf16> -> vector<16x384xbf16>
    %c0_9 = arith.constant 0 : index
    %c0_10 = arith.constant 0 : index
    %7 = vector.load %arg3[%c0_9, %c0_10] : memref<384x128xbf16, #tpu.memory_space<vmem>>, vector<384x128xbf16>
    %cst = arith.constant dense<0.000000e+00> : vector<16x128xf32>
    %8 = tpu.matmul %6, %7, %cst {dimension_numbers = #tpu.dot_dimension_numbers<[1], [0], [0], [1], [0, 0, 1, 1], [], []>} : vector<16x384xbf16>, vector<384x128xbf16>, vector<16x128xf32> -> vector<16x128xf32>
    %c0_11 = arith.constant 0 : index
    %c0_12 = arith.constant 0 : index
    %9 = vector.load %arg4[%c0_11, %c0_12] : memref<1x128xf32, #tpu.memory_space<vmem>>, vector<1x128xf32>
    %10 = vector.broadcast %9 : vector<1x128xf32> to vector<16x128xf32>
    %11 = arith.addf %8, %10 : vector<16x128xf32>
    %cst_13 = arith.constant 0.000000e+00 : f32
    %12 = vector.broadcast %cst_13 : f32 to vector<16x128xf32>
    %13 = arith.cmpf oge, %11, %12 : vector<16x128xf32>
    %cst_14 = arith.constant 2.000000e-01 : f32
    %14 = vector.broadcast %cst_14 : f32 to vector<16x128xf32>
    %15 = arith.mulf %14, %11 : vector<16x128xf32>
    %16 = arith.select %13, %11, %15 : vector<16x128xi1>, vector<16x128xf32>
    %c0_15 = arith.constant 0 : index
    %c0_16 = arith.constant 0 : index
    %c0_17 = arith.constant 0 : index
    %17 = vector.load %arg5[%c0_15, %c0_16, %c0_17] : memref<1x16x128xf32, #tpu.memory_space<vmem>>, vector<1x16x128xf32>
    %18 = vector.shape_cast %17 : vector<1x16x128xf32> to vector<16x128xf32>
    %19 = vector.shape_cast %16 : vector<16x128xf32> to vector<1x16x128xf32>
    tpu.vector_store %arg5[%c0_15, %c0_16, %c0_17], %19 {strides = array<i32>} : memref<1x16x128xf32, #tpu.memory_space<vmem>>, vector<1x16x128xf32>,
    return
  }
  func.func @transform_0(%arg0: i32) -> (i32, i32, i32) {
    %c0_i32 = arith.constant 0 : i32
    %c0_i32_0 = arith.constant 0 : i32
    %c0_i32_1 = arith.constant 0 : i32
    return %arg0, %c0_i32, %c0_i32_0 : i32, i32, i32
  }
  func.func @transform_1(%arg0: i32) -> (i32, i32, i32, i32) {
    %c0_i32 = arith.constant 0 : i32
    %c0_i32_0 = arith.constant 0 : i32
    %c0_i32_1 = arith.constant 0 : i32
    %c0_i32_2 = arith.constant 0 : i32
    return %c0_i32, %arg0, %c0_i32_0, %c0_i32_1 : i32, i32, i32, i32
  }
  func.func @transform_2(%arg0: i32) -> (i32, i32) {
    %c0_i32 = arith.constant 0 : i32
    %c0_i32_0 = arith.constant 0 : i32
    %c0_i32_1 = arith.constant 0 : i32
    return %c0_i32, %c0_i32_0 : i32, i32
  }
  func.func @transform_3(%arg0: i32) -> (i32, i32) {
    %c0_i32 = arith.constant 0 : i32
    %c0_i32_0 = arith.constant 0 : i32
    %c0_i32_1 = arith.constant 0 : i32
    return %c0_i32, %c0_i32_0 : i32, i32
  }
  func.func @transform_4(%arg0: i32) -> (i32, i32, i32) {
    %c0_i32 = arith.constant 0 : i32
    %c0_i32_0 = arith.constant 0 : i32
    %c0_i32_1 = arith.constant 0 : i32
    return %arg0, %c0_i32, %c0_i32_0 : i32, i32, i32
  }
}

</mosaic_0001>

<bundles_post_ra>
// kernel: encoder_forward.13
= control target key start
LH: loop header
LB: loop body
LE: loop exit
PB: predicated region body
PF: predicated region fallthrough
CT: control target
= control target key end

     0   :  { %s509_s12 = smov 0   ;;  %s581_s0 = inlined_call_operand.vmem [shape: bf16[2,16,128], index: 0, kind: input, shape index: {}]   ;;  %s582_s1 = inlined_call_operand.vmem [shape: bf16[128,256], index: 1, kind: input, shape index: {}]   ;;  %s583_s2 = inlined_call_operand.vmem [shape: f32[1,256], index: 2, kind: input, shape index: {}]   ;;  %s584_s3 = inlined_call_operand.vmem [shape: bf16[2,16,256], index: 3, kind: output, shape index: {}]  }
   0x1 LB: > { %s412_s13 = sadd.s32 4294967295, %s486_s12   ;;  %p416_p0 = scmp.ge.s32.totalorder %s486_s12, 1  ;;  %s486_s12 = sphi %s509_s12, %s13_s12  }
   0x2   : > { %p137_p1 = scmp.lt.s32.totalorder %s486_s12, 3 }
   0x4   : > { %p138_p2 = pnand %p416_p0, %p137_p1 }
   0x5   : > { %v455_v0 = vld [vmem:[%s582_s1 + $0x4] ss:$8 sps:$4 sm:$0xff] (!%p138_p2)   ;;  %p161_p3 = scmp.lt.s32.totalorder (!%p138_p2), %s412_s13, 1  ;;  %v457_v1 = vld [vmem:[%s582_s1] ss:$8 sps:$4 sm:$0xff] (!%p138_p2)   ;;  %v488_v2 = vmov (!%p138_p2), 0   ;;  %v192_v18 = vlaneseq (!%p138_p2) }
   0x6   : > { %141 = sbr.rel (%p138_p2) target bundleno = 261 (0x105), region = 32  ;;  %320 = vmatprep.mubr.bf16.mxu0 (!%p138_p2), %v488_v2  ;;  %288 = vmatprep.subr.bf16.mxu0 (!%p138_p2), %v455_v0  ;;  %v458_v3 = vld [vmem:[%s582_s1 + $0x14] ss:$8 sps:$4 sm:$0xff] (!%p138_p2)   ;;  %v460_v4 = vld [vmem:[%s582_s1 + $0x10] ss:$8 sps:$4 sm:$0xff] (!%p138_p2)  }
   0x7   : > { %289 = vmatpush1.bf16.msra.mxu0 (!%p138_p2), %v457_v1  ;;  %v461_v5 = vld [vmem:[%s582_s1 + $0x24] ss:$8 sps:$4 sm:$0xff] (!%p138_p2)   ;;  %v463_v6 = vld [vmem:[%s582_s1 + $0x20] ss:$8 sps:$4 sm:$0xff] (!%p138_p2)   ;;  %v464_v7 = vld [vmem:[%s582_s1 + $0x34] ss:$8 sps:$4 sm:$0xff] (!%p138_p2)  }
   0x8   : > { %290 = vmatprep.subr.bf16.mxu0 (!%p138_p2), %v458_v3  ;;  %v466_v8 = vld [vmem:[%s582_s1 + $0x30] ss:$8 sps:$4 sm:$0xff] (!%p138_p2)   ;;  %v467_v9 = vld [vmem:[%s582_s1 + $0x44] ss:$8 sps:$4 sm:$0xff] (!%p138_p2)   ;;  %v469_v10 = vld [vmem:[%s582_s1 + $0x40] ss:$8 sps:$4 sm:$0xff] (!%p138_p2)  }
   0x9   : > { %v470_v11 = vld [vmem:[%s582_s1 + $0x54] ss:$8 sps:$4 sm:$0xff] (!%p138_p2)   ;;  %v472_v12 = vld [vmem:[%s582_s1 + $0x50] ss:$8 sps:$4 sm:$0xff] (!%p138_p2)   ;;  %v473_v13 = vld [vmem:[%s582_s1 + $0x64] ss:$8 sps:$4 sm:$0xff] (!%p138_p2)  }
   0xa   : > { %v475_v14 = vld [vmem:[%s582_s1 + $0x60] ss:$8 sps:$4 sm:$0xff] (!%p138_p2)   ;;  %v476_v15 = vld [vmem:[%s582_s1 + $0x74] ss:$8 sps:$4 sm:$0xff] (!%p138_p2)   ;;  %v478_v16 = vld [vmem:[%s582_s1 + $0x70] ss:$8 sps:$4 sm:$0xff] (!%p138_p2)  }
   0xb   : > { %291 = vmatpush1.bf16.msra.mxu0 (!%p138_p2), %v460_v4  ;;  %v193_v19 = vshrl.u32 (!%p138_p2), %v192_v18, 7  ;;  %v190_v21 = vld [vmem:[%s583_s2] sm:$0x3] (!%p138_p2) }
   0xc   : > { %292 = vmatprep.subr.bf16.mxu0 (!%p138_p2), %v461_v5 }
   0xd   : > { %s586_s13 = smov (!%p161_p3, %s412_s13), 1  ;;  %v194_v20 = vsub.s32 0, %v193_v19  ;;  %v198_v22 = vsub.s32 1, %v193_v19 }
   0xe   : > { %s442_s24 = sshll.u32 %s586_s13, 3  ;;  %s443_s27 = sshll.u32 %s586_s13, 4 }
   0xf   : > { %s165_s4 = scalar_lea.vmem %s581_s0, %s442_s24  ;;  %293 = vmatpush1.bf16.msra.mxu0 %v463_v6  ;;  %v195_v23 = vrot.slane %v190_v21, %v194_v20  ;;  %v199_v24 = vrot.slane %v190_v21, %v198_v22  ;;  %s170_s30 = scalar_lea.vmem %s584_s3, %s443_s27 }
  0x10   : > { %294 = vmatprep.subr.bf16.mxu0 %v464_v7  ;;  %v479_v17 = vld [vmem:[%s165_s4] sm:$0xff]  }
  0x13   : > { %295 = vmatpush1.bf16.msra.mxu0 %v466_v8 }
  0x14   : > { %296 = vmatprep.subr.bf16.mxu0 %v467_v9 }
  0x17   : > { %297 = vmatpush1.bf16.msra.mxu0 %v469_v10 }
  0x18   : > { %298 = vmatprep.subr.bf16.mxu0 %v470_v11 }
  0x1b   : > { %299 = vmatpush1.bf16.msra.mxu0 %v472_v12 }
  0x1c   : > { %300 = vmatprep.subr.bf16.mxu0 %v473_v13 }
  0x1f   : > { %301 = vmatpush1.bf16.msra.mxu0 %v475_v14 }
  0x20   : > { %302 = vmatprep.subr.bf16.mxu0 %v476_v15 }
  0x23   : > { %303 = vmatpush1.bf16.msra.mxu0 %v478_v16 }
  0x26   : > { %321 = vmatmul.mubr.bf16.vlgmr.msra.gmra.mrb[0].mxu0 %v479_v17 }
  0xf9   : > { %v322_v25 = vpop.f32.mrb[0].mxu0 }
  0xfa   : > { %v323_v26 = vadd.f32 %v322_v25, %v195_v23  ;;  %v324_v27 = vpop.f32.mrb[1].mxu0 }
  0xfb   : > { %v325_v28 = vadd.f32 %v324_v27, %v199_v24  ;;  %v326_v29 = vpop.f32.mrb[2].mxu0 }
  0xfc   : > { %vm331_vm0 = vcmp.ge.f32.partialorder %v323_v26, 0.0  ;;  %v335_v30 = vmul.f32 0.2, %v323_v26  ;;  %v327_v31 = vadd.f32 %v326_v29, %v195_v23  ;;  %v328_v32 = vpop.f32.mrb[3].mxu0 }
  0xfd   : > { %vm332_vm1 = vcmp.ge.f32.partialorder %v325_v28, 0.0  ;;  %v336_v33 = vmul.f32 0.2, %v325_v28  ;;  %v329_v34 = vadd.f32 %v328_v32, %v199_v24 }
  0xfe   : > { %v339_v35 = vsel %vm331_vm0, %v323_v26, %v335_v30  ;;  %vm333_vm2 = vcmp.ge.f32.partialorder %v327_v31, 0.0  ;;  %v337_v36 = vmul.f32 0.2, %v327_v31 }
  0xff   : > { %v340_v37 = vsel %vm332_vm1, %v325_v28, %v336_v33  ;;  %vm334_vm3 = vcmp.ge.f32.partialorder %v329_v34, 0.0  ;;  %v338_v38 = vmul.f32 0.2, %v329_v34 }
 0x100   : > { %v444_v39 = vpack.c.bf16 %v340_v37, %v339_v35  ;;  %v341_v40 = vsel %vm333_vm2, %v327_v31, %v337_v36 }
 0x101   : > { %v342_v41 = vsel %vm334_vm3, %v329_v34, %v338_v38 }
 0x102   : > { %355 = vst [vmem:[%s170_s30] sm:$0xff] %v444_v39  ;;  %v445_v42 = vpack.c.bf16 %v342_v41, %v341_v40 }
 0x104   : > { %356 = vst [vmem:[%s170_s30 + $0x8] sm:$0xff] %v445_v42 }
 0x105 PF: > { %s13_s12 = sadd.s32 1, %s486_s12  }
 0x106   : > { %p10_p4 = scmp.ge.s32.totalorder %s13_s12, 4  }
 0x108   :  { %12 = sbr.rel (!%p10_p4) target bundleno = 1 (0x1), region = 62 }

// kernel: encoder_forward.14
= control target key start
LH: loop header
LB: loop body
LE: loop exit
PB: predicated region body
PF: predicated region fallthrough
CT: control target
= control target key end

     0   :  { %s576_s12 = smov 0   ;;  %s648_s0 = inlined_call_operand.vmem [shape: bf16[2,16,256], index: 0, kind: input, shape index: {}]   ;;  %s649_s1 = inlined_call_operand.vmem [shape: bf16[256,128], index: 1, kind: input, shape index: {}]   ;;  %s650_s2 = inlined_call_operand.vmem [shape: f32[1,128], index: 2, kind: input, shape index: {}]   ;;  %s651_s3 = inlined_call_operand.vmem [shape: bf16[2,16,128], index: 3, kind: output, shape index: {}]  }
   0x1 LB: > { %s456_s13 = sadd.s32 4294967295, %s554_s12   ;;  %p460_p0 = scmp.ge.s32.totalorder %s554_s12, 1  ;;  %s554_s12 = sphi %s576_s12, %s13_s12  }
   0x2   : > { %p137_p1 = scmp.lt.s32.totalorder %s554_s12, 3 }
   0x4   : > { %p138_p2 = pnand %p460_p0, %p137_p1 }
   0x5   : > { %v527_v0 = vld [vmem:[%s649_s1 + $0x40] sm:$0xff] (!%p138_p2)   ;;  %v529_v2 = vld [vmem:[%s649_s1 + $0x48] sm:$0xff] (!%p138_p2)   ;;  %p161_p3 = scmp.lt.s32.totalorder (!%p138_p2), %s456_s13, 1  ;;  %v531_v4 = vld [vmem:[%s649_s1 + $0x50] sm:$0xff] (!%p138_p2)  }
   0x6   : > { %141 = sbr.rel (%p138_p2) target bundleno = 314 (0x13a), region = 32  ;;  %v528_v1 = vld [vmem:[%s649_s1] sm:$0xff] (!%p138_p2)   ;;  %497 = vmatprep.subr.bf16.mxu0 (!%p138_p2), %v527_v0  ;;  %v530_v3 = vld [vmem:[%s649_s1 + $0x8] sm:$0xff] (!%p138_p2)   ;;  %v532_v5 = vld [vmem:[%s649_s1 + $0x10] sm:$0xff] (!%p138_p2)  }
   0x7   : > { %498 = vmatpush3.bf16.msra.mxu0 (!%p138_p2), %v528_v1  ;;  %v533_v6 = vld [vmem:[%s649_s1 + $0x58] sm:$0xff] (!%p138_p2)   ;;  %v535_v8 = vld [vmem:[%s649_s1 + $0x60] sm:$0xff] (!%p138_p2)   ;;  %v537_v10 = vld [vmem:[%s649_s1 + $0x68] sm:$0xff] (!%p138_p2)  }
   0x8   : > { %499 = vmatprep.subr.bf16.mxu0 (!%p138_p2), %v529_v2  ;;  %v534_v7 = vld [vmem:[%s649_s1 + $0x18] sm:$0xff] (!%p138_p2)   ;;  %v536_v9 = vld [vmem:[%s649_s1 + $0x20] sm:$0xff] (!%p138_p2)   ;;  %v538_v12 = vld [vmem:[%s649_s1 + $0x28] sm:$0xff] (!%p138_p2)  }
   0x9   : > { %v539_v13 = vld [vmem:[%s649_s1 + $0x70] sm:$0xff] (!%p138_p2)   ;;  %v541_v15 = vld [vmem:[%s649_s1 + $0x78] sm:$0xff] (!%p138_p2)   ;;  %v465_v19 = vld [vmem:[%s650_s2] ss:$0 sm:$0xff] (!%p138_p2) }
   0xa   : > { %v540_v14 = vld [vmem:[%s649_s1 + $0x30] sm:$0xff] (!%p138_p2)   ;;  %v542_v16 = vld [vmem:[%s649_s1 + $0x38] sm:$0xff] (!%p138_p2)  }
   0xb   : > { %500 = vmatpush3.bf16.msra.mxu0 (!%p138_p2), %v530_v3 }
   0xc   : > { %501 = vmatprep.subr.bf16.mxu0 (!%p138_p2), %v531_v4 }
   0xd   : > { %s653_s13 = smov (!%p161_p3, %s456_s13), 1 }
   0xe   : > { %s488_s30 = sshll.u32 %s653_s13, 4  ;;  %s489_s27 = sshll.u32 %s653_s13, 3 }
   0xf   : > { %502 = vmatpush3.bf16.msra.mxu0 %v532_v5  ;;  %s165_s8 = scalar_lea.vmem %s648_s0, %s488_s30  ;;  %s170_s30 = scalar_lea.vmem %s651_s3, %s489_s27 }
  0x10   : > { %503 = vmatprep.subr.bf16.mxu0 %v533_v6  ;;  %v545_v11 = vld [vmem:[%s165_s8 + $0x4] ss:$8 sps:$4 sm:$0xff]   ;;  %v543_v17 = vld [vmem:[%s165_s8] ss:$8 sps:$4 sm:$0xff]  }
  0x11   : > { %351 = vmatprep.mubr.bf16.mxu0 %v545_v11 }
  0x13   : > { %504 = vmatpush3.bf16.msra.mxu0 %v534_v7 }
  0x14   : > { %505 = vmatprep.subr.bf16.mxu0 %v535_v8 }
  0x17   : > { %506 = vmatpush3.bf16.msra.mxu0 %v536_v9 }
  0x18   : > { %507 = vmatprep.subr.bf16.mxu0 %v537_v10 }
  0x1b   : > { %508 = vmatpush3.bf16.msra.mxu0 %v538_v12 }
  0x1c   : > { %509 = vmatprep.subr.bf16.mxu0 %v539_v13 }
  0x1f   : > { %510 = vmatpush3.bf16.msra.mxu0 %v540_v14 }
  0x20   : > { %511 = vmatprep.subr.bf16.mxu0 %v541_v15 }
  0x23   : > { %512 = vmatpush3.bf16.msra.mxu0 %v542_v16 }
  0x26   : > { %352 = vmatmul.mubr.bf16.vlgmr.msra.gmra.mrb[0].mxu0 %v543_v17 }
  0xf9   : > { %v513_v18 = vpop.f32.mrb[0].mxu0 }
  0xfa   : > { %v514_v20 = vpop.f32.mrb[1].mxu0 }
  0xfb   : > { %v515_v21 = vadd.f32 %v514_v20, %v513_v18  ;;  %v516_v22 = vpop.f32.mrb[2].mxu0 }
  0xfc   : > { %v517_v23 = vpop.f32.mrb[3].mxu0 }
  0xfd   : > { %v354_v24 = vadd.f32 %v515_v21, %v465_v19  ;;  %v518_v25 = vadd.f32 %v517_v23, %v516_v22 }
  0xff   : > { %v362_v26 = vmul.f32 0.2, %v354_v24  ;;  %v357_v27 = vadd.f32 %v518_v25, %v465_v19  ;;  %vm360_vm0 = vcmp.ge.f32.partialorder %v354_v24, 0.0 }
 0x101   : > { %vm361_vm1 = vcmp.ge.f32.partialorder %v357_v27, 0.0  ;;  %v363_v28 = vmul.f32 0.2, %v357_v27  ;;  %v364_v29 = vsel %vm360_vm0, %v354_v24, %v362_v26 }
 0x103   : > { %v365_v30 = vsel %vm361_vm1, %v357_v27, %v363_v28 }
 0x104   : > { %v366_v31 = vadd.f32 %v365_v30, %v364_v29 }
 0x106   : > { %v367_v32 = vrot.slane %v366_v31, 4 }
 0x108   : > { %v368_v33 = vadd.f32 %v367_v32, %v366_v31 }
 0x10a   : > { %v369_v34 = vrot.slane %v368_v33, 2 }
 0x10c   : > { %v370_v35 = vadd.f32 %v369_v34, %v368_v33 }
 0x10e   : > { %v371_v36 = vrot.slane %v370_v35, 1 }
 0x110   : > { %v372_v37 = vadd.f32 %v371_v36, %v370_v35 }
 0x112   : > { %v374_v38 = vmul.f32 0.0625, %v372_v37 }
 0x114   : > { %v375_v39 = vsub.f32 %v364_v29, %v374_v38  ;;  %v376_v40 = vsub.f32 %v365_v30, %v374_v38 }
 0x116   : > { %v377_v41 = vmul.f32 %v375_v39, %v375_v39  ;;  %v378_v42 = vmul.f32 %v376_v40, %v376_v40 }
 0x118   : > { %v379_v43 = vadd.f32 %v378_v42, %v377_v41 }
 0x11a   : > { %v380_v44 = vrot.slane %v379_v43, 4 }
 0x11c   : > { %v381_v45 = vadd.f32 %v380_v44, %v379_v43 }
 0x11e   : > { %v382_v46 = vrot.slane %v381_v45, 2 }
 0x120   : > { %v383_v47 = vadd.f32 %v382_v46, %v381_v45 }
 0x122   : > { %v384_v48 = vrot.slane %v383_v47, 1 }
 0x124   : > { %v385_v49 = vadd.f32 %v384_v48, %v383_v47 }
 0x126   : > { %v386_v50 = vmul.f32 0.0625, %v385_v49 }
 0x128   : > { %v387_v51 = vadd.f32 1e-05, %v386_v50 }
 0x12a   : > { %546 = vrsqrt.f32 %v387_v51 }
 0x134   : > { %v547_v52 = vpop.eup %546 }
 0x135   : > { %v389_v53 = vmul.f32 %v547_v52, %v375_v39  ;;  %v390_v54 = vmul.f32 %v547_v52, %v376_v40 }
 0x137   : > { %v495_v55 = vpack.c.bf16 %v390_v54, %v389_v53 }
 0x139   : > { %496 = vst [vmem:[%s170_s30] sm:$0xff] %v495_v55  }
 0x13a PF: > { %s13_s12 = sadd.s32 1, %s554_s12  }
 0x13b   : > { %p10_p4 = scmp.ge.s32.totalorder %s13_s12, 4  }
 0x13d   :  { %12 = sbr.rel (!%p10_p4) target bundleno = 1 (0x1), region = 62 }

// kernel: encoder_forward.16
= control target key start
LH: loop header
LB: loop body
LE: loop exit
PB: predicated region body
PF: predicated region fallthrough
CT: control target
= control target key end

     0   :  { %s1061_s15 = smov 0   ;;  %s1218_s0 = inlined_call_operand.vmem [shape: bf16[2,20,128], index: 0, kind: input, shape index: {}]   ;;  %s1219_s1 = inlined_call_operand.vmem [shape: bf16[2,16,128], index: 1, kind: input, shape index: {}]   ;;  %s1220_s2 = inlined_call_operand.vmem [shape: bf16[640,128], index: 2, kind: input, shape index: {}]   ;;  %s1221_s3 = inlined_call_operand.vmem [shape: f32[1,128], index: 3, kind: input, shape index: {}]   ;;  %s1222_s4 = inlined_call_operand.vmem [shape: bf16[2,16,128], index: 4, kind: output, shape index: {}]  }
   0x1 LB: > { %s829_s16 = sadd.s32 4294967295, %s1032_s15   ;;  %p833_p0 = scmp.ge.s32.totalorder %s1032_s15, 1  ;;  %s1032_s15 = sphi %s1061_s15, %s14_s15  }
   0x2   : > { %p172_p1 = scmp.lt.s32.totalorder %s1032_s15, 3 }
   0x4   : > { %p173_p2 = pnand %p833_p0, %p172_p1 }
   0x5   : > { %v982_v0 = vld [vmem:[%s1220_s2 + $0x40] sm:$0xff] (!%p173_p2)   ;;  %v986_v4 = vld [vmem:[%s1220_s2 + $0x48] sm:$0xff] (!%p173_p2)   ;;  %v990_v8 = vld [vmem:[%s1220_s2 + $0x50] sm:$0xff] (!%p173_p2)   ;;  %p203_p3 = scmp.lt.s32.totalorder (!%p173_p2), %s829_s16, 1  ;;  %vm228_vm0 = vcmask (!%p173_p2), 1046528   ;;  %v1034_v37 = vmov (!%p173_p2), 0.0  }
   0x6   : > { %176 = sbr.rel (%p173_p2) target bundleno = 345 (0x159), region = 36  ;;  %v983_v1 = vld [vmem:[%s1220_s2] sm:$0xff] (!%p173_p2)   ;;  %898 = vmatprep.subr.bf16.mxu0 (!%p173_p2), %v982_v0  ;;  %v987_v5 = vld [vmem:[%s1220_s2 + $0x8] sm:$0xff] (!%p173_p2)   ;;  %v991_v9 = vld [vmem:[%s1220_s2 + $0x10] sm:$0xff] (!%p173_p2)   ;;  %vm244_vm1 = vcmask (!%p173_p2), 1044480   ;;  %vm236_vm2 = vcmask (!%p173_p2), 1045504  }
   0x7   : > { %v984_v2 = vld [vmem:[%s1220_s2 + $0xc0] sm:$0xff] (!%p173_p2)   ;;  %899 = vmatpush3.bf16.msra.mxu0 (!%p173_p2), %v983_v1  ;;  %v988_v6 = vld [vmem:[%s1220_s2 + $0xc8] sm:$0xff] (!%p173_p2)   ;;  %v992_v10 = vld [vmem:[%s1220_s2 + $0xd0] sm:$0xff] (!%p173_p2)   ;;  %vm1035_vm3 = vmmov (!%p173_p2), 0   ;;  %vm252_vm4 = vcmask (!%p173_p2), 1043456  }
   0x8   : > { %v985_v3 = vld [vmem:[%s1220_s2 + $0x80] sm:$0xff] (!%p173_p2)   ;;  %920 = vmatprep.subr.bf16.mxu1 (!%p173_p2), %v984_v2  ;;  %900 = vmatprep.subr.bf16.mxu0 (!%p173_p2), %v986_v4  ;;  %v989_v7 = vld [vmem:[%s1220_s2 + $0x88] sm:$0xff] (!%p173_p2)   ;;  %v993_v11 = vld [vmem:[%s1220_s2 + $0x90] sm:$0xff] (!%p173_p2)  }
   0x9   : > { %921 = vmatpush3.bf16.msra.mxu1 (!%p173_p2), %v985_v3  ;;  %v994_v12 = vld [vmem:[%s1220_s2 + $0x58] sm:$0xff] (!%p173_p2)   ;;  %v998_v16 = vld [vmem:[%s1220_s2 + $0x60] sm:$0xff] (!%p173_p2)   ;;  %v1002_v20 = vld [vmem:[%s1220_s2 + $0x68] sm:$0xff] (!%p173_p2)  }
   0xa   : > { %922 = vmatprep.subr.bf16.mxu1 (!%p173_p2), %v988_v6  ;;  %v995_v13 = vld [vmem:[%s1220_s2 + $0x18] sm:$0xff] (!%p173_p2)   ;;  %v999_v17 = vld [vmem:[%s1220_s2 + $0x20] sm:$0xff] (!%p173_p2)   ;;  %v1003_v21 = vld [vmem:[%s1220_s2 + $0x28] sm:$0xff] (!%p173_p2)  }
   0xb   : > { %901 = vmatpush3.bf16.msra.mxu0 (!%p173_p2), %v987_v5  ;;  %v996_v14 = vld [vmem:[%s1220_s2 + $0xd8] sm:$0xff] (!%p173_p2)   ;;  %v1000_v18 = vld [vmem:[%s1220_s2 + $0xe0] sm:$0xff] (!%p173_p2)   ;;  %v1004_v22 = vld [vmem:[%s1220_s2 + $0xe8] sm:$0xff] (!%p173_p2)  }
   0xc   : > { %902 = vmatprep.subr.bf16.mxu0 (!%p173_p2), %v990_v8  ;;  %v997_v15 = vld [vmem:[%s1220_s2 + $0x98] sm:$0xff] (!%p173_p2)   ;;  %v1001_v19 = vld [vmem:[%s1220_s2 + $0xa0] sm:$0xff] (!%p173_p2)   ;;  %v1005_v23 = vld [vmem:[%s1220_s2 + $0xa8] sm:$0xff] (!%p173_p2)  }
   0xd   : > { %923 = vmatpush3.bf16.msra.mxu1 %v989_v7  ;;  %s1224_s16 = smov (!%p203_p3, %s829_s16), 1  ;;  %v1006_v24 = vld [vmem:[%s1220_s2 + $0x70] sm:$0xff]   ;;  %v1010_v28 = vld [vmem:[%s1220_s2 + $0x78] sm:$0xff]   ;;  %v1015_v48 = vld [vmem:[%s1220_s2 + $0x100] sm:$0xff]  }
   0xe   : > { %924 = vmatprep.subr.bf16.mxu1 %v992_v10  ;;  %s971_s19 = smul.u32 12, %s1224_s16  ;;  %v1007_v25 = vld [vmem:[%s1220_s2 + $0x30] sm:$0xff]   ;;  %v1011_v29 = vld [vmem:[%s1220_s2 + $0x38] sm:$0xff]   ;;  %v1016_v57 = vld [vmem:[%s1220_s2 + $0x108] sm:$0xff]   ;;  %s885_s5 = sshll.u32 %s1224_s16, 3 }
   0xf   : > { %903 = vmatpush3.bf16.msra.mxu0 %v991_v9  ;;  %v1008_v26 = vld [vmem:[%s1220_s2 + $0xf0] sm:$0xff]   ;;  %v1012_v30 = vld [vmem:[%s1220_s2 + $0xf8] sm:$0xff]   ;;  %v1019_v60 = vld [vmem:[%s1220_s2 + $0x120] sm:$0xff]   ;;  %s212_s8 = scalar_lea.vmem %s1219_s1, %s885_s5  ;;  %s217_s11 = scalar_lea.vmem %s1222_s4, %s885_s5 }
  0x10   : > { %904 = vmatprep.subr.bf16.mxu0 %v994_v12  ;;  %v1009_v27 = vld [vmem:[%s1220_s2 + $0xb0] sm:$0xff]   ;;  %s207_s30 = scalar_lea.vmem %s1218_s0, %s971_s19  ;;  %v1013_v36 = vld [vmem:[%s1220_s2 + $0xb8] sm:$0xff]   ;;  %v1020_v61 = vld [vmem:[%s1220_s2 + $0x128] sm:$0xff]  }
  0x11   : > { %925 = vmatpush3.bf16.msra.mxu1 %v993_v11  ;;  %v219_v31 = vld [vmem:[%s207_s30] sm:$0xff]   ;;  %v221_v32 = vld [vmem:[%s207_s30 + $0x8] sm:$0x3]  ;;  %v1017_v58 = vld [vmem:[%s1220_s2 + $0x110] sm:$0xff]  }
  0x12   : > { %926 = vmatprep.subr.bf16.mxu1 %v996_v14  ;;  %v222_v33 = vunpack.c.l.bf16 %v219_v31  ;;  %v223_v34 = vunpack.c.h.bf16 %v219_v31  ;;  %v224_v35 = vunpack.c.l.bf16 %v221_v32  ;;  %v1018_v59 = vld [vmem:[%s1220_s2 + $0x118] sm:$0xff]   ;;  %v1021_v62 = vld [vmem:[%s1220_s2 + $0x130] sm:$0xff]   ;;  %v840_v7 = vld [vmem:[%s1221_s3] ss:$0 sm:$0xff] }
  0x13   : > { %905 = vmatpush3.bf16.msra.mxu0 %v995_v13  ;;  %v1022_v2 = vld [vmem:[%s1220_s2 + $0x138] sm:$0xff]  }
  0x14   : > { %906 = vmatprep.subr.bf16.mxu0 %v998_v16  ;;  %v229_v38 = vrot.slane %v222_v33, 1  ;;  %v230_v39 = vrot.slane %v223_v34, 1  ;;  %v232_v40 = vrot.slane %v224_v35, 1  ;;  %v245_v41 = vrot.slane %v222_v33, 3 }
  0x15   : > { %927 = vmatpush3.bf16.msra.mxu1 %v997_v15  ;;  %v246_v42 = vrot.slane %v223_v34, 3  ;;  %v248_v43 = vrot.slane %v224_v35, 3  ;;  %v237_v44 = vrot.slane %v222_v33, 2  ;;  %v238_v45 = vrot.slane %v223_v34, 2 }
  0x16   : > { %928 = vmatprep.subr.bf16.mxu1 %v1000_v18  ;;  %v231_v46 = vsel %vm228_vm0, %v229_v38, %v230_v39  ;;  %v233_v47 = vsel %vm228_vm0, %v230_v39, %v232_v40  ;;  %v240_v49 = vrot.slane %v224_v35, 2  ;;  %v253_v63 = vrot.slane %v222_v33, 4 }
  0x17   : > { %907 = vmatpush3.bf16.msra.mxu0 %v999_v17  ;;  %v261_v50 = vpack.c.bf16 %v233_v47, %v231_v46  ;;  %v247_v51 = vsel %vm244_vm1, %v245_v41, %v246_v42  ;;  %v249_v52 = vsel %vm244_vm1, %v246_v42, %v248_v43  ;;  %v239_v53 = vsel %vm236_vm2, %v237_v44, %v238_v45 }
  0x18   : > { %908 = vmatprep.subr.bf16.mxu0 %v1002_v20  ;;  %v263_v54 = vpack.c.bf16 %v249_v52, %v247_v51  ;;  %v241_v55 = vsel %vm236_vm2, %v238_v45, %v240_v49  ;;  %v254_v0 = vrot.slane %v223_v34, 4  ;;  %v256_v1 = vrot.slane %v224_v35, 4 }
  0x19   : > { %929 = vmatpush3.bf16.msra.mxu1 %v1001_v19  ;;  %624 = vmatprep.mubr.bf16.mxu0 %v261_v50  ;;  %v262_v56 = vpack.c.bf16 %v241_v55, %v239_v53 }
  0x1a   : > { %930 = vmatprep.subr.bf16.mxu1 %v1004_v22  ;;  %665 = vmatprep.mubr.bf16.mxu1 %v263_v54  ;;  %v255_v3 = vsel %vm252_vm4, %v253_v63, %v254_v0  ;;  %v257_v4 = vsel %vm252_vm4, %v254_v0, %v256_v1  ;;  %v890_v54 = vld [vmem:[%s212_s8] sm:$0xff]  }
  0x1b   : > { %909 = vmatpush3.bf16.msra.mxu0 %v1003_v21  ;;  %v264_v5 = vpack.c.bf16 %v257_v4, %v255_v3  ;;  %v891_v55 = vunpack.c.l.bf16 %v890_v54 }
  0x1c   : > { %910 = vmatprep.subr.bf16.mxu0 %v1006_v24 }
  0x1d   : > { %931 = vmatpush3.bf16.msra.mxu1 %v1005_v23 }
  0x1e   : > { %932 = vmatprep.subr.bf16.mxu1 %v1008_v26 }
  0x1f   : > { %911 = vmatpush3.bf16.msra.mxu0 %v1007_v25 }
  0x20   : > { %912 = vmatprep.subr.bf16.mxu0 %v1010_v28 }
  0x21   : > { %933 = vmatpush3.bf16.msra.mxu1 %v1009_v27 }
  0x22   : > { %934 = vmatprep.subr.bf16.mxu1 %v1012_v30 }
  0x23   : > { %913 = vmatpush3.bf16.msra.mxu0 %v1011_v29 }
  0x24   : > { %951 = vmatprep.subr.bf16.mxu0 %v1034_v37 }
  0x25   : > { %935 = vmatpush3.bf16.msra.mxu1 %v1013_v36 }
  0x26   : > { %625 = vmatmul.mubr.bf16.vlgmr.msra.gmra.mrb[0].mxu0 %v219_v31 }
  0x27   : > { %952 = vmatpush3.bf16.msra.mxu0 %v1015_v48  ;;  %967 = vmatprep.mubr.msk.bf16.mxu0 %vm1035_vm3, %v1034_v37 }
  0x28   : > { %666 = vmatmul.mubr.bf16.vlgmr.msra.gmra.mrb[0].mxu1 %v262_v56  ;;  %953 = vmatprep.subr.bf16.mxu0 %v1034_v37  ;;  %v892_v56 = vunpack.c.h.bf16 %v890_v54 }
  0x2b   : > { %954 = vmatpush3.bf16.msra.mxu0 %v1016_v57 }
  0x2c   : > { %955 = vmatprep.subr.bf16.mxu0 %v1034_v37 }
  0x2f   : > { %956 = vmatpush3.bf16.msra.mxu0 %v1017_v58 }
  0x30   : > { %957 = vmatprep.subr.bf16.mxu0 %v1034_v37 }
  0x33   : > { %958 = vmatpush3.bf16.msra.mxu0 %v1018_v59 }
  0x34   : > { %959 = vmatprep.subr.bf16.mxu0 %v1034_v37 }
  0x37   : > { %960 = vmatpush3.bf16.msra.mxu0 %v1019_v60 }
  0x38   : > { %961 = vmatprep.subr.bf16.mxu0 %v1034_v37 }
  0x3b   : > { %962 = vmatpush3.bf16.msra.mxu0 %v1020_v61 }
  0x3c   : > { %963 = vmatprep.subr.bf16.mxu0 %v1034_v37 }
  0x3f   : > { %964 = vmatpush3.bf16.msra.mxu0 %v1021_v62 }
  0x40   : > { %965 = vmatprep.subr.bf16.mxu0 %v1034_v37 }
  0x43   : > { %966 = vmatpush3.bf16.msra.mxu0 %v1022_v2 }
  0x46   : > { %968 = vmatmul.mubr.bf16.vlgmr.msra.gmra.mrb[4].mxu0 %v264_v5 }
  0xf9   : > { %v914_v6 = vpop.f32.mrb[0].mxu0 }
  0xfa   : > { %v915_v8 = vpop.f32.mrb[1].mxu0 }
  0xfb   : > { %v936_v9 = vpop.f32.mrb[0].mxu1  ;;  %v916_v10 = vadd.f32 %v915_v8, %v914_v6  ;;  %v917_v11 = vpop.f32.mrb[2].mxu0 }
  0xfc   : > { %v937_v12 = vpop.f32.mrb[1].mxu1  ;;  %v918_v13 = vpop.f32.mrb[3].mxu0 }
  0xfd   : > { %v938_v14 = vadd.f32 %v937_v12, %v936_v9  ;;  %v939_v15 = vpop.f32.mrb[2].mxu1  ;;  %v627_v16 = vadd.f32 %v916_v10, %v840_v7  ;;  %v919_v17 = vadd.f32 %v918_v13, %v917_v11 }
  0xfe   : > { %v940_v18 = vpop.f32.mrb[3].mxu1 }
  0xff   : > { %v941_v19 = vadd.f32 %v940_v18, %v939_v15  ;;  %v630_v20 = vadd.f32 %v919_v17, %v840_v7  ;;  %v668_v21 = vadd.f32 %v938_v14, %v627_v16 }
 0x101   : > { %v671_v22 = vadd.f32 %v941_v19, %v630_v20 }
 0x119   : > { %v708_v23 = vpop.f32.mrb[4].mxu0 }
 0x11a   : > { %v709_v24 = vadd.f32 %v708_v23, %v668_v21  ;;  %v969_v25 = vpop.f32.mrb[5].mxu0 }
 0x11b   : > { %v711_v26 = vpop.f32.mrb[6].mxu0 }
 0x11c   : > { %v717_v27 = vmul.f32 0.2, %v709_v24  ;;  %v712_v28 = vadd.f32 %v711_v26, %v671_v22  ;;  %v970_v29 = vpop.f32.mrb[7].mxu0  ;;  %vm715_vm5 = vcmp.ge.f32.partialorder %v709_v24, 0.0 }
 0x11e   : > { %vm716_vm6 = vcmp.ge.f32.partialorder %v712_v28, 0.0  ;;  %v718_v30 = vmul.f32 0.2, %v712_v28  ;;  %v719_v31 = vsel %vm715_vm5, %v709_v24, %v717_v27 }
 0x120   : > { %v720_v32 = vsel %vm716_vm6, %v712_v28, %v718_v30 }
 0x121   : > { %v721_v33 = vadd.f32 %v720_v32, %v719_v31 }
 0x123   : > { %v722_v34 = vrot.slane %v721_v33, 4 }
 0x125   : > { %v723_v35 = vadd.f32 %v722_v34, %v721_v33 }
 0x127   : > { %v724_v36 = vrot.slane %v723_v35, 2 }
 0x129   : > { %v725_v37 = vadd.f32 %v724_v36, %v723_v35 }
 0x12b   : > { %v726_v38 = vrot.slane %v725_v37, 1 }
 0x12d   : > { %v727_v39 = vadd.f32 %v726_v38, %v725_v37 }
 0x12f   : > { %v729_v40 = vmul.f32 0.0625, %v727_v39 }
 0x131   : > { %v730_v41 = vsub.f32 %v719_v31, %v729_v40  ;;  %v731_v42 = vsub.f32 %v720_v32, %v729_v40 }
 0x133   : > { %v732_v43 = vmul.f32 %v730_v41, %v730_v41  ;;  %v733_v44 = vmul.f32 %v731_v42, %v731_v42 }
 0x135   : > { %v734_v45 = vadd.f32 %v733_v44, %v732_v43 }
 0x137   : > { %v735_v46 = vrot.slane %v734_v45, 4 }
 0x139   : > { %v736_v47 = vadd.f32 %v735_v46, %v734_v45 }
 0x13b   : > { %v737_v48 = vrot.slane %v736_v47, 2 }
 0x13d   : > { %v738_v49 = vadd.f32 %v737_v48, %v736_v47 }
 0x13f   : > { %v739_v50 = vrot.slane %v738_v49, 1 }
 0x141   : > { %v740_v51 = vadd.f32 %v739_v50, %v738_v49 }
 0x143   : > { %v741_v52 = vmul.f32 0.0625, %v740_v51 }
 0x145   : > { %v742_v53 = vadd.f32 1e-05, %v741_v52 }
 0x147   : > { %1024 = vrsqrt.f32 %v742_v53 }
 0x151   : > { %v1025_v57 = vpop.eup %1024 }
 0x152   : > { %v744_v58 = vmul.f32 %v1025_v57, %v730_v41  ;;  %v745_v59 = vmul.f32 %v1025_v57, %v731_v42 }
 0x154   : > { %v750_v60 = vadd.f32 %v891_v55, %v744_v58  ;;  %v751_v61 = vadd.f32 %v892_v56, %v745_v59 }
 0x156   : > { %v896_v62 = vpack.c.bf16 %v751_v61, %v750_v60 }
 0x158   : > { %897 = vst [vmem:[%s217_s11] sm:$0xff] %v896_v62  }
 0x159 PF: > { %s14_s15 = sadd.s32 1, %s1032_s15  }
 0x15a   : > { %p11_p4 = scmp.ge.s32.totalorder %s14_s15, 4  }
 0x15c   :  { %13 = sbr.rel (!%p11_p4) target bundleno = 1 (0x1), region = 69 }

// kernel: encoder_forward.15
= control target key start
LH: loop header
LB: loop body
LE: loop exit
PB: predicated region body
PF: predicated region fallthrough
CT: control target
= control target key end

     0   :  { %s957_s12 = smov 0   ;;  %s1111_s0 = inlined_call_operand.vmem [shape: bf16[2,20,128], index: 0, kind: input, shape index: {}]   ;;  %s1112_s1 = inlined_call_operand.vmem [shape: bf16[640,128], index: 1, kind: input, shape index: {}]   ;;  %s1113_s2 = inlined_call_operand.vmem [shape: f32[1,128], index: 2, kind: input, shape index: {}]   ;;  %s1114_s3 = inlined_call_operand.vmem [shape: bf16[2,16,128], index: 3, kind: output, shape index: {}]  }
   0x1 LB: > { %s739_s13 = sadd.s32 4294967295, %s933_s12   ;;  %p743_p0 = scmp.ge.s32.totalorder %s933_s12, 1  ;;  %s933_s12 = sphi %s957_s12, %s13_s12  }
   0x2   : > { %p137_p1 = scmp.lt.s32.totalorder %s933_s12, 3 }
   0x4   : > { %p138_p2 = pnand %p743_p0, %p137_p1 }
   0x5   : > { %v885_v0 = vld [vmem:[%s1112_s1 + $0x40] sm:$0xff] (!%p138_p2)   ;;  %v889_v4 = vld [vmem:[%s1112_s1 + $0x48] sm:$0xff] (!%p138_p2)   ;;  %v893_v8 = vld [vmem:[%s1112_s1 + $0x50] sm:$0xff] (!%p138_p2)   ;;  %p161_p3 = scmp.lt.s32.totalorder (!%p138_p2), %s739_s13, 1  ;;  %vm181_vm0 = vcmask (!%p138_p2), 1046528   ;;  %v935_v37 = vmov (!%p138_p2), 0.0  }
   0x6   : > { %141 = sbr.rel (%p138_p2) target bundleno = 292 (0x124), region = 32  ;;  %v886_v1 = vld [vmem:[%s1112_s1] sm:$0xff] (!%p138_p2)   ;;  %801 = vmatprep.subr.bf16.mxu0 (!%p138_p2), %v885_v0  ;;  %v890_v5 = vld [vmem:[%s1112_s1 + $0x8] sm:$0xff] (!%p138_p2)   ;;  %v894_v9 = vld [vmem:[%s1112_s1 + $0x10] sm:$0xff] (!%p138_p2)   ;;  %vm197_vm1 = vcmask (!%p138_p2), 1044480   ;;  %vm189_vm2 = vcmask (!%p138_p2), 1045504  }
   0x7   : > { %v887_v2 = vld [vmem:[%s1112_s1 + $0xc0] sm:$0xff] (!%p138_p2)   ;;  %802 = vmatpush3.bf16.msra.mxu0 (!%p138_p2), %v886_v1  ;;  %v891_v6 = vld [vmem:[%s1112_s1 + $0xc8] sm:$0xff] (!%p138_p2)   ;;  %v895_v10 = vld [vmem:[%s1112_s1 + $0xd0] sm:$0xff] (!%p138_p2)   ;;  %vm936_vm3 = vmmov (!%p138_p2), 0   ;;  %vm205_vm4 = vcmask (!%p138_p2), 1043456  }
   0x8   : > { %v888_v3 = vld [vmem:[%s1112_s1 + $0x80] sm:$0xff] (!%p138_p2)   ;;  %823 = vmatprep.subr.bf16.mxu1 (!%p138_p2), %v887_v2  ;;  %803 = vmatprep.subr.bf16.mxu0 (!%p138_p2), %v889_v4  ;;  %v892_v7 = vld [vmem:[%s1112_s1 + $0x88] sm:$0xff] (!%p138_p2)   ;;  %v896_v11 = vld [vmem:[%s1112_s1 + $0x90] sm:$0xff] (!%p138_p2)  }
   0x9   : > { %824 = vmatpush3.bf16.msra.mxu1 (!%p138_p2), %v888_v3  ;;  %v897_v12 = vld [vmem:[%s1112_s1 + $0x58] sm:$0xff] (!%p138_p2)   ;;  %v901_v16 = vld [vmem:[%s1112_s1 + $0x60] sm:$0xff] (!%p138_p2)   ;;  %v905_v20 = vld [vmem:[%s1112_s1 + $0x68] sm:$0xff] (!%p138_p2)  }
   0xa   : > { %825 = vmatprep.subr.bf16.mxu1 (!%p138_p2), %v891_v6  ;;  %v898_v13 = vld [vmem:[%s1112_s1 + $0x18] sm:$0xff] (!%p138_p2)   ;;  %v902_v17 = vld [vmem:[%s1112_s1 + $0x20] sm:$0xff] (!%p138_p2)   ;;  %v906_v21 = vld [vmem:[%s1112_s1 + $0x28] sm:$0xff] (!%p138_p2)  }
   0xb   : > { %804 = vmatpush3.bf16.msra.mxu0 (!%p138_p2), %v890_v5  ;;  %v899_v14 = vld [vmem:[%s1112_s1 + $0xd8] sm:$0xff] (!%p138_p2)   ;;  %v903_v18 = vld [vmem:[%s1112_s1 + $0xe0] sm:$0xff] (!%p138_p2)   ;;  %v907_v22 = vld [vmem:[%s1112_s1 + $0xe8] sm:$0xff] (!%p138_p2)  }
   0xc   : > { %805 = vmatprep.subr.bf16.mxu0 (!%p138_p2), %v893_v8  ;;  %v900_v15 = vld [vmem:[%s1112_s1 + $0x98] sm:$0xff] (!%p138_p2)   ;;  %v904_v19 = vld [vmem:[%s1112_s1 + $0xa0] sm:$0xff] (!%p138_p2)   ;;  %v908_v23 = vld [vmem:[%s1112_s1 + $0xa8] sm:$0xff] (!%p138_p2)  }
   0xd   : > { %826 = vmatpush3.bf16.msra.mxu1 %v892_v7  ;;  %s1116_s13 = smov (!%p161_p3, %s739_s13), 1  ;;  %v909_v24 = vld [vmem:[%s1112_s1 + $0x70] sm:$0xff]   ;;  %v913_v28 = vld [vmem:[%s1112_s1 + $0x78] sm:$0xff]   ;;  %v918_v48 = vld [vmem:[%s1112_s1 + $0x100] sm:$0xff]  }
   0xe   : > { %827 = vmatprep.subr.bf16.mxu1 %v895_v10  ;;  %s874_s14 = smul.u32 12, %s1116_s13  ;;  %v910_v25 = vld [vmem:[%s1112_s1 + $0x30] sm:$0xff]   ;;  %v914_v29 = vld [vmem:[%s1112_s1 + $0x38] sm:$0xff]   ;;  %v919_v57 = vld [vmem:[%s1112_s1 + $0x108] sm:$0xff]  }
   0xf   : > { %806 = vmatpush3.bf16.msra.mxu0 %v894_v9  ;;  %v911_v26 = vld [vmem:[%s1112_s1 + $0xf0] sm:$0xff]   ;;  %v915_v30 = vld [vmem:[%s1112_s1 + $0xf8] sm:$0xff]   ;;  %v922_v60 = vld [vmem:[%s1112_s1 + $0x120] sm:$0xff]  }
  0x10   : > { %807 = vmatprep.subr.bf16.mxu0 %v897_v12  ;;  %v912_v27 = vld [vmem:[%s1112_s1 + $0xb0] sm:$0xff]   ;;  %s165_s25 = scalar_lea.vmem %s1111_s0, %s874_s14  ;;  %v916_v36 = vld [vmem:[%s1112_s1 + $0xb8] sm:$0xff]   ;;  %v923_v61 = vld [vmem:[%s1112_s1 + $0x128] sm:$0xff]  }
  0x11   : > { %828 = vmatpush3.bf16.msra.mxu1 %v896_v11  ;;  %v172_v31 = vld [vmem:[%s165_s25] sm:$0xff]   ;;  %v174_v32 = vld [vmem:[%s165_s25 + $0x8] sm:$0x3]  ;;  %v920_v58 = vld [vmem:[%s1112_s1 + $0x110] sm:$0xff]   ;;  %s793_s25 = sshll.u32 %s1116_s13, 3 }
  0x12   : > { %829 = vmatprep.subr.bf16.mxu1 %v899_v14  ;;  %v175_v33 = vunpack.c.l.bf16 %v172_v31  ;;  %v176_v34 = vunpack.c.h.bf16 %v172_v31  ;;  %v177_v35 = vunpack.c.l.bf16 %v174_v32  ;;  %v921_v59 = vld [vmem:[%s1112_s1 + $0x118] sm:$0xff]   ;;  %v924_v62 = vld [vmem:[%s1112_s1 + $0x130] sm:$0xff]   ;;  %v748_v7 = vld [vmem:[%s1113_s2] ss:$0 sm:$0xff]  ;;  %s170_s28 = scalar_lea.vmem %s1114_s3, %s793_s25 }
  0x13   : > { %808 = vmatpush3.bf16.msra.mxu0 %v898_v13  ;;  %v925_v2 = vld [vmem:[%s1112_s1 + $0x138] sm:$0xff]  }
  0x14   : > { %809 = vmatprep.subr.bf16.mxu0 %v901_v16  ;;  %v182_v38 = vrot.slane %v175_v33, 1  ;;  %v183_v39 = vrot.slane %v176_v34, 1  ;;  %v185_v40 = vrot.slane %v177_v35, 1  ;;  %v198_v41 = vrot.slane %v175_v33, 3 }
  0x15   : > { %830 = vmatpush3.bf16.msra.mxu1 %v900_v15  ;;  %v199_v42 = vrot.slane %v176_v34, 3  ;;  %v201_v43 = vrot.slane %v177_v35, 3  ;;  %v190_v44 = vrot.slane %v175_v33, 2  ;;  %v191_v45 = vrot.slane %v176_v34, 2 }
  0x16   : > { %831 = vmatprep.subr.bf16.mxu1 %v903_v18  ;;  %v184_v46 = vsel %vm181_vm0, %v182_v38, %v183_v39  ;;  %v186_v47 = vsel %vm181_vm0, %v183_v39, %v185_v40  ;;  %v193_v49 = vrot.slane %v177_v35, 2  ;;  %v206_v63 = vrot.slane %v175_v33, 4 }
  0x17   : > { %810 = vmatpush3.bf16.msra.mxu0 %v902_v17  ;;  %v214_v50 = vpack.c.bf16 %v186_v47, %v184_v46  ;;  %v200_v51 = vsel %vm197_vm1, %v198_v41, %v199_v42  ;;  %v202_v52 = vsel %vm197_vm1, %v199_v42, %v201_v43  ;;  %v192_v53 = vsel %vm189_vm2, %v190_v44, %v191_v45 }
  0x18   : > { %811 = vmatprep.subr.bf16.mxu0 %v905_v20  ;;  %v216_v54 = vpack.c.bf16 %v202_v52, %v200_v51  ;;  %v194_v55 = vsel %vm189_vm2, %v191_v45, %v193_v49  ;;  %v207_v0 = vrot.slane %v176_v34, 4  ;;  %v209_v1 = vrot.slane %v177_v35, 4 }
  0x19   : > { %832 = vmatpush3.bf16.msra.mxu1 %v904_v19  ;;  %577 = vmatprep.mubr.bf16.mxu0 %v214_v50  ;;  %v215_v56 = vpack.c.bf16 %v194_v55, %v192_v53 }
  0x1a   : > { %833 = vmatprep.subr.bf16.mxu1 %v907_v22  ;;  %618 = vmatprep.mubr.bf16.mxu1 %v216_v54  ;;  %v208_v3 = vsel %vm205_vm4, %v206_v63, %v207_v0  ;;  %v210_v4 = vsel %vm205_vm4, %v207_v0, %v209_v1 }
  0x1b   : > { %812 = vmatpush3.bf16.msra.mxu0 %v906_v21  ;;  %v217_v5 = vpack.c.bf16 %v210_v4, %v208_v3 }
  0x1c   : > { %813 = vmatprep.subr.bf16.mxu0 %v909_v24 }
  0x1d   : > { %834 = vmatpush3.bf16.msra.mxu1 %v908_v23 }
  0x1e   : > { %835 = vmatprep.subr.bf16.mxu1 %v911_v26 }
  0x1f   : > { %814 = vmatpush3.bf16.msra.mxu0 %v910_v25 }
  0x20   : > { %815 = vmatprep.subr.bf16.mxu0 %v913_v28 }
  0x21   : > { %836 = vmatpush3.bf16.msra.mxu1 %v912_v27 }
  0x22   : > { %837 = vmatprep.subr.bf16.mxu1 %v915_v30 }
  0x23   : > { %816 = vmatpush3.bf16.msra.mxu0 %v914_v29 }
  0x24   : > { %854 = vmatprep.subr.bf16.mxu0 %v935_v37 }
  0x25   : > { %838 = vmatpush3.bf16.msra.mxu1 %v916_v36 }
  0x26   : > { %578 = vmatmul.mubr.bf16.vlgmr.msra.gmra.mrb[0].mxu0 %v172_v31 }
  0x27   : > { %855 = vmatpush3.bf16.msra.mxu0 %v918_v48  ;;  %870 = vmatprep.mubr.msk.bf16.mxu0 %vm936_vm3, %v935_v37 }
  0x28   : > { %619 = vmatmul.mubr.bf16.vlgmr.msra.gmra.mrb[0].mxu1 %v215_v56  ;;  %856 = vmatprep.subr.bf16.mxu0 %v935_v37 }
  0x2b   : > { %857 = vmatpush3.bf16.msra.mxu0 %v919_v57 }
  0x2c   : > { %858 = vmatprep.subr.bf16.mxu0 %v935_v37 }
  0x2f   : > { %859 = vmatpush3.bf16.msra.mxu0 %v920_v58 }
  0x30   : > { %860 = vmatprep.subr.bf16.mxu0 %v935_v37 }
  0x33   : > { %861 = vmatpush3.bf16.msra.mxu0 %v921_v59 }
  0x34   : > { %862 = vmatprep.subr.bf16.mxu0 %v935_v37 }
  0x37   : > { %863 = vmatpush3.bf16.msra.mxu0 %v922_v60 }
  0x38   : > { %864 = vmatprep.subr.bf16.mxu0 %v935_v37 }
  0x3b   : > { %865 = vmatpush3.bf16.msra.mxu0 %v923_v61 }
  0x3c   : > { %866 = vmatprep.subr.bf16.mxu0 %v935_v37 }
  0x3f   : > { %867 = vmatpush3.bf16.msra.mxu0 %v924_v62 }
  0x40   : > { %868 = vmatprep.subr.bf16.mxu0 %v935_v37 }
  0x43   : > { %869 = vmatpush3.bf16.msra.mxu0 %v925_v2 }
  0x46   : > { %871 = vmatmul.mubr.bf16.vlgmr.msra.gmra.mrb[4].mxu0 %v217_v5 }
  0xf9   : > { %v817_v6 = vpop.f32.mrb[0].mxu0 }
  0xfa   : > { %v818_v8 = vpop.f32.mrb[1].mxu0 }
  0xfb   : > { %v839_v9 = vpop.f32.mrb[0].mxu1  ;;  %v819_v10 = vadd.f32 %v818_v8, %v817_v6  ;;  %v820_v11 = vpop.f32.mrb[2].mxu0 }
  0xfc   : > { %v840_v12 = vpop.f32.mrb[1].mxu1  ;;  %v821_v13 = vpop.f32.mrb[3].mxu0 }
  0xfd   : > { %v841_v14 = vadd.f32 %v840_v12, %v839_v9  ;;  %v842_v15 = vpop.f32.mrb[2].mxu1  ;;  %v580_v16 = vadd.f32 %v819_v10, %v748_v7  ;;  %v822_v17 = vadd.f32 %v821_v13, %v820_v11 }
  0xfe   : > { %v843_v18 = vpop.f32.mrb[3].mxu1 }
  0xff   : > { %v844_v19 = vadd.f32 %v843_v18, %v842_v15  ;;  %v583_v20 = vadd.f32 %v822_v17, %v748_v7  ;;  %v621_v21 = vadd.f32 %v841_v14, %v580_v16 }
 0x101   : > { %v624_v22 = vadd.f32 %v844_v19, %v583_v20 }
 0x119   : > { %v661_v23 = vpop.f32.mrb[4].mxu0 }
 0x11a   : > { %v662_v24 = vadd.f32 %v661_v23, %v621_v21  ;;  %v872_v25 = vpop.f32.mrb[5].mxu0 }
 0x11b   : > { %v664_v26 = vpop.f32.mrb[6].mxu0 }
 0x11c   : > { %v670_v27 = vmul.f32 0.2, %v662_v24  ;;  %v665_v28 = vadd.f32 %v664_v26, %v624_v22  ;;  %v873_v29 = vpop.f32.mrb[7].mxu0  ;;  %vm668_vm5 = vcmp.ge.f32.partialorder %v662_v24, 0.0 }
 0x11e   : > { %vm669_vm6 = vcmp.ge.f32.partialorder %v665_v28, 0.0  ;;  %v671_v30 = vmul.f32 0.2, %v665_v28  ;;  %v672_v31 = vsel %vm668_vm5, %v662_v24, %v670_v27 }
 0x120   : > { %v673_v32 = vsel %vm669_vm6, %v665_v28, %v671_v30 }
 0x121   : > { %v799_v33 = vpack.c.bf16 %v673_v32, %v672_v31 }
 0x123   : > { %800 = vst [vmem:[%s170_s28] sm:$0xff] %v799_v33  }
 0x124 PF: > { %s13_s12 = sadd.s32 1, %s933_s12  }
 0x125   : > { %p10_p4 = scmp.ge.s32.totalorder %s13_s12, 4  }
 0x127   :  { %12 = sbr.rel (!%p10_p4) target bundleno = 1 (0x1), region = 62 }

// kernel: encoder_forward.21
= control target key start
LH: loop header
LB: loop body
LE: loop exit
PB: predicated region body
PF: predicated region fallthrough
CT: control target
= control target key end

     0   :  { %s734_s18 = smov 0   ;;  %s821_s0 = inlined_call_operand.vmem [shape: bf16[2,16,128], index: 0, kind: input, shape index: {}]   ;;  %s822_s1 = inlined_call_operand.vmem [shape: bf16[128,128], index: 1, kind: input, shape index: {}]   ;;  %s823_s2 = inlined_call_operand.vmem [shape: f32[1,128], index: 2, kind: input, shape index: {}]   ;;  %s824_s3 = inlined_call_operand.vmem [shape: bf16[128,128], index: 3, kind: input, shape index: {}]   ;;  %s825_s4 = inlined_call_operand.vmem [shape: f32[1,128], index: 4, kind: input, shape index: {}]   ;;  %s826_s5 = inlined_call_operand.vmem [shape: bf16[2,16,128], index: 5, kind: output, shape index: {}]  }
   0x1 LB: > { %s565_s19 = sadd.s32 4294967295, %s700_s18   ;;  %p569_p0 = scmp.ge.s32.totalorder %s700_s18, 1  ;;  %s700_s18 = sphi %s734_s18, %s15_s18  }
   0x2   : > { %p187_p1 = scmp.lt.s32.totalorder %s700_s18, 3 }
   0x4   : > { %p188_p2 = pnand %p569_p0, %p187_p1 }
   0x5   : > { %v674_v0 = vld [vmem:[%s822_s1] sm:$0xff] (!%p188_p2)   ;;  %v702_v1 = vmov (!%p188_p2), 0.0   ;;  %v675_v2 = vld [vmem:[%s822_s1 + $0x8] sm:$0xff] (!%p188_p2)   ;;  %vm703_vm0 = vmmov (!%p188_p2), 0   ;;  %v676_v3 = vld [vmem:[%s822_s1 + $0x10] sm:$0xff] (!%p188_p2)   ;;  %p215_p3 = scmp.lt.s32.totalorder (!%p188_p2), %s565_s19, 1 }
   0x6   : > { %191 = sbr.rel (%p188_p2) target bundleno = 534 (0x216), region = 40  ;;  %624 = vmatprep.subr.bf16.mxu0 (!%p188_p2), %v702_v1  ;;  %644 = vmatprep.subr.bf16.mxu1 (!%p188_p2), %v702_v1  ;;  %v683_v4 = vld [vmem:[%s824_s3] sm:$0xff] (!%p188_p2)   ;;  %v677_v5 = vld [vmem:[%s822_s1 + $0x18] sm:$0xff] (!%p188_p2)   ;;  %v684_v6 = vld [vmem:[%s824_s3 + $0x8] sm:$0xff] (!%p188_p2)  }
   0x7   : > { %625 = vmatpush3.bf16.msra.mxu0 (!%p188_p2), %v674_v0  ;;  %640 = vmatprep.mubr.msk.bf16.mxu0 (!%p188_p2), %vm703_vm0, %v702_v1  ;;  %v678_v7 = vld [vmem:[%s822_s1 + $0x20] sm:$0xff] (!%p188_p2)   ;;  %v685_v8 = vld [vmem:[%s824_s3 + $0x10] sm:$0xff] (!%p188_p2)   ;;  %v679_v9 = vld [vmem:[%s822_s1 + $0x28] sm:$0xff] (!%p188_p2)  }
   0x8   : > { %626 = vmatprep.subr.bf16.mxu0 (!%p188_p2), %v702_v1  ;;  %660 = vmatprep.mubr.msk.bf16.mxu1 (!%p188_p2), %vm703_vm0, %v702_v1  ;;  %v686_v10 = vld [vmem:[%s824_s3 + $0x18] sm:$0xff] (!%p188_p2)   ;;  %v680_v11 = vld [vmem:[%s822_s1 + $0x30] sm:$0xff] (!%p188_p2)   ;;  %v687_v12 = vld [vmem:[%s824_s3 + $0x20] sm:$0xff] (!%p188_p2)  }
   0x9   : > { %645 = vmatpush3.bf16.msra.mxu1 (!%p188_p2), %v683_v4  ;;  %v681_v13 = vld [vmem:[%s822_s1 + $0x38] sm:$0xff] (!%p188_p2)   ;;  %v688_v15 = vld [vmem:[%s824_s3 + $0x28] sm:$0xff] (!%p188_p2)   ;;  %v689_v16 = vld [vmem:[%s824_s3 + $0x30] sm:$0xff] (!%p188_p2)  }
   0xa   : > { %646 = vmatprep.subr.bf16.mxu1 (!%p188_p2), %v702_v1  ;;  %v690_v17 = vld [vmem:[%s824_s3 + $0x38] sm:$0xff] (!%p188_p2)   ;;  %v574_v18 = vld [vmem:[%s823_s2] ss:$0 sm:$0xff] (!%p188_p2) }
   0xb   : > { %627 = vmatpush3.bf16.msra.mxu0 (!%p188_p2), %v675_v2  ;;  %v584_v30 = vld [vmem:[%s825_s4] ss:$0 sm:$0xff] (!%p188_p2) }
   0xc   : > { %628 = vmatprep.subr.bf16.mxu0 (!%p188_p2), %v702_v1 }
   0xd   : > { %647 = vmatpush3.bf16.msra.mxu1 %v684_v6  ;;  %s828_s19 = smov (!%p215_p3, %s565_s19), 1 }
   0xe   : > { %648 = vmatprep.subr.bf16.mxu1 %v702_v1  ;;  %s597_s15 = sshll.u32 %s828_s19, 3 }
   0xf   : > { %629 = vmatpush3.bf16.msra.mxu0 %v676_v3  ;;  %s219_s22 = scalar_lea.vmem %s821_s0, %s597_s15  ;;  %s224_s14 = scalar_lea.vmem %s826_s5, %s597_s15 }
  0x10   : > { %630 = vmatprep.subr.bf16.mxu0 %v702_v1  ;;  %v793_v14 = vld [vmem:[%s219_s22] sm:$0xff]  }
  0x11   : > { %649 = vmatpush3.bf16.msra.mxu1 %v685_v8  ;;  %v496_v62 = vunpack.c.l.bf16 %v793_v14  ;;  %v497_v63 = vunpack.c.h.bf16 %v793_v14 }
  0x12   : > { %650 = vmatprep.subr.bf16.mxu1 %v702_v1 }
  0x13   : > { %631 = vmatpush3.bf16.msra.mxu0 %v677_v5 }
  0x14   : > { %632 = vmatprep.subr.bf16.mxu0 %v702_v1 }
  0x15   : > { %651 = vmatpush3.bf16.msra.mxu1 %v686_v10 }
  0x16   : > { %652 = vmatprep.subr.bf16.mxu1 %v702_v1 }
  0x17   : > { %633 = vmatpush3.bf16.msra.mxu0 %v678_v7 }
  0x18   : > { %634 = vmatprep.subr.bf16.mxu0 %v702_v1 }
  0x19   : > { %653 = vmatpush3.bf16.msra.mxu1 %v687_v12 }
  0x1a   : > { %654 = vmatprep.subr.bf16.mxu1 %v702_v1 }
  0x1b   : > { %635 = vmatpush3.bf16.msra.mxu0 %v679_v9 }
  0x1c   : > { %636 = vmatprep.subr.bf16.mxu0 %v702_v1 }
  0x1d   : > { %655 = vmatpush3.bf16.msra.mxu1 %v688_v15 }
  0x1e   : > { %656 = vmatprep.subr.bf16.mxu1 %v702_v1 }
  0x1f   : > { %637 = vmatpush3.bf16.msra.mxu0 %v680_v11 }
  0x20   : > { %638 = vmatprep.subr.bf16.mxu0 %v702_v1 }
  0x21   : > { %657 = vmatpush3.bf16.msra.mxu1 %v689_v16 }
  0x22   : > { %658 = vmatprep.subr.bf16.mxu1 %v702_v1 }
  0x23   : > { %639 = vmatpush3.bf16.msra.mxu0 %v681_v13 }
  0x25   : > { %659 = vmatpush3.bf16.msra.mxu1 %v690_v17 }
  0x26   : > { %641 = vmatmul.mubr.bf16.vlgmr.msra.gmra.mrb[0].mxu0 %v793_v14 }
  0xf9   : > { %v339_v19 = vpop.f32.mrb[0].mxu0 }
  0xfa   : > { %v340_v20 = vadd.f32 %v574_v18, %v339_v19  ;;  %v642_v21 = vpop.f32.mrb[1].mxu0 }
  0xfb   : > { %v342_v22 = vpop.f32.mrb[2].mxu0 }
  0xfc   : > { %v348_v23 = vmul.f32 0.2, %v340_v20  ;;  %v343_v24 = vadd.f32 %v574_v18, %v342_v22  ;;  %v643_v25 = vpop.f32.mrb[3].mxu0  ;;  %vm346_vm1 = vcmp.ge.f32.partialorder %v340_v20, 0.0 }
  0xfe   : > { %vm347_vm2 = vcmp.ge.f32.partialorder %v343_v24, 0.0  ;;  %v349_v26 = vmul.f32 0.2, %v343_v24  ;;  %v350_v27 = vsel %vm346_vm1, %v340_v20, %v348_v23 }
 0x100   : > { %v351_v28 = vsel %vm347_vm2, %v343_v24, %v349_v26 }
 0x101   : > { %v352_v29 = vpack.c.bf16 %v351_v28, %v350_v27 }
 0x103   : > { %661 = vmatmul.mubr.bf16.vlgmr.msra.gmra.mrb[0].mxu1 %v352_v29 }
 0x1d6   : > { %v458_v31 = vpop.f32.mrb[0].mxu1 }
 0x1d7   : > { %v459_v32 = vadd.f32 %v584_v30, %v458_v31  ;;  %v662_v33 = vpop.f32.mrb[1].mxu1 }
 0x1d8   : > { %v461_v34 = vpop.f32.mrb[2].mxu1 }
 0x1d9   : > { %v467_v35 = vmul.f32 0.2, %v459_v32  ;;  %v462_v36 = vadd.f32 %v584_v30, %v461_v34  ;;  %v663_v37 = vpop.f32.mrb[3].mxu1  ;;  %vm465_vm3 = vcmp.ge.f32.partialorder %v459_v32, 0.0 }
 0x1db   : > { %vm466_vm4 = vcmp.ge.f32.partialorder %v462_v36, 0.0  ;;  %v468_v38 = vmul.f32 0.2, %v462_v36  ;;  %v469_v39 = vsel %vm465_vm3, %v459_v32, %v467_v35 }
 0x1dd   : > { %v470_v40 = vsel %vm466_vm4, %v462_v36, %v468_v38 }
 0x1de   : > { %v471_v41 = vadd.f32 %v470_v40, %v469_v39 }
 0x1e0   : > { %v472_v42 = vrot.slane %v471_v41, 4 }
 0x1e2   : > { %v473_v43 = vadd.f32 %v472_v42, %v471_v41 }
 0x1e4   : > { %v474_v44 = vrot.slane %v473_v43, 2 }
 0x1e6   : > { %v475_v45 = vadd.f32 %v474_v44, %v473_v43 }
 0x1e8   : > { %v476_v46 = vrot.slane %v475_v45, 1 }
 0x1ea   : > { %v477_v47 = vadd.f32 %v476_v46, %v475_v45 }
 0x1ec   : > { %v479_v48 = vmul.f32 0.0625, %v477_v47 }
 0x1ee   : > { %v480_v49 = vsub.f32 %v469_v39, %v479_v48  ;;  %v481_v50 = vsub.f32 %v470_v40, %v479_v48 }
 0x1f0   : > { %v482_v51 = vmul.f32 %v480_v49, %v480_v49  ;;  %v483_v52 = vmul.f32 %v481_v50, %v481_v50 }
 0x1f2   : > { %v484_v53 = vadd.f32 %v483_v52, %v482_v51 }
 0x1f4   : > { %v485_v54 = vrot.slane %v484_v53, 4 }
 0x1f6   : > { %v486_v55 = vadd.f32 %v485_v54, %v484_v53 }
 0x1f8   : > { %v487_v56 = vrot.slane %v486_v55, 2 }
 0x1fa   : > { %v488_v57 = vadd.f32 %v487_v56, %v486_v55 }
 0x1fc   : > { %v489_v58 = vrot.slane %v488_v57, 1 }
 0x1fe   : > { %v490_v59 = vadd.f32 %v489_v58, %v488_v57 }
 0x200   : > { %v491_v60 = vmul.f32 0.0625, %v490_v59 }
 0x202   : > { %v492_v61 = vadd.f32 1e-05, %v491_v60 }
 0x204   : > { %692 = vrsqrt.f32 %v492_v61 }
 0x20e   : > { %v693_v0 = vpop.eup %692 }
 0x20f   : > { %v494_v1 = vmul.f32 %v693_v0, %v480_v49  ;;  %v495_v2 = vmul.f32 %v693_v0, %v481_v50 }
 0x211   : > { %v498_v3 = vadd.f32 %v496_v62, %v494_v1  ;;  %v499_v4 = vadd.f32 %v497_v63, %v495_v2 }
 0x213   : > { %v604_v5 = vpack.c.bf16 %v499_v4, %v498_v3 }
 0x215   : > { %605 = vst [vmem:[%s224_s14] sm:$0xff] %v604_v5  }
 0x216 PF: > { %s15_s18 = sadd.s32 1, %s700_s18  }
 0x217   : > { %p12_p4 = scmp.ge.s32.totalorder %s15_s18, 4  }
 0x219   :  { %14 = sbr.rel (!%p12_p4) target bundleno = 1 (0x1), region = 70 }

// kernel: encoder_forward.23
= control target key start
LH: loop header
LB: loop body
LE: loop exit
PB: predicated region body
PF: predicated region fallthrough
CT: control target
= control target key end

     0   :  { %s948_s9 = smov 0   ;;  %s1190_s0 = inlined_call_operand.vmem [shape: bf16[2,16,128], index: 0, kind: input, shape index: {}]   ;;  %s1191_s1 = inlined_call_operand.vmem [shape: bf16[128,1024], index: 1, kind: input, shape index: {}]   ;;  %s1192_s2 = inlined_call_operand.vmem [shape: bf16[2,16,1024], index: 2, kind: output, shape index: {}]  }
   0x1 LB: > { %s820_s10 = sadd.s32 4294967295, %s930_s9   ;;  %p824_p0 = scmp.ge.s32.totalorder %s930_s9, 1  ;;  %s930_s9 = sphi %s948_s9, %s12_s9  }
   0x2   : > { %p112_p1 = scmp.lt.s32.totalorder %s930_s9, 3 }
   0x4   : > { %p113_p2 = pnand %p824_p0, %p112_p1 }
   0x5   : > { %v147_v0 = vld [vmem:[%s1191_s1] sm:$0xff] (!%p113_p2)  ;;  %v148_v2 = vld [vmem:[%s1191_s1 + $0x8] sm:$0xff] (!%p113_p2)  ;;  %p965_p3 = scmp.lt.s32.totalorder (!%p113_p2), %s820_s10, 1  ;;  %v932_v8 = vmov (!%p113_p2), 0   ;;  %v149_v63 = vld [vmem:[%s1191_s1 + $0x10] sm:$0xff] (!%p113_p2) }
   0x6   : > { %116 = sbr.rel (%p113_p2) target bundleno = 291 (0x123), region = 28  ;;  %v151_v1 = vld [vmem:[%s1191_s1 + $0x20] sm:$0xff] (!%p113_p2)  ;;  %v152_v4 = vld [vmem:[%s1191_s1 + $0x28] sm:$0xff] (!%p113_p2)  ;;  %569 = vmatprep.mubr.bf16.mxu0 (!%p113_p2), %v932_v8  ;;  %612 = vmatprep.mubr.bf16.mxu1 (!%p113_p2), %v932_v8 }
   0x7   : > { %v831_v3 = vcombine.high (!%p113_p2), %v147_v0, %v151_v1  ;;  %v830_v5 = vcombine.low (!%p113_p2), %v147_v0, %v151_v1  ;;  %v155_v6 = vld [vmem:[%s1191_s1 + $0x40] sm:$0xff] (!%p113_p2)  ;;  %v833_v9 = vcombine.high (!%p113_p2), %v148_v2, %v152_v4  ;;  %v832_v10 = vcombine.low (!%p113_p2), %v148_v2, %v152_v4  ;;  %v156_v12 = vld [vmem:[%s1191_s1 + $0x48] sm:$0xff] (!%p113_p2)  ;;  %v153_v0 = vld [vmem:[%s1191_s1 + $0x30] sm:$0xff] (!%p113_p2) }
   0x8   : > { %v159_v7 = vld [vmem:[%s1191_s1 + $0x60] sm:$0xff] (!%p113_p2)  ;;  %v160_v13 = vld [vmem:[%s1191_s1 + $0x68] sm:$0xff] (!%p113_p2)  ;;  %v150_v1 = vld [vmem:[%s1191_s1 + $0x18] sm:$0xff] (!%p113_p2) }
   0x9   : > { %v839_v11 = vcombine.high (!%p113_p2), %v155_v6, %v159_v7  ;;  %v163_v14 = vld [vmem:[%s1191_s1 + $0x80] sm:$0xff] (!%p113_p2)  ;;  %537 = vmatprep.subr.bf16.mxu0 (!%p113_p2), %v831_v3  ;;  %v841_v15 = vcombine.high (!%p113_p2), %v156_v12, %v160_v13  ;;  %v164_v17 = vld [vmem:[%s1191_s1 + $0x88] sm:$0xff] (!%p113_p2)  ;;  %580 = vmatprep.subr.bf16.mxu1 (!%p113_p2), %v833_v9  ;;  %v838_v19 = vcombine.low (!%p113_p2), %v155_v6, %v159_v7  ;;  %v154_v2 = vld [vmem:[%s1191_s1 + $0x38] sm:$0xff] (!%p113_p2) }
   0xa   : > { %v167_v16 = vld [vmem:[%s1191_s1 + $0xa0] sm:$0xff] (!%p113_p2)  ;;  %v168_v18 = vld [vmem:[%s1191_s1 + $0xa8] sm:$0xff] (!%p113_p2)  ;;  %538 = vmatpush1.bf16.msra.mxu0 (!%p113_p2), %v830_v5  ;;  %581 = vmatpush1.bf16.msra.mxu1 (!%p113_p2), %v832_v10  ;;  %v840_v20 = vcombine.low (!%p113_p2), %v156_v12, %v160_v13  ;;  %v835_v5 = vcombine.high (!%p113_p2), %v149_v63, %v153_v0  ;;  %v837_v6 = vcombine.high (!%p113_p2), %v150_v1, %v154_v2  ;;  %v157_v7 = vld [vmem:[%s1191_s1 + $0x50] sm:$0xff] (!%p113_p2) }
   0xb   : > { %539 = vmatprep.subr.bf16.mxu0 (!%p113_p2), %v839_v11  ;;  %v847_v21 = vcombine.high (!%p113_p2), %v163_v14, %v167_v16  ;;  %582 = vmatprep.subr.bf16.mxu1 (!%p113_p2), %v841_v15  ;;  %v849_v22 = vcombine.high (!%p113_p2), %v164_v17, %v168_v18  ;;  %v171_v23 = vld [vmem:[%s1191_s1 + $0xc0] sm:$0xff] (!%p113_p2)  ;;  %v172_v25 = vld [vmem:[%s1191_s1 + $0xc8] sm:$0xff] (!%p113_p2)  ;;  %v846_v27 = vcombine.low (!%p113_p2), %v163_v14, %v167_v16  ;;  %v161_v9 = vld [vmem:[%s1191_s1 + $0x70] sm:$0xff] (!%p113_p2) }
   0xc   : > { %v175_v24 = vld [vmem:[%s1191_s1 + $0xe0] sm:$0xff] (!%p113_p2)  ;;  %v176_v26 = vld [vmem:[%s1191_s1 + $0xe8] sm:$0xff] (!%p113_p2)  ;;  %v848_v28 = vcombine.low (!%p113_p2), %v164_v17, %v168_v18  ;;  %v158_v11 = vld [vmem:[%s1191_s1 + $0x58] sm:$0xff] (!%p113_p2)  ;;  %v834_v13 = vcombine.low (!%p113_p2), %v149_v63, %v153_v0  ;;  %v836_v14 = vcombine.low (!%p113_p2), %v150_v1, %v154_v2  ;;  %v843_v15 = vcombine.high (!%p113_p2), %v157_v7, %v161_v9 }
   0xd   : > { %s1195_s10 = smov (!%p965_p3, %s820_s10), 1  ;;  %v855_v29 = vcombine.high %v171_v23, %v175_v24  ;;  %v857_v30 = vcombine.high %v172_v25, %v176_v26  ;;  %v179_v31 = vld [vmem:[%s1191_s1 + $0x100] sm:$0xff]  ;;  %v180_v33 = vld [vmem:[%s1191_s1 + $0x108] sm:$0xff]  ;;  %v854_v35 = vcombine.low %v171_v23, %v175_v24  ;;  %v856_v36 = vcombine.low %v172_v25, %v176_v26  ;;  %v162_v12 = vld [vmem:[%s1191_s1 + $0x78] sm:$0xff] }
   0xe   : > { %s904_s14 = sshll.u32 %s1195_s10, 3  ;;  %540 = vmatpush1.bf16.msra.mxu0 %v838_v19  ;;  %583 = vmatpush1.bf16.msra.mxu1 %v840_v20  ;;  %v183_v32 = vld [vmem:[%s1191_s1 + $0x120] sm:$0xff]  ;;  %v184_v34 = vld [vmem:[%s1191_s1 + $0x128] sm:$0xff]  ;;  %v845_v16 = vcombine.high %v158_v11, %v162_v12  ;;  %v165_v17 = vld [vmem:[%s1191_s1 + $0x90] sm:$0xff]  ;;  %s905_s15 = sshll.u32 %s1195_s10, 6 }
   0xf   : > { %541 = vmatprep.subr.bf16.mxu0 %v847_v21  ;;  %s1018_s21 = scalar_lea.vmem %s1190_s0, %s904_s14  ;;  %584 = vmatprep.subr.bf16.mxu1 %v849_v22  ;;  %v863_v37 = vcombine.high %v179_v31, %v183_v32  ;;  %v865_v38 = vcombine.high %v180_v33, %v184_v34  ;;  %v187_v39 = vld [vmem:[%s1191_s1 + $0x140] sm:$0xff]  ;;  %v188_v41 = vld [vmem:[%s1191_s1 + $0x148] sm:$0xff]  ;;  %v862_v43 = vcombine.low %v179_v31, %v183_v32  ;;  %v169_v18 = vld [vmem:[%s1191_s1 + $0xb0] sm:$0xff]  ;;  %s1177_s18 = scalar_lea.vmem %s1192_s2, %s905_s15 }
  0x10   : > { %v191_v40 = vld [vmem:[%s1191_s1 + $0x160] sm:$0xff]  ;;  %v192_v42 = vld [vmem:[%s1191_s1 + $0x168] sm:$0xff]  ;;  %v864_v44 = vcombine.low %v180_v33, %v184_v34  ;;  %v166_v19 = vld [vmem:[%s1191_s1 + $0x98] sm:$0xff]  ;;  %v842_v21 = vcombine.low %v157_v7, %v161_v9  ;;  %v844_v22 = vcombine.low %v158_v11, %v162_v12  ;;  %v851_v23 = vcombine.high %v165_v17, %v169_v18 }
  0x11   : > { %v871_v45 = vcombine.high %v187_v39, %v191_v40  ;;  %v873_v46 = vcombine.high %v188_v41, %v192_v42  ;;  %v195_v47 = vld [vmem:[%s1191_s1 + $0x180] sm:$0xff]  ;;  %v196_v49 = vld [vmem:[%s1191_s1 + $0x188] sm:$0xff]  ;;  %v870_v51 = vcombine.low %v187_v39, %v191_v40  ;;  %v872_v52 = vcombine.low %v188_v41, %v192_v42  ;;  %v170_v20 = vld [vmem:[%s1191_s1 + $0xb8] sm:$0xff] }
  0x12   : > { %542 = vmatpush1.bf16.msra.mxu0 %v846_v27  ;;  %585 = vmatpush1.bf16.msra.mxu1 %v848_v28  ;;  %v199_v48 = vld [vmem:[%s1191_s1 + $0x1a0] sm:$0xff]  ;;  %v200_v50 = vld [vmem:[%s1191_s1 + $0x1a8] sm:$0xff]  ;;  %v853_v24 = vcombine.high %v166_v19, %v170_v20  ;;  %v173_v25 = vld [vmem:[%s1191_s1 + $0xd0] sm:$0xff] }
  0x13   : > { %543 = vmatprep.subr.bf16.mxu0 %v855_v29  ;;  %586 = vmatprep.subr.bf16.mxu1 %v857_v30  ;;  %v879_v53 = vcombine.high %v195_v47, %v199_v48  ;;  %v881_v54 = vcombine.high %v196_v49, %v200_v50  ;;  %v203_v55 = vld [vmem:[%s1191_s1 + $0x1c0] sm:$0xff]  ;;  %v204_v57 = vld [vmem:[%s1191_s1 + $0x1c8] sm:$0xff]  ;;  %v878_v59 = vcombine.low %v195_v47, %v199_v48  ;;  %v177_v26 = vld [vmem:[%s1191_s1 + $0xf0] sm:$0xff] }
  0x14   : > { %v207_v56 = vld [vmem:[%s1191_s1 + $0x1e0] sm:$0xff]  ;;  %v208_v58 = vld [vmem:[%s1191_s1 + $0x1e8] sm:$0xff]  ;;  %v880_v60 = vcombine.low %v196_v49, %v200_v50  ;;  %v174_v27 = vld [vmem:[%s1191_s1 + $0xd8] sm:$0xff]  ;;  %v850_v29 = vcombine.low %v165_v17, %v169_v18  ;;  %v852_v30 = vcombine.low %v166_v19, %v170_v20  ;;  %v859_v31 = vcombine.high %v173_v25, %v177_v26 }
  0x15   : > { %v887_v61 = vcombine.high %v203_v55, %v207_v56  ;;  %v889_v62 = vcombine.high %v204_v57, %v208_v58  ;;  %v886_v3 = vcombine.low %v203_v55, %v207_v56  ;;  %v888_v4 = vcombine.low %v204_v57, %v208_v58  ;;  %v1087_v10 = vld [vmem:[%s1018_s21] sm:$0xff]   ;;  %v178_v28 = vld [vmem:[%s1191_s1 + $0xf8] sm:$0xff]  ;;  %v181_v33 = vld [vmem:[%s1191_s1 + $0x110] sm:$0xff] }
  0x16   : > { %544 = vmatpush1.bf16.msra.mxu0 %v854_v35  ;;  %587 = vmatpush1.bf16.msra.mxu1 %v856_v36  ;;  %v861_v32 = vcombine.high %v174_v27, %v178_v28  ;;  %v185_v34 = vld [vmem:[%s1191_s1 + $0x130] sm:$0xff]  ;;  %v186_v35 = vld [vmem:[%s1191_s1 + $0x138] sm:$0xff]  ;;  %v858_v36 = vcombine.low %v173_v25, %v177_v26 }
  0x17   : > { %545 = vmatprep.subr.bf16.mxu0 %v863_v37  ;;  %588 = vmatprep.subr.bf16.mxu1 %v865_v38  ;;  %v860_v37 = vcombine.low %v174_v27, %v178_v28  ;;  %v867_v38 = vcombine.high %v181_v33, %v185_v34  ;;  %v189_v40 = vld [vmem:[%s1191_s1 + $0x150] sm:$0xff]  ;;  %v190_v42 = vld [vmem:[%s1191_s1 + $0x158] sm:$0xff] }
  0x18   : > { %v193_v41 = vld [vmem:[%s1191_s1 + $0x170] sm:$0xff]  ;;  %v198_v50 = vld [vmem:[%s1191_s1 + $0x198] sm:$0xff] }
  0x19   : > { %v197_v48 = vld [vmem:[%s1191_s1 + $0x190] sm:$0xff]  ;;  %v206_v58 = vld [vmem:[%s1191_s1 + $0x1d8] sm:$0xff] }
  0x1a   : > { %546 = vmatpush1.bf16.msra.mxu0 %v862_v43  ;;  %589 = vmatpush1.bf16.msra.mxu1 %v864_v44  ;;  %v194_v43 = vld [vmem:[%s1191_s1 + $0x178] sm:$0xff]  ;;  %v866_v44 = vcombine.low %v181_v33, %v185_v34  ;;  %v201_v49 = vld [vmem:[%s1191_s1 + $0x1b0] sm:$0xff] }
  0x1b   : > { %547 = vmatprep.subr.bf16.mxu0 %v871_v45  ;;  %590 = vmatprep.subr.bf16.mxu1 %v873_v46  ;;  %v875_v46 = vcombine.high %v189_v40, %v193_v41  ;;  %v877_v47 = vcombine.high %v190_v42, %v194_v43  ;;  %v205_v56 = vld [vmem:[%s1191_s1 + $0x1d0] sm:$0xff] }
  0x1c   : > { %v209_v57 = vld [vmem:[%s1191_s1 + $0x1f0] sm:$0xff] }
  0x1d   : > { %v890_v0 = vcombine.low %v205_v56, %v209_v57 }
  0x1e   : > { %548 = vmatpush1.bf16.msra.mxu0 %v870_v51  ;;  %591 = vmatpush1.bf16.msra.mxu1 %v872_v52  ;;  %v202_v51 = vld [vmem:[%s1191_s1 + $0x1b8] sm:$0xff]  ;;  %v874_v52 = vcombine.low %v189_v40, %v193_v41 }
  0x1f   : > { %549 = vmatprep.subr.bf16.mxu0 %v879_v53  ;;  %592 = vmatprep.subr.bf16.mxu1 %v881_v54  ;;  %v876_v53 = vcombine.low %v190_v42, %v194_v43  ;;  %v883_v54 = vcombine.high %v197_v48, %v201_v49  ;;  %v885_v55 = vcombine.high %v198_v50, %v202_v51 }
  0x22   : > { %550 = vmatpush1.bf16.msra.mxu0 %v878_v59  ;;  %593 = vmatpush1.bf16.msra.mxu1 %v880_v60  ;;  %v210_v59 = vld [vmem:[%s1191_s1 + $0x1f8] sm:$0xff]  ;;  %v882_v60 = vcombine.low %v197_v48, %v201_v49 }
  0x23   : > { %551 = vmatprep.subr.bf16.mxu0 %v887_v61  ;;  %594 = vmatprep.subr.bf16.mxu1 %v889_v62  ;;  %v884_v61 = vcombine.low %v198_v50, %v202_v51  ;;  %v891_v62 = vcombine.high %v205_v56, %v209_v57  ;;  %v893_v63 = vcombine.high %v206_v58, %v210_v59 }
  0x24   : > { %v892_v1 = vcombine.low %v206_v58, %v210_v59 }
  0x26   : > { %552 = vmatpush1.bf16.msra.mxu0 %v886_v3  ;;  %595 = vmatpush1.bf16.msra.mxu1 %v888_v4 }
  0x27   : > { %623 = vmatprep.subr.bf16.mxu0 %v835_v5  ;;  %666 = vmatprep.subr.bf16.mxu1 %v837_v6 }
  0x29   : > { %570 = vmatmul.mubr.bf16.vlgmr.msra.gmra.mrb[0].mxu0 %v1087_v10  ;;  %613 = vmatmul.mubr.bf16.vlgmr.msra.gmra.mrb[0].mxu1 %v1087_v10 }
  0x2a   : > { %624 = vmatpush1.bf16.msra.mxu0 %v834_v13  ;;  %667 = vmatpush1.bf16.msra.mxu1 %v836_v14 }
  0x2b   : > { %625 = vmatprep.subr.bf16.mxu0 %v843_v15  ;;  %668 = vmatprep.subr.bf16.mxu1 %v845_v16 }
  0x2c   : > { %655 = vmatprep.mubr.bf16.mxu0 %v932_v8  ;;  %698 = vmatprep.mubr.bf16.mxu1 %v932_v8  ;;  %v182_v8 = vld [vmem:[%s1191_s1 + $0x118] sm:$0xff] }
  0x2d   : > { %v869_v39 = vcombine.high %v182_v8, %v186_v35  ;;  %v868_v45 = vcombine.low %v182_v8, %v186_v35 }
  0x2e   : > { %626 = vmatpush1.bf16.msra.mxu0 %v842_v21  ;;  %669 = vmatpush1.bf16.msra.mxu1 %v844_v22 }
  0x2f   : > { %627 = vmatprep.subr.bf16.mxu0 %v851_v23  ;;  %670 = vmatprep.subr.bf16.mxu1 %v853_v24 }
  0x32   : > { %628 = vmatpush1.bf16.msra.mxu0 %v850_v29  ;;  %671 = vmatpush1.bf16.msra.mxu1 %v852_v30 }
  0x33   : > { %629 = vmatprep.subr.bf16.mxu0 %v859_v31  ;;  %672 = vmatprep.subr.bf16.mxu1 %v861_v32 }
  0x36   : > { %630 = vmatpush1.bf16.msra.mxu0 %v858_v36  ;;  %673 = vmatpush1.bf16.msra.mxu1 %v860_v37 }
  0x37   : > { %631 = vmatprep.subr.bf16.mxu0 %v867_v38  ;;  %674 = vmatprep.subr.bf16.mxu1 %v869_v39 }
  0x3a   : > { %632 = vmatpush1.bf16.msra.mxu0 %v866_v44  ;;  %675 = vmatpush1.bf16.msra.mxu1 %v868_v45 }
  0x3b   : > { %633 = vmatprep.subr.bf16.mxu0 %v875_v46  ;;  %676 = vmatprep.subr.bf16.mxu1 %v877_v47 }
  0x3e   : > { %634 = vmatpush1.bf16.msra.mxu0 %v874_v52  ;;  %677 = vmatpush1.bf16.msra.mxu1 %v876_v53 }
  0x3f   : > { %635 = vmatprep.subr.bf16.mxu0 %v883_v54  ;;  %678 = vmatprep.subr.bf16.mxu1 %v885_v55 }
  0x42   : > { %636 = vmatpush1.bf16.msra.mxu0 %v882_v60  ;;  %679 = vmatpush1.bf16.msra.mxu1 %v884_v61 }
  0x43   : > { %637 = vmatprep.subr.bf16.mxu0 %v891_v62  ;;  %680 = vmatprep.subr.bf16.mxu1 %v893_v63 }
  0x46   : > { %638 = vmatpush1.bf16.msra.mxu0 %v890_v0  ;;  %681 = vmatpush1.bf16.msra.mxu1 %v892_v1 }
  0x49   : > { %656 = vmatmul.mubr.bf16.vlgmr.msra.gmra.mrb[4].mxu0 %v1087_v10  ;;  %699 = vmatmul.mubr.bf16.vlgmr.msra.gmra.mrb[4].mxu1 %v1087_v10 }
  0xfc   : > { %v571_v2 = vpop.f32.mrb[0].mxu0  ;;  %v614_v3 = vpop.f32.mrb[0].mxu1 }
  0xfd   : > { %v573_v4 = vpop.f32.mrb[1].mxu0  ;;  %v616_v6 = vpop.f32.mrb[1].mxu1 }
  0xfe   : > { %v906_v5 = vpack.c.bf16 %v573_v4, %v571_v2  ;;  %v575_v7 = vpop.f32.mrb[2].mxu0  ;;  %v907_v9 = vpack.c.bf16 %v616_v6, %v614_v3  ;;  %v618_v11 = vpop.f32.mrb[2].mxu1 }
  0xff   : > { %v577_v12 = vpop.f32.mrb[3].mxu0  ;;  %v620_v13 = vpop.f32.mrb[3].mxu1 }
 0x100   : > { %757 = vst [vmem:[%s1177_s18] sm:$0xff] %v906_v5  ;;  %v910_v10 = vpack.c.bf16 %v577_v12, %v575_v7  ;;  %758 = vst [vmem:[%s1177_s18 + $0x8] sm:$0xff] %v907_v9  ;;  %v911_v14 = vpack.c.bf16 %v620_v13, %v618_v11 }
 0x102   : > { %761 = vst [vmem:[%s1177_s18 + $0x20] sm:$0xff] %v910_v10  ;;  %762 = vst [vmem:[%s1177_s18 + $0x28] sm:$0xff] %v911_v14 }
 0x11c   : > { %v657_v15 = vpop.f32.mrb[4].mxu0  ;;  %v700_v16 = vpop.f32.mrb[4].mxu1 }
 0x11d   : > { %v659_v17 = vpop.f32.mrb[5].mxu0  ;;  %v702_v19 = vpop.f32.mrb[5].mxu1 }
 0x11e   : > { %v908_v18 = vpack.c.bf16 %v659_v17, %v657_v15  ;;  %v661_v20 = vpop.f32.mrb[6].mxu0  ;;  %v909_v21 = vpack.c.bf16 %v702_v19, %v700_v16  ;;  %v704_v22 = vpop.f32.mrb[6].mxu1 }
 0x11f   : > { %v663_v23 = vpop.f32.mrb[7].mxu0  ;;  %v706_v25 = vpop.f32.mrb[7].mxu1 }
 0x120   : > { %759 = vst [vmem:[%s1177_s18 + $0x10] sm:$0xff] %v908_v18  ;;  %v912_v24 = vpack.c.bf16 %v663_v23, %v661_v20  ;;  %760 = vst [vmem:[%s1177_s18 + $0x18] sm:$0xff] %v909_v21  ;;  %v913_v26 = vpack.c.bf16 %v706_v25, %v704_v22 }
 0x122   : > { %763 = vst [vmem:[%s1177_s18 + $0x30] sm:$0xff] %v912_v24  ;;  %764 = vst [vmem:[%s1177_s18 + $0x38] sm:$0xff] %v913_v26 }
 0x123 PF: > { %s12_s9 = sadd.s32 1, %s930_s9  }
 0x124   : > { %p9_p4 = scmp.ge.s32.totalorder %s12_s9, 4  }
 0x126   :  { %11 = sbr.rel (!%p9_p4) target bundleno = 1 (0x1), region = 58 }

// kernel: encoder_forward.25
= control target key start
LH: loop header
LB: loop body
LE: loop exit
PB: predicated region body
PF: predicated region fallthrough
CT: control target
= control target key end

     0   :  { %9 = vsyncpa [#allocation4], 0  ;;  %s1139_s0 = inlined_call_operand.vmem [shape: bf16[2,16,128], index: 0, kind: input, shape index: {}]   ;;  %s1140_s1 = inlined_call_operand.vmem [shape: bf16[2,2,16,128], index: 1, kind: input, shape index: {}]   ;;  %s1141_s2 = inlined_call_operand.vmem [shape: bf16[384,128], index: 2, kind: input, shape index: {}]   ;;  %s1142_s3 = inlined_call_operand.vmem [shape: f32[1,128], index: 3, kind: input, shape index: {}]   ;;  %s1143_s4 = inlined_call_operand.hbm [shape: f32[2,16,128], index: 4, kind: output, shape index: {}]  }
   0x1   :  { %11 = vsyncpa [#allocation4 + $0x1], 0  ;;  %s943_s15 = smov 0   ;;  %s945_s16 = smov 0  }
   0x2   :  { %s947_s17 = smov 0   ;;  %s949_s18 = smov 0  }
   0x3 LB: > { %s964_s19 = sadd.s32 4294967295, %s911_s18   ;;  %s679_s20 = sadd.s32 4294967294, %s911_s18   ;;  %s911_s18 = sphi %s949_s18, %s1149_s18   ;;  %s907_s17 = sphi %s947_s17, %s1148_s17   ;;  %s903_s16 = sphi %s945_s16, %s1147_s16   ;;  %s899_s15 = sphi %s943_s15, %s1146_s15  }
   0x4   : > { %s968_s21 = sadd.s32 1, %s911_s18   ;;  %s50_s22 = sadd.s32 1, %s907_s17 }
   0x5   : > { %s47_s23 = ssub.s32 %s911_s18, %s968_s21  ;;  %p57_p0 = scmp.ne.s32.totalorder %s907_s17, %s903_s16 }
   0x6   : > { %p48_p1 = scmp.eq.s32.totalorder %s47_s23, 0  ;;  %p58_p2 = scmp.eq.s32.totalorder %s911_s18, 0 }
   0x7   : > { %p129_p3 = scmp.eq.s32.totalorder %s964_s19, 1  ;;  %p134_p4 = scmp.ne.s32.totalorder %s903_s16, %s899_s15 }
   0x8   : > { %s980_s24 = scalar_select %p48_p1, %s907_s17, %s50_s22  }
   0x9   : > { %p59_p5 = por %p58_p2, %p57_p0  ;;  %p982_p6 = por %p129_p3, %p57_p0 }
   0xa   : > { %p135_p7 = scmp.eq.s32.totalorder %s679_s20, 1  ;;  %p681_p9 = scmp.ge.s32.totalorder %s911_s18, 2 }
   0xc   : > { %p986_p8 = por %p135_p7, %p134_p4  ;;  %157 = sbr.rel (%p681_p9) target bundleno = 26 (0x1a), region = 24 }
  0x13   : > { %168 = sbr.rel (!%p59_p5) target bundleno = 26 (0x1a), region = 32  ;;  %s170_s27 = sand.u32 (%p59_p5), 1, %s907_s17  }
  0x14   : > { %s725_s28 = sshll.u32 (%p59_p5), %s911_s18, 3  ;;  %s682_s29 = sshll.u32 (%p59_p5), %s170_s27, 4 }
  0x15   : > { %s175_s6 = scalar_lea.vmem (%p59_p5), %s1140_s1, %s725_s28  ;;  %s172_s7 = scalar_lea.vmem (%p59_p5), [#allocation2], %s682_s29 }
  0x16   : > { %v191_v0 = vld [vmem:[%s175_s6] sm:$0xff] (%p59_p5)   ;;  %v195_v1 = vld [vmem:[%s175_s6 + $0x10] sm:$0xff] (%p59_p5)  }
  0x17   : > { %192 = vst [vmem:[%s172_s7] sm:$0xff] (%p59_p5), %v191_v0   ;;  %196 = vst [vmem:[%s172_s7 + $0x8] sm:$0xff] (%p59_p5), %v195_v1  }
  0x1a PF: > { %p685_p10 = scmp.ge.s32.totalorder %s911_s18, 1  ;;  %p228_p11 = scmp.lt.s32.totalorder %s911_s18, 3 }
  0x1c   : > { %p229_p12 = pnand %p685_p10, %p228_p11 }
  0x1d   : > { %v822_v2 = vld [vmem:[%s1141_s2 + $0x40] sm:$0xff] (!%p229_p12)   ;;  %v913_v4 = vmov (!%p229_p12), 0.0   ;;  %v825_v6 = vld [vmem:[%s1141_s2 + $0x48] sm:$0xff] (!%p229_p12)   ;;  %v828_v9 = vld [vmem:[%s1141_s2 + $0x50] sm:$0xff] (!%p229_p12)   ;;  %vm914_vm0 = vmmov (!%p229_p12), 0   ;;  %s235_s23 = sand.u32 (!%p229_p12), 1, %s903_s16  }
  0x1e   : > { %232 = sbr.rel (%p229_p12) target bundleno = 301 (0x12d), region = 73  ;;  %v823_v3 = vld [vmem:[%s1141_s2] sm:$0xff] (!%p229_p12)   ;;  %759 = vmatprep.subr.bf16.mxu1 (!%p229_p12), %v913_v4  ;;  %728 = vmatprep.subr.bf16.mxu0 (!%p229_p12), %v822_v2  ;;  %v826_v7 = vld [vmem:[%s1141_s2 + $0x8] sm:$0xff] (!%p229_p12)   ;;  %v829_v10 = vld [vmem:[%s1141_s2 + $0x10] sm:$0xff] (!%p229_p12)   ;;  %p265_p13 = scmp.lt.s32.totalorder (!%p229_p12), %s964_s19, 1 }
  0x1f   : > { %v824_v5 = vld [vmem:[%s1141_s2 + $0x80] sm:$0xff] (!%p229_p12)   ;;  %729 = vmatpush3.bf16.msra.mxu0 (!%p229_p12), %v823_v3  ;;  %v827_v8 = vld [vmem:[%s1141_s2 + $0x88] sm:$0xff] (!%p229_p12)   ;;  %v830_v11 = vld [vmem:[%s1141_s2 + $0x90] sm:$0xff] (!%p229_p12)   ;;  %775 = vmatprep.mubr.msk.bf16.mxu1 (!%p229_p12), %vm914_vm0, %v913_v4  ;;  %s1052_s7 = sshll.u32 (!%p229_p12), %s235_s23, 4  ;;  %s727_s29 = sshll.u32 (!%p229_p12), %s964_s19, 8 }
  0x20   : > { %760 = vmatpush3.bf16.msra.mxu1 (!%p229_p12), %v824_v5  ;;  %730 = vmatprep.subr.bf16.mxu0 (!%p229_p12), %v825_v6  ;;  %v831_v12 = vld [vmem:[%s1141_s2 + $0x58] sm:$0xff] (!%p229_p12)   ;;  %v834_v15 = vld [vmem:[%s1141_s2 + $0x60] sm:$0xff] (!%p229_p12)   ;;  %v837_v18 = vld [vmem:[%s1141_s2 + $0x68] sm:$0xff] (!%p229_p12)   ;;  %s237_s30 = scalar_lea.vmem (!%p229_p12), [#allocation2], %s1052_s7  ;;  %s1093_s6 = scalar_lea.hbm (!%p229_p12), %s1143_s4, %s727_s29 }
  0x21   : > { %761 = vmatprep.subr.bf16.mxu1 (!%p229_p12), %v913_v4  ;;  %v832_v13 = vld [vmem:[%s1141_s2 + $0x18] sm:$0xff] (!%p229_p12)   ;;  %v835_v16 = vld [vmem:[%s1141_s2 + $0x20] sm:$0xff] (!%p229_p12)   ;;  %v838_v19 = vld [vmem:[%s1141_s2 + $0x28] sm:$0xff] (!%p229_p12)   ;;  %s915_s9 = smov (!%p229_p12), [#allocation3]  }
  0x22   : > { %v833_v14 = vld [vmem:[%s1141_s2 + $0x98] sm:$0xff] (!%p229_p12)   ;;  %v836_v17 = vld [vmem:[%s1141_s2 + $0xa0] sm:$0xff] (!%p229_p12)   ;;  %v839_v20 = vld [vmem:[%s1141_s2 + $0xa8] sm:$0xff] (!%p229_p12)   ;;  %s853_s10 = sshll.u32 (!%p229_p12), %s915_s9, 4  ;;  %s854_s10 = int_to_ptr.vmem [resolvable:$false] %s853_s10 }
  0x23   : > { %731 = vmatpush3.bf16.msra.mxu0 (!%p229_p12), %v826_v7  ;;  %v840_v21 = vld [vmem:[%s1141_s2 + $0x70] sm:$0xff] (!%p229_p12)   ;;  %v843_v25 = vld [vmem:[%s1141_s2 + $0x78] sm:$0xff] (!%p229_p12)   ;;  %v695_v32 = vld [vmem:[%s1142_s3] ss:$0 sm:$0xff] (!%p229_p12) }
  0x24   : > { %762 = vmatpush3.bf16.msra.mxu1 (!%p229_p12), %v827_v8  ;;  %732 = vmatprep.subr.bf16.mxu0 (!%p229_p12), %v828_v9  ;;  %v841_v22 = vld [vmem:[%s1141_s2 + $0x30] sm:$0xff] (!%p229_p12)   ;;  %v844_v26 = vld [vmem:[%s1141_s2 + $0x38] sm:$0xff] (!%p229_p12)  }
  0x25   : > { %763 = vmatprep.subr.bf16.mxu1 %v913_v4  ;;  %s266_s8 = scalar_select %p265_p13, %s964_s19, 1  ;;  %v842_v23 = vld [vmem:[%s1141_s2 + $0xb0] sm:$0xff]   ;;  %v846_v27 = vld [vmem:[%s1141_s2 + $0xb8] sm:$0xff]  }
  0x26   : > { %v845_v24 = vld [vmem:[%s237_s30] sm:$0xff]   ;;  %v848_v29 = vld [vmem:[%s237_s30 + $0x8] sm:$0xff]   ;;  %s1097_s19 = scalar_lea.sflag [#allocation4], %s235_s23 }
  0x27   : > { %733 = vmatpush3.bf16.msra.mxu0 %v829_v10  ;;  %s726_s27 = sshll.u32 %s266_s8, 3  ;;  %527 = vmatprep.mubr.bf16.mxu0 %v845_v24 }
  0x28   : > { %764 = vmatpush3.bf16.msra.mxu1 %v830_v11  ;;  %734 = vmatprep.subr.bf16.mxu0 %v831_v12  ;;  %s269_s11 = scalar_lea.vmem %s1139_s0, %s726_s27  ;;  %s264_s27 = scalar_lea.vmem [#allocation3], %s1052_s7 }
  0x29   : > { %765 = vmatprep.subr.bf16.mxu1 %v913_v4  ;;  %v847_v28 = vld [vmem:[%s269_s11] sm:$0xff]   ;;  %s599_s28 = sshll.u32 %s264_s27, 4  ;;  %s855_s11 = scalar_lea.vmem %s854_s10, 512  ;;  %s1088_s28 = int_to_ptr.vmem [resolvable:$true] %s599_s28 }
  0x2a   : > { %s849_s7 = scalar_lea.vmem %s1088_s28, 256  ;;  %p856_p3 = scmp.lt.s32.totalorder %s1088_s28, %s854_s10 }
  0x2b   : > { %735 = vmatpush3.bf16.msra.mxu0 %v832_v13  ;;  %p850_p0 = scmp.ne.s32.totalorder %s1088_s28, %s849_s7  ;;  %p857_p4 = scmp.lt.s32.totalorder %s855_s11, %s849_s7 }
  0x2c   : > { %766 = vmatpush3.bf16.msra.mxu1 %v833_v14  ;;  %736 = vmatprep.subr.bf16.mxu0 %v834_v15 }
  0x2d   : > { %767 = vmatprep.subr.bf16.mxu1 %v913_v4  ;;  %p851_p1 = pnand %p850_p0, %p982_p6  ;;  %p858_p5 = por %p857_p4, %p856_p3 }
  0x2f   : > { %737 = vmatpush3.bf16.msra.mxu0 %v835_v16  ;;  %p852_p2 = pneg %p851_p1 }
  0x30   : > { %768 = vmatpush3.bf16.msra.mxu1 %v836_v17  ;;  %738 = vmatprep.subr.bf16.mxu0 %v837_v18 }
  0x31   : > { %769 = vmatprep.subr.bf16.mxu1 %v913_v4  ;;  %p859_p7 = pnand %p858_p5, %p852_p2 }
  0x33   : > { %739 = vmatpush3.bf16.msra.mxu0 %v838_v19 }
  0x34   : > { %770 = vmatpush3.bf16.msra.mxu1 %v839_v20  ;;  %740 = vmatprep.subr.bf16.mxu0 %v840_v21 }
  0x35   : > { %771 = vmatprep.subr.bf16.mxu1 %v913_v4 }
  0x37   : > { %741 = vmatpush3.bf16.msra.mxu0 %v841_v22 }
  0x38   : > { %772 = vmatpush3.bf16.msra.mxu1 %v842_v23  ;;  %742 = vmatprep.subr.bf16.mxu0 %v843_v25 }
  0x39   : > { %773 = vmatprep.subr.bf16.mxu1 %v913_v4 }
  0x3b   : > { %743 = vmatpush3.bf16.msra.mxu0 %v844_v26 }
  0x3c   : > { %774 = vmatpush3.bf16.msra.mxu1 %v846_v27 }
  0x3e   : > { %528 = vmatmul.mubr.bf16.vlgmr.msra.gmra.mrb[0].mxu0 %v847_v28 }
  0x3f   : > { %776 = vmatmul.mubr.bf16.vlgmr.msra.gmra.mrb[0].mxu1 %v848_v29 }
 0x111   : > { %v744_v30 = vpop.f32.mrb[0].mxu0 }
 0x112   : > { %v745_v31 = vpop.f32.mrb[1].mxu0  ;;  %v570_v33 = vpop.f32.mrb[0].mxu1 }
 0x113   : > { %v746_v34 = vadd.f32 %v745_v31, %v744_v30  ;;  %v747_v35 = vpop.f32.mrb[2].mxu0  ;;  %v777_v36 = vpop.f32.mrb[1].mxu1 }
 0x114   : > { %v748_v37 = vpop.f32.mrb[3].mxu0  ;;  %v573_v38 = vpop.f32.mrb[2].mxu1 }
 0x115   : > { %v530_v39 = vadd.f32 %v746_v34, %v695_v32  ;;  %v749_v40 = vadd.f32 %v748_v37, %v747_v35  ;;  %v778_v41 = vpop.f32.mrb[3].mxu1 }
 0x117   : > { %v571_v42 = vadd.f32 %v570_v33, %v530_v39  ;;  %v533_v43 = vadd.f32 %v749_v40, %v695_v32 }
 0x119   : > { %vm577_vm1 = vcmp.ge.f32.partialorder %v571_v42, 0.0  ;;  %v579_v44 = vmul.f32 0.2, %v571_v42  ;;  %v574_v45 = vadd.f32 %v573_v38, %v533_v43 }
 0x11b   : > { %v581_v46 = vsel %vm577_vm1, %v571_v42, %v579_v44  ;;  %vm578_vm2 = vcmp.ge.f32.partialorder %v574_v45, 0.0  ;;  %v580_v47 = vmul.f32 0.2, %v574_v45 }
 0x11c   : > { %583 = vst [vmem:[%s264_s27] sm:$0xff] %v581_v46 }
 0x11d   : > { %v582_v48 = vsel %vm578_vm2, %v574_v45, %v580_v47 }
 0x11e   : > { %584 = vst [vmem:[%s264_s27 + $0x8] sm:$0xff] %v582_v48 }
 0x11f   : > { %862 = shalt.err (!%p859_p7)
}
 0x120   : > { %s863_s23 = scalar_lea.hbm %s1093_s6, 256  ;;  %s867_s13 = scalar_lea.hbm %s1143_s4, 512 }
 0x121   : > { %p864_p10 = scmp.ne.s32.totalorder %s1093_s6, %s863_s23  ;;  %p868_p13 = scmp.lt.u32.totalorder %s1093_s6, %s1143_s4 }
 0x122   : > { %p869_p0 = scmp.lt.u32.totalorder %s867_s13, %s863_s23  ;;  %p871_p2 = scmp.lt.u32.totalorder %s863_s23, %s1093_s6 }
 0x123   : > { %p865_p11 = pnand %p864_p10, %p982_p6 }
 0x124   : > { %p870_p1 = por %p869_p0, %p868_p13 }
 0x125   : > { %p866_p12 = pneg %p865_p11 }
 0x126   : > { %p872_p3 = por %p871_p2, %p870_p1 }
 0x128   : > { %p873_p4 = pnand %p872_p3, %p866_p12 }
 0x12a   : > { %876 = shalt.err (!%p873_p4)
}
 0x12b   : > { %s916_s22 = smov 128   ;;  %s917_s27 = smov 8  }
 0x12c   : > { %779 = dma.vmem_to_hbm [thread:$0]  (%p982_p6), %s1088_s28, 256, %s1093_s6, %s1097_s19, %s916_s22, %s916_s22, %s917_s27  }
 0x12d PF: > { %s614_s29 = sand.u32 1, %s899_s15   ;;  %p782_p5 = pnand %p681_p9, %p986_p8 }
 0x12e   : > { %s615_s30 = scalar_lea.sflag [#allocation4], %s614_s29 }
 0x12f   : > { %894 = dma.done.wait (!%p782_p5), %s615_s30, 256  }
 0x130   : > { %896 = vsyncadd (!%p782_p5), %s615_s30, 4294967040  ;;  %p14_p7 = scmp.ge.s32.totalorder %s968_s21, 4   ;;  %s1146_s15 = smov %s903_s16 }
 0x131   : > { %s1147_s16 = smov %s907_s17  ;;  %s1148_s17 = smov %s980_s24 }
 0x132   : > { %s1149_s18 = smov %s968_s21  ;;  %16 = sbr.rel (!%p14_p7) target bundleno = 3 (0x3), region = 121 }
 0x139   :  { %620 = vsyncpa [#allocation4], 1 }
 0x13a   :  { %622 = vsyncpa [#allocation4 + $0x1], 1 }

// kernel: encoder_forward.24
= control target key start
LH: loop header
LB: loop body
LE: loop exit
PB: predicated region body
PF: predicated region fallthrough
CT: control target
= control target key end

     0   :  { %s1139_s12 = smov 0   ;;  %s1141_s13 = smov 0   ;;  %s1305_s0 = inlined_call_operand.vmem [shape: bf16[2,16,1024], index: 0, kind: input, shape index: {}]   ;;  %s1306_s1 = inlined_call_operand.vmem [shape: bf16[2,128,512], index: 1, kind: input, shape index: {}]   ;;  %s1307_s2 = inlined_call_operand.vmem [shape: f32[2,1,512], index: 2, kind: input, shape index: {}]   ;;  %s1308_s3 = inlined_call_operand.vmem [shape: bf16[2,2,16,128], index: 3, kind: output, shape index: {}]  }
   0x1   :  { %s1143_s14 = smov 0   ;;  %s1145_s15 = smov 0  }
   0x2   :  { %s1147_s16 = smov 0   ;;  %s1149_s17 = smov 0  }
   0x3   :  { %s1151_s18 = smov 0  }
   0x4 LB: > { %s22_s19 = sadd.s32 1, %s1107_s16  ;;  %s25_s20 = sadd.s32 1, %s1111_s17  ;;  %s1115_s18 = sphi %s1151_s18, %s13_s18   ;;  %s1111_s17 = sphi %s1149_s17, %s1315_s17   ;;  %s1107_s16 = sphi %s1147_s16, %s1314_s16   ;;  %s1103_s15 = sphi %s1145_s15, %s1313_s15   ;;  %s1099_s14 = sphi %s1143_s14, %s1312_s14   ;;  %s1095_s13 = sphi %s1141_s13, %s1311_s13   ;;  %s1091_s12 = sphi %s1139_s12, %s1310_s12  }
   0x5   : > { %p23_p0 = scmp.ge.s32.totalorder %s22_s19, 2  ;;  %s850_s21 = sshll.u32 %s1111_s17, 1 }
   0x6   : > { %s30_s22 = ssub.s32 1, %s850_s21  ;;  %p49_p1 = scmp.ne.s32.totalorder %s1095_s13, %s1091_s12 }
   0x7   : > { %s1317_s19 = smov (%p23_p0, %s22_s19), 0  ;;  %s1319_s20 = smov (!%p23_p0, %s25_s20), %s1111_s17 }
   0x8   : > { %p27_p2 = scmp.ge.s32.totalorder %s1319_s20, 2  ;;  %p50_p3 = scmp.eq.s32.totalorder %s1115_s18, 0 }
   0x9   : > { %s31_s23 = smul.u32 %s1107_s16, %s30_s22  ;;  %s42_s6 = sadd.s32 1, %s1095_s13 }
   0xa   : > { %s1321_s20 = smov (%p27_p2, %s1319_s20), 0  ;;  %p1186_p4 = por %p50_p3, %p49_p1 }
   0xb   : > { %s851_s25 = sshll.u32 %s1321_s20, 1  ;;  %s32_s27 = sadd.s32 %s1111_s17, %s31_s23 }
   0xc   : > { %s34_s26 = ssub.s32 1, %s851_s25  ;;  %s38_s29 = ssub.s32 %s1111_s17, %s1321_s20 }
   0xd   : > { %s35_s28 = smul.u32 %s34_s26, %s1317_s19  ;;  %p855_p6 = scmp.ge.s32.totalorder %s1115_s18, 4 }
   0xf   : > { %s36_s30 = sadd.s32 %s35_s28, %s1321_s20  ;;  %163 = sbr.rel (%p855_p6) target bundleno = 31 (0x1f), region = 16 }
  0x10   : > { %s37_s4 = ssub.s32 %s32_s27, %s36_s30 }
  0x11   : > { %s39_s5 = sor.u32 %s38_s29, %s37_s4 }
  0x12   : > { %p40_p5 = scmp.eq.s32.totalorder %s39_s5, 0 }
  0x14   : > { %s1198_s7 = scalar_select %p40_p5, %s1095_s13, %s42_s6  }
  0x16   : > { %166 = sbr.rel (!%p1186_p4) target bundleno = 31 (0x1f), region = 20  ;;  %s168_s8 = sand.u32 (%p1186_p4), 1, %s1095_s13  }
  0x17   : > { %s858_s9 = sshll.u32 (%p1186_p4), %s1111_s17, 2  ;;  %s856_s10 = sshll.u32 (%p1186_p4), %s168_s8, 5 }
  0x18   : > { %s859_s11 = sshll.u32 (%p1186_p4), %s32_s27, 4  ;;  %s170_s28 = scalar_lea.vmem (%p1186_p4), [#allocation4], %s856_s10 }
  0x19   : > { %s177_s21 = sadd.s32 (%p1186_p4), %s859_s11, %s858_s9 }
  0x1a   : > { %s860_s22 = sshll.u32 (%p1186_p4), %s177_s21, 2 }
  0x1b   : > { %s179_s26 = scalar_lea.vmem (%p1186_p4), %s1305_s0, %s860_s22 }
  0x1c   : > { %v192_v0 = vld [vmem:[%s179_s26] sm:$0xff] (%p1186_p4)  ;;  %v194_v1 = vld [vmem:[%s179_s26 + $0x8] sm:$0xff] (%p1186_p4) }
  0x1d   : > { %v196_v2 = vld [vmem:[%s179_s26 + $0x20] sm:$0xff]  ;;  %193 = vst [vmem:[%s170_s28] sm:$0xff] %v192_v0  ;;  %195 = vst [vmem:[%s170_s28 + $0x8] sm:$0xff] %v194_v1  ;;  %v198_v3 = vld [vmem:[%s179_s26 + $0x28] sm:$0xff] }
  0x1e   : > { %197 = vst [vmem:[%s170_s28 + $0x10] sm:$0xff] %v196_v2  ;;  %199 = vst [vmem:[%s170_s28 + $0x18] sm:$0xff] %v198_v3 }
  0x1f PF: > { %p861_p7 = scmp.ge.s32.totalorder %s1115_s18, 1  ;;  %p219_p8 = scmp.lt.s32.totalorder %s1115_s18, 5 }
  0x21   : > { %p220_p9 = pnand %p861_p7, %p219_p8 }
  0x22   : > { %s226_s24 = sand.u32 (!%p220_p9), 1, %s1091_s12   ;;  %p271_p10 = scmp.lt.s32.totalorder (!%p220_p9), %s1103_s15, 1 }
  0x23   : > { %223 = sbr.rel (%p220_p9) target bundleno = 348 (0x15c), region = 51  ;;  %s862_s27 = sshll.u32 (!%p220_p9), %s226_s24, 5 }
  0x24   : > { %s866_s29 = sshll.u32 (!%p220_p9), %s1103_s15, 1  ;;  %p870_p12 = scmp.ne.s32.totalorder (!%p220_p9), %s1099_s14, 0 }
  0x25   : > { %s281_s30 = ssub.s32 (!%p220_p9), 1, %s866_s29 }
  0x26   : > { %s282_s5 = smul.u32 (!%p220_p9), %s1099_s14, %s281_s30 }
  0x28   : > { %s283_s25 = sadd.s32 (!%p220_p9), %s1103_s15, %s282_s5 }
  0x29   : > { %p286_p11 = scmp.lt.s32.totalorder (!%p220_p9), %s283_s25, 1 }
  0x2a   : > { %s272_s4 = scalar_select %p271_p10, %s1103_s15, 1 }
  0x2b   : > { %s1323_s25 = smov (!%p286_p11, %s283_s25), 1  ;;  %301 = sbr.rel (%p870_p12) target bundleno = 51 (0x33), region = 59 }
  0x2c   : > { %s915_s6 = sshll.u32 %s272_s4, 8  ;;  %s865_s8 = sshll.u32 %s272_s4, 2  ;;  %v1117_v4 = vmov (!%p870_p12), 0.0  }
  0x2d   : > { %s1218_s11 = scalar_lea.vmem %s1306_s1, %s915_s6  ;;  %s1223_s23 = scalar_lea.vmem %s1307_s2, %s865_s8 }
  0x2e   : > { %s867_s12 = sshll.u32 %s1323_s25, 1  ;;  %s1231_s4 = scalar_lea.vmem [#allocation4], %s862_s27 }
  0x2f   : > { %s290_s26 = sadd.s32 %s867_s12, %s865_s8  ;;  %s871_s6 = sshll.u32 (!%p870_p12), %s1103_s15, 4 }
  0x30   : > { %s869_s28 = sshll.u32 %s290_s26, 2  ;;  %s303_s9 = scalar_lea.vmem (!%p870_p12), [#allocation2], %s871_s6 }
  0x31   : > { %s1229_s30 = scalar_lea.vmem %s1308_s3, %s869_s28  ;;  %304 = vst [vmem:[%s303_s9] sm:$0xff] (!%p870_p12), %v1117_v4  ;;  %305 = vst [vmem:[%s303_s9 + $0x8] sm:$0xff] (!%p870_p12), %v1117_v4  ;;  %s306_s5 = scalar_lea.vmem (!%p870_p12), [#allocation3], %s871_s6 }
  0x32   : > { %307 = vst [vmem:[%s306_s5] sm:$0xff] %v1117_v4  ;;  %308 = vst [vmem:[%s306_s5 + $0x8] sm:$0xff] %v1117_v4 }
  0x33 PF: > { %v981_v5 = vld [vmem:[%s1218_s11 + $0x4] ss:$16 sps:$4 sm:$0xff]   ;;  %v983_v6 = vld [vmem:[%s1218_s11] ss:$16 sps:$4 sm:$0xff]   ;;  %v1118_v7 = vmov 0   ;;  %s872_s14 = sshll.u32 %s1103_s15, 4  ;;  %v330_v41 = vlaneseq }
  0x34   : > { %583 = vmatprep.mubr.bf16.mxu0 %v1118_v7  ;;  %626 = vmatprep.mubr.bf16.mxu1 %v1118_v7  ;;  %v984_v8 = vld [vmem:[%s1218_s11 + $0x24] ss:$16 sps:$4 sm:$0xff]   ;;  %v986_v9 = vld [vmem:[%s1218_s11 + $0x20] ss:$16 sps:$4 sm:$0xff]   ;;  %v992_v11 = vld [vmem:[%s1218_s11 + $0xc] ss:$16 sps:$4 sm:$0xff]  }
  0x35   : > { %551 = vmatprep.subr.bf16.mxu0 %v981_v5  ;;  %v987_v10 = vld [vmem:[%s1218_s11 + $0x44] ss:$16 sps:$4 sm:$0xff]   ;;  %v995_v12 = vld [vmem:[%s1218_s11 + $0x8] ss:$16 sps:$4 sm:$0xff]   ;;  %v989_v13 = vld [vmem:[%s1218_s11 + $0x40] ss:$16 sps:$4 sm:$0xff]   ;;  %594 = vmatprep.subr.bf16.mxu1 %v992_v11 }
  0x36   : > { %552 = vmatpush1.bf16.msra.mxu0 %v983_v6  ;;  %v990_v14 = vld [vmem:[%s1218_s11 + $0x64] ss:$16 sps:$4 sm:$0xff]   ;;  %595 = vmatpush1.bf16.msra.mxu1 %v995_v12  ;;  %v998_v15 = vld [vmem:[%s1218_s11 + $0x2c] ss:$16 sps:$4 sm:$0xff]   ;;  %v1001_v16 = vld [vmem:[%s1218_s11 + $0x28] ss:$16 sps:$4 sm:$0xff]  }
  0x37   : > { %553 = vmatprep.subr.bf16.mxu0 %v984_v8  ;;  %596 = vmatprep.subr.bf16.mxu1 %v998_v15  ;;  %v994_v17 = vld [vmem:[%s1218_s11 + $0x60] ss:$16 sps:$4 sm:$0xff]   ;;  %v996_v18 = vld [vmem:[%s1218_s11 + $0x84] ss:$16 sps:$4 sm:$0xff]   ;;  %v1004_v19 = vld [vmem:[%s1218_s11 + $0x4c] ss:$16 sps:$4 sm:$0xff]  }
  0x38   : > { %v1007_v20 = vld [vmem:[%s1218_s11 + $0x48] ss:$16 sps:$4 sm:$0xff]   ;;  %v1010_v21 = vld [vmem:[%s1218_s11 + $0x6c] ss:$16 sps:$4 sm:$0xff]   ;;  %v1000_v22 = vld [vmem:[%s1218_s11 + $0x80] ss:$16 sps:$4 sm:$0xff]  }
  0x39   : > { %v1002_v23 = vld [vmem:[%s1218_s11 + $0xa4] ss:$16 sps:$4 sm:$0xff]   ;;  %v1013_v24 = vld [vmem:[%s1218_s11 + $0x68] ss:$16 sps:$4 sm:$0xff]   ;;  %v1016_v25 = vld [vmem:[%s1218_s11 + $0x8c] ss:$16 sps:$4 sm:$0xff]  }
  0x3a   : > { %554 = vmatpush1.bf16.msra.mxu0 %v986_v9  ;;  %597 = vmatpush1.bf16.msra.mxu1 %v1001_v16  ;;  %v1006_v26 = vld [vmem:[%s1218_s11 + $0xa0] ss:$16 sps:$4 sm:$0xff]   ;;  %v1008_v27 = vld [vmem:[%s1218_s11 + $0xc4] ss:$16 sps:$4 sm:$0xff]   ;;  %v1019_v28 = vld [vmem:[%s1218_s11 + $0x88] ss:$16 sps:$4 sm:$0xff]  }
  0x3b   : > { %555 = vmatprep.subr.bf16.mxu0 %v987_v10  ;;  %598 = vmatprep.subr.bf16.mxu1 %v1004_v19  ;;  %v1020_v29 = vld [vmem:[%s1218_s11 + $0xac] ss:$16 sps:$4 sm:$0xff]   ;;  %v1012_v30 = vld [vmem:[%s1218_s11 + $0xc0] ss:$16 sps:$4 sm:$0xff]   ;;  %v1014_v31 = vld [vmem:[%s1218_s11 + $0xe4] ss:$16 sps:$4 sm:$0xff]  }
  0x3c   : > { %v1022_v32 = vld [vmem:[%s1218_s11 + $0xa8] ss:$16 sps:$4 sm:$0xff]   ;;  %v1023_v33 = vld [vmem:[%s1218_s11 + $0xcc] ss:$16 sps:$4 sm:$0xff]   ;;  %v1018_v34 = vld [vmem:[%s1218_s11 + $0xe0] ss:$16 sps:$4 sm:$0xff]  }
  0x3d   : > { %s1267_s27 = scalar_lea.vmem [#allocation2], %s872_s14  ;;  %v1025_v37 = vld [vmem:[%s1218_s11 + $0xc8] ss:$16 sps:$4 sm:$0xff]   ;;  %v1026_v38 = vld [vmem:[%s1218_s11 + $0xec] ss:$16 sps:$4 sm:$0xff]   ;;  %v331_v42 = vshrl.u32 %v330_v41, 7 }
  0x3e   : > { %556 = vmatpush1.bf16.msra.mxu0 %v989_v13  ;;  %599 = vmatpush1.bf16.msra.mxu1 %v1007_v20  ;;  %v311_v35 = vld [vmem:[%s1267_s27] sm:$0xff]  ;;  %v312_v36 = vld [vmem:[%s1267_s27 + $0x8] sm:$0xff]  ;;  %v318_v47 = vld [vmem:[%s1231_s4 + $0x10] sm:$0xff]  ;;  %s313_s8 = scalar_lea.vmem [#allocation3], %s872_s14 }
  0x3f   : > { %557 = vmatprep.subr.bf16.mxu0 %v990_v14  ;;  %600 = vmatprep.subr.bf16.mxu1 %v1010_v21  ;;  %v358_v39 = vpack.c.bf16 %v312_v36, %v311_v35  ;;  %v1028_v40 = vld [vmem:[%s1218_s11 + $0xe8] ss:$16 sps:$4 sm:$0xff]   ;;  %v332_v43 = vsub.s32 0, %v331_v42  ;;  %v316_v44 = vld [vmem:[%s1231_s4] sm:$0xff]  ;;  %v336_v46 = vsub.s32 1, %v331_v42  ;;  %v324_v52 = vunpack.c.l.bf16 %v318_v47 }
  0x40   : > { %v328_v45 = vld [vmem:[%s1223_s23] sm:$0xf]  ;;  %v320_v48 = vunpack.c.l.bf16 %v316_v44  ;;  %v321_v50 = vunpack.c.h.bf16 %v316_v44  ;;  %v344_v53 = vsub.s32 3, %v331_v42  ;;  %v325_v54 = vunpack.c.h.bf16 %v318_v47  ;;  %v317_v55 = vld [vmem:[%s1231_s4 + $0x8] sm:$0xff]  ;;  %v319_v59 = vld [vmem:[%s1231_s4 + $0x18] sm:$0xff] }
  0x41   : > { %v333_v49 = vrot.slane %v328_v45, %v332_v43  ;;  %v337_v51 = vrot.slane %v328_v45, %v336_v46  ;;  %v340_v58 = vsub.s32 2, %v331_v42  ;;  %v323_v61 = vunpack.c.h.bf16 %v317_v55  ;;  %v314_v42 = vld [vmem:[%s313_s8] sm:$0xff]  ;;  %v315_v46 = vld [vmem:[%s313_s8 + $0x8] sm:$0xff] }
  0x42   : > { %558 = vmatpush1.bf16.msra.mxu0 %v994_v17  ;;  %601 = vmatpush1.bf16.msra.mxu1 %v1013_v24  ;;  %v345_v62 = vrot.slane %v328_v45, %v344_v53  ;;  %v327_v3 = vunpack.c.h.bf16 %v319_v59  ;;  %v322_v6 = vunpack.c.l.bf16 %v317_v55  ;;  %v326_v14 = vunpack.c.l.bf16 %v319_v59 }
  0x43   : > { %559 = vmatprep.subr.bf16.mxu0 %v996_v18  ;;  %602 = vmatprep.subr.bf16.mxu1 %v1016_v25  ;;  %v350_v56 = vadd.f32 %v333_v49, %v320_v48  ;;  %v351_v57 = vadd.f32 %v337_v51, %v321_v50  ;;  %v354_v60 = vadd.f32 %v333_v49, %v324_v52 }
  0x44   : > { %v355_v0 = vadd.f32 %v337_v51, %v325_v54  ;;  %v341_v7 = vrot.slane %v328_v45, %v340_v58  ;;  %v353_v11 = vadd.f32 %v345_v62, %v323_v61  ;;  %v357_v17 = vadd.f32 %v345_v62, %v327_v3 }
  0x46   : > { %560 = vmatpush1.bf16.msra.mxu0 %v1000_v22  ;;  %603 = vmatpush1.bf16.msra.mxu1 %v1019_v28  ;;  %v352_v19 = vadd.f32 %v341_v7, %v322_v6 }
  0x47   : > { %561 = vmatprep.subr.bf16.mxu0 %v1002_v23  ;;  %604 = vmatprep.subr.bf16.mxu1 %v1020_v29  ;;  %v356_v23 = vadd.f32 %v341_v7, %v326_v14 }
  0x4a   : > { %562 = vmatpush1.bf16.msra.mxu0 %v1006_v26  ;;  %605 = vmatpush1.bf16.msra.mxu1 %v1022_v32 }
  0x4b   : > { %563 = vmatprep.subr.bf16.mxu0 %v1008_v27  ;;  %606 = vmatprep.subr.bf16.mxu1 %v1023_v33 }
  0x4e   : > { %564 = vmatpush1.bf16.msra.mxu0 %v1012_v30  ;;  %607 = vmatpush1.bf16.msra.mxu1 %v1025_v37 }
  0x4f   : > { %565 = vmatprep.subr.bf16.mxu0 %v1014_v31  ;;  %608 = vmatprep.subr.bf16.mxu1 %v1026_v38 }
  0x52   : > { %566 = vmatpush1.bf16.msra.mxu0 %v1018_v34  ;;  %609 = vmatpush1.bf16.msra.mxu1 %v1028_v40 }
  0x55   : > { %584 = vmatmul.mubr.bf16.vlgmr.msra.gmra.mrb[0].mxu0 %v358_v39  ;;  %627 = vmatmul.mubr.bf16.vlgmr.msra.gmra.mrb[0].mxu1 %v358_v39 }
 0x128   : > { %v585_v63 = vpop.f32.mrb[0].mxu0  ;;  %v628_v16 = vpop.f32.mrb[0].mxu1 }
 0x129   : > { %v637_v1 = vadd.f32 %v585_v63, %v350_v56  ;;  %v587_v2 = vpop.f32.mrb[1].mxu0  ;;  %v630_v20 = vpop.f32.mrb[1].mxu1  ;;  %v639_v26 = vadd.f32 %v628_v16, %v352_v19 }
 0x12a   : > { %v638_v4 = vadd.f32 %v587_v2, %v351_v57  ;;  %v589_v5 = vpop.f32.mrb[2].mxu0  ;;  %v640_v21 = vadd.f32 %v630_v20, %v353_v11  ;;  %v632_v22 = vpop.f32.mrb[2].mxu1 }
 0x12b   : > { %v905_v8 = vmul.f32 -1.442695, %v637_v1  ;;  %v641_v9 = vadd.f32 %v589_v5, %v354_v60  ;;  %v591_v10 = vpop.f32.mrb[3].mxu0  ;;  %v634_v24 = vpop.f32.mrb[3].mxu1  ;;  %v643_v28 = vadd.f32 %v632_v22, %v356_v23 }
 0x12c   : > { %v907_v12 = vmul.f32 -1.442695, %v638_v4  ;;  %v642_v13 = vadd.f32 %v591_v10, %v355_v0  ;;  %v644_v25 = vadd.f32 %v634_v24, %v357_v17  ;;  %v909_v27 = vmul.f32 -1.442695, %v640_v21 }
 0x12d   : > { %1029 = vpow2.f32 %v905_v8  ;;  %v906_v15 = vmul.f32 -1.442695, %v641_v9 }
 0x12e   : > { %1031 = vpow2.f32 %v907_v12  ;;  %v908_v18 = vmul.f32 -1.442695, %v642_v13  ;;  %v910_v29 = vmul.f32 -1.442695, %v644_v25 }
 0x12f   : > { %1033 = vpow2.f32 %v906_v15 }
 0x130   : > { %1035 = vpow2.f32 %v908_v18 }
 0x131   : > { %1037 = vtanh.f32 %v639_v26 }
 0x132   : > { %1039 = vpow2.f32 %v909_v27 }
 0x133   : > { %1041 = vtanh.f32 %v643_v28 }
 0x134   : > { %1043 = vpow2.f32 %v910_v29 }
 0x137   : > { %v1030_v30 = vpop.eup %1029 }
 0x138   : > { %v1032_v31 = vpop.eup %1031  ;;  %v651_v32 = vadd.f32 1.0, %v1030_v30 }
 0x139   : > { %v1034_v33 = vpop.eup %1033  ;;  %v663_v34 = vadd.f32 1.0, %v1032_v31 }
 0x13a   : > { %v1036_v35 = vpop.eup %1035  ;;  %1045 = vrcp.f32 %v651_v32  ;;  %v652_v36 = vadd.f32 1.0, %v1034_v33 }
 0x13b   : > { %1047 = vrcp.f32 %v663_v34  ;;  %v664_v37 = vadd.f32 1.0, %v1036_v35  ;;  %v1038_v38 = vpop.eup %1037 }
 0x13c   : > { %1049 = vrcp.f32 %v652_v36  ;;  %v1040_v39 = vpop.eup %1039 }
 0x13d   : > { %1051 = vrcp.f32 %v664_v37  ;;  %v1042_v40 = vpop.eup %1041  ;;  %v677_v44 = vadd.f32 1.0, %v1040_v39 }
 0x13e   : > { %v1044_v41 = vpop.eup %1043 }
 0x13f   : > { %v678_v52 = vadd.f32 1.0, %v1044_v41  ;;  %1053 = vrcp.f32 %v677_v44 }
 0x144   : > { %v1046_v43 = vpop.eup %1045 }
 0x145   : > { %v1048_v45 = vpop.eup %1047  ;;  %v685_v47 = vmul.f32 %v1046_v43, %v1038_v38 }
 0x146   : > { %v1050_v48 = vpop.eup %1049  ;;  %v683_v49 = vmul.f32 %v1048_v45, %v314_v42 }
 0x147   : > { %v1052_v50 = vpop.eup %1051  ;;  %v686_v51 = vmul.f32 %v1050_v48, %v1042_v40 }
 0x148   : > { %v684_v53 = vmul.f32 %v1052_v50, %v315_v46  ;;  %v687_v54 = vadd.f32 %v685_v47, %v683_v49 }
 0x149   : > { %v1054_v56 = vpop.eup %1053 }
 0x14a   : > { %1055 = vtanh.f32 %v687_v54  ;;  %695 = vst [vmem:[%s313_s8] sm:$0xff] %v687_v54  ;;  %v688_v55 = vadd.f32 %v686_v51, %v684_v53 }
 0x14b   : > { %1057 = vrcp.f32 %v678_v52 }
 0x14c   : > { %1059 = vtanh.f32 %v688_v55  ;;  %696 = vst [vmem:[%s313_s8 + $0x8] sm:$0xff] %v688_v55 }
 0x154   : > { %v1056_v57 = vpop.eup %1055 }
 0x155   : > { %v1058_v58 = vpop.eup %1057  ;;  %v691_v59 = vmul.f32 %v1056_v57, %v1054_v56 }
 0x156   : > { %v1060_v60 = vpop.eup %1059 }
 0x157   : > { %693 = vst [vmem:[%s1267_s27] sm:$0xff] %v691_v59  ;;  %v692_v61 = vmul.f32 %v1060_v60, %v1058_v58 }
 0x159   : > { %694 = vst [vmem:[%s1267_s27 + $0x8] sm:$0xff] %v692_v61  ;;  %v921_v62 = vpack.c.bf16 %v692_v61, %v691_v59 }
 0x15b   : > { %922 = vst [vmem:[%s1229_s30] sm:$0xff] %v921_v62  }
 0x15c PF: > { %s13_s18 = sadd.s32 1, %s1115_s18   ;;  %s1310_s12 = smov %s1095_s13 }
 0x15d   : > { %p10_p13 = scmp.ge.s32.totalorder %s13_s18, 6   ;;  %s1311_s13 = smov %s1198_s7 }
 0x15e   : > { %s1312_s14 = smov %s1107_s16  ;;  %s1313_s15 = smov %s1111_s17 }
 0x15f   : > { %s1314_s16 = smov %s1317_s19  ;;  %s1315_s17 = smov %s1321_s20 }
 0x160   :  { %12 = sbr.rel (!%p10_p13) target bundleno = 4 (0x4), region = 104 }

</bundles_post_ra>
